<compile_context>
chip_gen: v7x
topology: tpu7x:2x2x1
jax: 0.10.0
libtpu: 0.0.40
codegen_flags: <defaults>
</compile_context>

<pallas_src>
import jax
import jax.numpy as jnp
from jax.experimental import pallas as pl
from jax.experimental.pallas import tpu as pltpu

HEADS = 8
DIM_HEAD = 32
HIDDEN = HEADS * DIM_HEAD            # 256
SCALE = DIM_HEAD ** (-0.5)
LN_EPS = 1e-5                        # torch.nn.LayerNorm default eps


def _make_kernel(tb, n, c):
    """Kernel closed over static (TB, N, C). Processes TB batch elements per grid step."""
    rows = tb * n

    def kernel(x_ref, g_ref, beta_ref, wq_ref, wk_ref, wv_ref, wo_ref, bo_ref, o_ref):
        # ---- LayerNorm(dim) over (TB*N, C) rows (biased variance, affine) ----
        x = x_ref[...].reshape(rows, c)                          # (R, C) f32
        mean = jnp.mean(x, axis=-1, keepdims=True)
        xc = x - mean
        var = jnp.mean(xc * xc, axis=-1, keepdims=True)
        xn = xc * jax.lax.rsqrt(var + LN_EPS)                    # EUP rsqrt, no divide
        xn = xn * g_ref[...] + beta_ref[...]                     # (R, C)
        xn_b = xn.astype(jnp.bfloat16)                           # bf16 MXU operands

        # ---- q/k/v projections: one big (R, C) @ (C, HIDDEN) each, f32 accumulate ----
        # (SCALE is already folded into Wq host-side.)
        q = jnp.dot(xn_b, wq_ref[...], preferred_element_type=jnp.float32)
        k = jnp.dot(xn_b, wk_ref[...], preferred_element_type=jnp.float32)
        v = jnp.dot(xn_b, wv_ref[...], preferred_element_type=jnp.float32)

        q3 = q.reshape(tb, n, HIDDEN).astype(jnp.bfloat16)       # leading-dim split only
        k3 = k.reshape(tb, n, HIDDEN).astype(jnp.bfloat16)
        v3 = v.reshape(tb, n, HIDDEN).astype(jnp.bfloat16)

        # ---- per-head attention, batched over TB; fold heads into output projection ----
        acc = jnp.zeros((rows, c), jnp.float32)
        for h in range(HEADS):
            sl = slice(h * DIM_HEAD, (h + 1) * DIM_HEAD)
            qh, kh, vh = q3[..., sl], k3[..., sl], v3[..., sl]   # (TB, N, d) bf16
            sim = jnp.einsum('bqd,bkd->bqk', qh, kh,
                             preferred_element_type=jnp.float32)  # (TB, N, N)
            m = jnp.max(sim, axis=-1, keepdims=True)
            p = jnp.exp(sim - m)
            inv = pl.reciprocal(jnp.sum(p, axis=-1, keepdims=True), approx=True)
            attn = (p * inv).astype(jnp.bfloat16)
            oh = jnp.einsum('bqk,bkd->bqd', attn, vh,
                            preferred_element_type=jnp.float32)  # (TB, N, d)
            # head output folded straight into the output projection (no concat):
            acc += jnp.dot(oh.reshape(rows, DIM_HEAD).astype(jnp.bfloat16),
                           wo_ref[sl, :], preferred_element_type=jnp.float32)

        y = acc + bo_ref[...]                                    # (R, C)
        o_ref[...] = y.reshape(tb, n, c).astype(o_ref.dtype)     # lane-dense store

    return kernel


def _choose_block_b(B, N, max_rows=512):
    """Largest divisor of B with TB*N <= max_rows, preferring grid length >= 2 (v7x)."""
    cands = [tb for tb in range(1, B + 1) if B % tb == 0 and tb * N <= max_rows]
    if not cands:
        cands = [1]
    pref = [tb for tb in cands if B // tb >= 2] or cands
    return max(pref)


def spatial_attention(x, gamma, beta, wq, wk, wv, wo, bo, *, block_b=None):
    """x: (B, N, C). Weights already in x@W orientation. Returns (B, N, C) float32."""
    B, N, C = x.shape
    tb = block_b if block_b is not None else _choose_block_b(B, N)
    assert B % tb == 0

    # Host-side (free) weight prep: fold softmax scale into Wq, cast MXU weights to bf16.
    wq_p = (wq * SCALE).astype(jnp.bfloat16)
    wk_p = wk.astype(jnp.bfloat16)
    wv_p = wv.astype(jnp.bfloat16)
    wo_p = wo.astype(jnp.bfloat16)

    kernel = _make_kernel(tb, N, C)
    const2 = lambda b: (0, 0)   # weights: DMA'd once, VMEM-resident across grid steps

    return pl.pallas_call(
        kernel,
        out_shape=jax.ShapeDtypeStruct((B, N, C), jnp.float32),
        grid=(B // tb,),
        in_specs=[
            pl.BlockSpec((tb, N, C), lambda b: (b, 0, 0)),   # x (TB batches per step)
            pl.BlockSpec((1, C), const2),                    # gamma
            pl.BlockSpec((1, C), const2),                    # beta
            pl.BlockSpec((C, HIDDEN), const2),               # Wq (pre-scaled, bf16)
            pl.BlockSpec((C, HIDDEN), const2),               # Wk (bf16)
            pl.BlockSpec((C, HIDDEN), const2),               # Wv (bf16)
            pl.BlockSpec((HIDDEN, C), const2),               # Wo (bf16)
            pl.BlockSpec((1, C), const2),                    # bo
        ],
        out_specs=pl.BlockSpec((tb, N, C), lambda b: (b, 0, 0)),
        compiler_params=pltpu.CompilerParams(
            dimension_semantics=("parallel",)),              # megacore sharding on v7x
    )(x, gamma, beta, wq_p, wk_p, wv_p, wo_p, bo)


def _reference(x, gamma, beta, wq, wk, wv, wo, bo):
    """Pure-JAX f32 reference mirroring the PyTorch forward (cond=None path)."""
    B, N, _ = x.shape
    mean = x.mean(-1, keepdims=True)
    var = ((x - mean) ** 2).mean(-1, keepdims=True)
    xn = (x - mean) / jnp.sqrt(var + LN_EPS) * gamma + beta
    q, k, v = xn @ wq, xn @ wk, xn @ wv                          # (B, N, HIDDEN)
    split = lambda t: t.reshape(B, N, HEADS, DIM_HEAD).transpose(0, 2, 1, 3)
    qh, kh, vh = split(q), split(k), split(v)                    # (B, h, N, d)
    sim = jnp.einsum('bhid,bhjd->bhij', qh, kh) * SCALE
    attn = jax.nn.softmax(sim, axis=-1)
    o = jnp.einsum('bhij,bhjd->bhid', attn, vh)                  # (B, h, N, d)
    o = o.transpose(0, 2, 1, 3).reshape(B, N, HIDDEN)
    return o @ wo + bo


if __name__ == "__main__":
    key = jax.random.PRNGKey(0)
    B, N, DIM = 8, 16, 128                     # batch, tokens, channels (dim)
    ks = jax.random.split(key, 8)

    x = jax.random.normal(ks[0], (B, N, DIM), dtype=jnp.float32)
    gamma = 1.0 + 0.1 * jax.random.normal(ks[1], (1, DIM), dtype=jnp.float32)
    beta = 0.1 * jax.random.normal(ks[2], (1, DIM), dtype=jnp.float32)
    wq = 0.05 * jax.random.normal(ks[3], (DIM, HIDDEN), dtype=jnp.float32)
    wk = 0.05 * jax.random.normal(ks[4], (DIM, HIDDEN), dtype=jnp.float32)
    wv = 0.05 * jax.random.normal(ks[5], (DIM, HIDDEN), dtype=jnp.float32)
    wo = 0.05 * jax.random.normal(ks[6], (HIDDEN, DIM), dtype=jnp.float32)
    bo = 0.05 * jax.random.normal(ks[7], (1, DIM), dtype=jnp.float32)

    out = spatial_attention(x, gamma, beta, wq, wk, wv, wo, bo)
    out = jax.block_until_ready(out)

    ref = _reference(x, gamma, beta, wq, wk, wv, wo, bo)
    assert out.shape == (B, N, DIM), out.shape
    # bf16 MXU operands (f32 accumulate) + approx reciprocal -> loosened tolerance.
    assert jnp.allclose(out, ref, atol=5e-2, rtol=5e-2), (
        "mismatch vs reference; max abs err = %r" % float(jnp.max(jnp.abs(out - ref))))

    print("KERNEL_OK")
</pallas_src>

<mosaic_0001>
module attributes {stable_mosaic.version = 11 : i64} {
  func.func @kernel(%arg0: i32, %arg1: memref<4x16x128xf32, #tpu.memory_space<vmem>>, %arg2: memref<1x128xf32, #tpu.memory_space<vmem>>, %arg3: memref<1x128xf32, #tpu.memory_space<vmem>>, %arg4: memref<128x256xbf16, #tpu.memory_space<vmem>>, %arg5: memref<128x256xbf16, #tpu.memory_space<vmem>>, %arg6: memref<128x256xbf16, #tpu.memory_space<vmem>>, %arg7: memref<256x128xbf16, #tpu.memory_space<vmem>>, %arg8: memref<1x128xf32, #tpu.memory_space<vmem>>, %arg9: memref<4x16x128xf32, #tpu.memory_space<vmem>>) attributes {dimension_semantics = [#tpu.dimension_semantics<parallel>], iteration_bounds = array<i64: 2>, scalar_prefetch = 0 : i64, scratch_operands = 0 : i64, tpu.core_type = #tpu.core_type<tc>, window_params = [{transform_indices = @transform_0, window_bounds = array<i64: 4, 16, 128>}, {pipeline_mode = #tpu.pipeline_mode<synchronous>, transform_indices = @transform_1, window_bounds = array<i64: 1, 128>}, {pipeline_mode = #tpu.pipeline_mode<synchronous>, transform_indices = @transform_2, window_bounds = array<i64: 1, 128>}, {pipeline_mode = #tpu.pipeline_mode<synchronous>, transform_indices = @transform_3, window_bounds = array<i64: 128, 256>}, {pipeline_mode = #tpu.pipeline_mode<synchronous>, transform_indices = @transform_4, window_bounds = array<i64: 128, 256>}, {pipeline_mode = #tpu.pipeline_mode<synchronous>, transform_indices = @transform_5, window_bounds = array<i64: 128, 256>}, {pipeline_mode = #tpu.pipeline_mode<synchronous>, transform_indices = @transform_6, window_bounds = array<i64: 256, 128>}, {pipeline_mode = #tpu.pipeline_mode<synchronous>, transform_indices = @transform_7, window_bounds = array<i64: 1, 128>}, {transform_indices = @transform_8, window_bounds = array<i64: 4, 16, 128>}]} {
    %c0 = arith.constant 0 : index
    %c0_0 = arith.constant 0 : index
    %c0_1 = arith.constant 0 : index
    %0 = vector.load %arg1[%c0, %c0_0, %c0_1] : memref<4x16x128xf32, #tpu.memory_space<vmem>>, vector<4x16x128xf32>
    %1 = vector.shape_cast %0 : vector<4x16x128xf32> to vector<64x128xf32>
    %cst = arith.constant dense<0.000000e+00> : vector<64xf32>
    %2 = vector.multi_reduction <add>, %1, %cst [1] : vector<64x128xf32> to vector<64xf32>
    %3 = vector.shape_cast %2 : vector<64xf32> to vector<64x1xf32>
    %cst_2 = arith.constant 1.280000e+02 : f32
    %4 = vector.broadcast %cst_2 : f32 to vector<64x1xf32>
    %5 = arith.divf %3, %4 : vector<64x1xf32>
    %6 = vector.broadcast %5 : vector<64x1xf32> to vector<64x128xf32>
    %7 = arith.subf %1, %6 : vector<64x128xf32>
    %8 = arith.mulf %7, %7 : vector<64x128xf32>
    %cst_3 = arith.constant dense<0.000000e+00> : vector<64xf32>
    %9 = vector.multi_reduction <add>, %8, %cst_3 [1] : vector<64x128xf32> to vector<64xf32>
    %10 = vector.shape_cast %9 : vector<64xf32> to vector<64x1xf32>
    %cst_4 = arith.constant 1.280000e+02 : f32
    %11 = vector.broadcast %cst_4 : f32 to vector<64x1xf32>
    %12 = arith.divf %10, %11 : vector<64x1xf32>
    %cst_5 = arith.constant 9.99999974E-6 : f32
    %13 = vector.broadcast %cst_5 : f32 to vector<64x1xf32>
    %14 = arith.addf %12, %13 : vector<64x1xf32>
    %15 = math.rsqrt %14 : vector<64x1xf32>
    %16 = vector.broadcast %15 : vector<64x1xf32> to vector<64x128xf32>
    %17 = arith.mulf %7, %16 : vector<64x128xf32>
    %c0_6 = arith.constant 0 : index
    %c0_7 = arith.constant 0 : index
    %18 = vector.load %arg2[%c0_6, %c0_7] : memref<1x128xf32, #tpu.memory_space<vmem>>, vector<1x128xf32>
    %19 = vector.broadcast %18 : vector<1x128xf32> to vector<64x128xf32>
    %20 = arith.mulf %17, %19 : vector<64x128xf32>
    %c0_8 = arith.constant 0 : index
    %c0_9 = arith.constant 0 : index
    %21 = vector.load %arg3[%c0_8, %c0_9] : memref<1x128xf32, #tpu.memory_space<vmem>>, vector<1x128xf32>
    %22 = vector.broadcast %21 : vector<1x128xf32> to vector<64x128xf32>
    %23 = arith.addf %20, %22 : vector<64x128xf32>
    %24 = arith.truncf %23 : vector<64x128xf32> to vector<64x128xbf16>
    %c0_10 = arith.constant 0 : index
    %c0_11 = arith.constant 0 : index
    %25 = vector.load %arg4[%c0_10, %c0_11] : memref<128x256xbf16, #tpu.memory_space<vmem>>, vector<128x256xbf16>
    %cst_12 = arith.constant dense<0.000000e+00> : vector<64x256xf32>
    %26 = tpu.matmul %24, %25, %cst_12 {dimension_numbers = #tpu.dot_dimension_numbers<[1], [0], [0], [1], [0, 0, 1, 1], [], []>} : vector<64x128xbf16>, vector<128x256xbf16>, vector<64x256xf32> -> vector<64x256xf32>
    %c0_13 = arith.constant 0 : index
    %c0_14 = arith.constant 0 : index
    %27 = vector.load %arg5[%c0_13, %c0_14] : memref<128x256xbf16, #tpu.memory_space<vmem>>, vector<128x256xbf16>
    %cst_15 = arith.constant dense<0.000000e+00> : vector<64x256xf32>
    %28 = tpu.matmul %24, %27, %cst_15 {dimension_numbers = #tpu.dot_dimension_numbers<[1], [0], [0], [1], [0, 0, 1, 1], [], []>} : vector<64x128xbf16>, vector<128x256xbf16>, vector<64x256xf32> -> vector<64x256xf32>
    %c0_16 = arith.constant 0 : index
    %c0_17 = arith.constant 0 : index
    %29 = vector.load %arg6[%c0_16, %c0_17] : memref<128x256xbf16, #tpu.memory_space<vmem>>, vector<128x256xbf16>
    %cst_18 = arith.constant dense<0.000000e+00> : vector<64x256xf32>
    %30 = tpu.matmul %24, %29, %cst_18 {dimension_numbers = #tpu.dot_dimension_numbers<[1], [0], [0], [1], [0, 0, 1, 1], [], []>} : vector<64x128xbf16>, vector<128x256xbf16>, vector<64x256xf32> -> vector<64x256xf32>
    %31 = vector.shape_cast %26 : vector<64x256xf32> to vector<4x16x256xf32>
    %32 = arith.truncf %31 : vector<4x16x256xf32> to vector<4x16x256xbf16>
    %33 = vector.shape_cast %28 : vector<64x256xf32> to vector<4x16x256xf32>
    %34 = arith.truncf %33 : vector<4x16x256xf32> to vector<4x16x256xbf16>
    %35 = vector.shape_cast %30 : vector<64x256xf32> to vector<4x16x256xf32>
    %36 = arith.truncf %35 : vector<4x16x256xf32> to vector<4x16x256xbf16>
    %cst_19 = arith.constant 0.000000e+00 : f32
    %37 = vector.broadcast %cst_19 : f32 to vector<64x128xf32>
    %38 = vector.extract_strided_slice %32 {offsets = [0, 0, 0], sizes = [4, 16, 32], strides = [1, 1, 1]} : vector<4x16x256xbf16> to vector<4x16x32xbf16>
    %39 = vector.extract_strided_slice %34 {offsets = [0, 0, 0], sizes = [4, 16, 32], strides = [1, 1, 1]} : vector<4x16x256xbf16> to vector<4x16x32xbf16>
    %40 = vector.extract_strided_slice %36 {offsets = [0, 0, 0], sizes = [4, 16, 32], strides = [1, 1, 1]} : vector<4x16x256xbf16> to vector<4x16x32xbf16>
    "tpu.trace_start"() <{level = 10 : i32, message = "bqd,bkd->bqk"}> : () -> ()
    %cst_20 = arith.constant dense<0.000000e+00> : vector<4x16x16xf32>
    %41 = tpu.matmul %38, %39, %cst_20 {dimension_numbers = #tpu.dot_dimension_numbers<[2], [2], [1], [1], [0, 0, 0, 1, 1, 1], [0], [0]>} : vector<4x16x32xbf16>, vector<4x16x32xbf16>, vector<4x16x16xf32> -> vector<4x16x16xf32>
    "tpu.trace_stop"() : () -> ()
    %cst_21 = arith.constant dense<0xFF800000> : vector<4x16xf32>
    %42 = vector.multi_reduction <maximumf>, %41, %cst_21 [2] : vector<4x16x16xf32> to vector<4x16xf32>
    %43 = vector.shape_cast %42 : vector<4x16xf32> to vector<4x16x1xf32>
    %44 = vector.broadcast %43 : vector<4x16x1xf32> to vector<4x16x16xf32>
    %45 = arith.subf %41, %44 : vector<4x16x16xf32>
    %46 = math.exp %45 : vector<4x16x16xf32>
    %cst_22 = arith.constant dense<0.000000e+00> : vector<4x16xf32>
    %47 = vector.multi_reduction <add>, %46, %cst_22 [2] : vector<4x16x16xf32> to vector<4x16xf32>
    %48 = vector.shape_cast %47 : vector<4x16xf32> to vector<4x16x1xf32>
    %49 = tpu.reciprocal %48 {approx = true} : vector<4x16x1xf32> -> vector<4x16x1xf32>
    %50 = vector.broadcast %49 : vector<4x16x1xf32> to vector<4x16x16xf32>
    %51 = arith.mulf %46, %50 : vector<4x16x16xf32>
    %52 = arith.truncf %51 : vector<4x16x16xf32> to vector<4x16x16xbf16>
    "tpu.trace_start"() <{level = 10 : i32, message = "bqk,bkd->bqd"}> : () -> ()
    %cst_23 = arith.constant dense<0.000000e+00> : vector<4x16x32xf32>
    %53 = tpu.matmul %52, %40, %cst_23 {dimension_numbers = #tpu.dot_dimension_numbers<[2], [1], [1], [2], [0, 0, 0, 1, 1, 2], [0], [0]>} : vector<4x16x16xbf16>, vector<4x16x32xbf16>, vector<4x16x32xf32> -> vector<4x16x32xf32>
    "tpu.trace_stop"() : () -> ()
    %54 = vector.shape_cast %53 : vector<4x16x32xf32> to vector<64x32xf32>
    %55 = arith.truncf %54 : vector<64x32xf32> to vector<64x32xbf16>
    %c0_24 = arith.constant 0 : index
    %c0_25 = arith.constant 0 : index
    %56 = vector.load %arg7[%c0_24, %c0_25] : memref<256x128xbf16, #tpu.memory_space<vmem>>, vector<32x128xbf16>
    %cst_26 = arith.constant dense<0.000000e+00> : vector<64x128xf32>
    %57 = tpu.matmul %55, %56, %cst_26 {dimension_numbers = #tpu.dot_dimension_numbers<[1], [0], [0], [1], [0, 0, 1, 1], [], []>} : vector<64x32xbf16>, vector<32x128xbf16>, vector<64x128xf32> -> vector<64x128xf32>
    %58 = arith.addf %37, %57 : vector<64x128xf32>
    %59 = vector.extract_strided_slice %32 {offsets = [0, 0, 32], sizes = [4, 16, 32], strides = [1, 1, 1]} : vector<4x16x256xbf16> to vector<4x16x32xbf16>
    %60 = vector.extract_strided_slice %34 {offsets = [0, 0, 32], sizes = [4, 16, 32], strides = [1, 1, 1]} : vector<4x16x256xbf16> to vector<4x16x32xbf16>
    %61 = vector.extract_strided_slice %36 {offsets = [0, 0, 32], sizes = [4, 16, 32], strides = [1, 1, 1]} : vector<4x16x256xbf16> to vector<4x16x32xbf16>
    "tpu.trace_start"() <{level = 10 : i32, message = "bqd,bkd->bqk"}> : () -> ()
    %cst_27 = arith.constant dense<0.000000e+00> : vector<4x16x16xf32>
    %62 = tpu.matmul %59, %60, %cst_27 {dimension_numbers = #tpu.dot_dimension_numbers<[2], [2], [1], [1], [0, 0, 0, 1, 1, 1], [0], [0]>} : vector<4x16x32xbf16>, vector<4x16x32xbf16>, vector<4x16x16xf32> -> vector<4x16x16xf32>
    "tpu.trace_stop"() : () -> ()
    %cst_28 = arith.constant dense<0xFF800000> : vector<4x16xf32>
    %63 = vector.multi_reduction <maximumf>, %62, %cst_28 [2] : vector<4x16x16xf32> to vector<4x16xf32>
    %64 = vector.shape_cast %63 : vector<4x16xf32> to vector<4x16x1xf32>
    %65 = vector.broadcast %64 : vector<4x16x1xf32> to vector<4x16x16xf32>
    %66 = arith.subf %62, %65 : vector<4x16x16xf32>
    %67 = math.exp %66 : vector<4x16x16xf32>
    %cst_29 = arith.constant dense<0.000000e+00> : vector<4x16xf32>
    %68 = vector.multi_reduction <add>, %67, %cst_29 [2] : vector<4x16x16xf32> to vector<4x16xf32>
    %69 = vector.shape_cast %68 : vector<4x16xf32> to vector<4x16x1xf32>
    %70 = tpu.reciprocal %69 {approx = true} : vector<4x16x1xf32> -> vector<4x16x1xf32>
    %71 = vector.broadcast %70 : vector<4x16x1xf32> to vector<4x16x16xf32>
    %72 = arith.mulf %67, %71 : vector<4x16x16xf32>
    %73 = arith.truncf %72 : vector<4x16x16xf32> to vector<4x16x16xbf16>
    "tpu.trace_start"() <{level = 10 : i32, message = "bqk,bkd->bqd"}> : () -> ()
    %cst_30 = arith.constant dense<0.000000e+00> : vector<4x16x32xf32>
    %74 = tpu.matmul %73, %61, %cst_30 {dimension_numbers = #tpu.dot_dimension_numbers<[2], [1], [1], [2], [0, 0, 0, 1, 1, 2], [0], [0]>} : vector<4x16x16xbf16>, vector<4x16x32xbf16>, vector<4x16x32xf32> -> vector<4x16x32xf32>
    "tpu.trace_stop"() : () -> ()
    %75 = vector.shape_cast %74 : vector<4x16x32xf32> to vector<64x32xf32>
    %76 = arith.truncf %75 : vector<64x32xf32> to vector<64x32xbf16>
    %c32 = arith.constant 32 : index
    %c0_31 = arith.constant 0 : index
    %77 = vector.load %arg7[%c32, %c0_31] : memref<256x128xbf16, #tpu.memory_space<vmem>>, vector<32x128xbf16>
    %cst_32 = arith.constant dense<0.000000e+00> : vector<64x128xf32>
    %78 = tpu.matmul %76, %77, %cst_32 {dimension_numbers = #tpu.dot_dimension_numbers<[1], [0], [0], [1], [0, 0, 1, 1], [], []>} : vector<64x32xbf16>, vector<32x128xbf16>, vector<64x128xf32> -> vector<64x128xf32>
    %79 = arith.addf %58, %78 : vector<64x128xf32>
    %80 = vector.extract_strided_slice %32 {offsets = [0, 0, 64], sizes = [4, 16, 32], strides = [1, 1, 1]} : vector<4x16x256xbf16> to vector<4x16x32xbf16>
    %81 = vector.extract_strided_slice %34 {offsets = [0, 0, 64], sizes = [4, 16, 32], strides = [1, 1, 1]} : vector<4x16x256xbf16> to vector<4x16x32xbf16>
    %82 = vector.extract_strided_slice %36 {offsets = [0, 0, 64], sizes = [4, 16, 32], strides = [1, 1, 1]} : vector<4x16x256xbf16> to vector<4x16x32xbf16>
    "tpu.trace_start"() <{level = 10 : i32, message = "bqd,bkd->bqk"}> : () -> ()
    %cst_33 = arith.constant dense<0.000000e+00> : vector<4x16x16xf32>
    %83 = tpu.matmul %80, %81, %cst_33 {dimension_numbers = #tpu.dot_dimension_numbers<[2], [2], [1], [1], [0, 0, 0, 1, 1, 1], [0], [0]>} : vector<4x16x32xbf16>, vector<4x16x32xbf16>, vector<4x16x16xf32> -> vector<4x16x16xf32>
    "tpu.trace_stop"() : () -> ()
    %cst_34 = arith.constant dense<0xFF800000> : vector<4x16xf32>
    %84 = vector.multi_reduction <maximumf>, %83, %cst_34 [2] : vector<4x16x16xf32> to vector<4x16xf32>
    %85 = vector.shape_cast %84 : vector<4x16xf32> to vector<4x16x1xf32>
    %86 = vector.broadcast %85 : vector<4x16x1xf32> to vector<4x16x16xf32>
    %87 = arith.subf %83, %86 : vector<4x16x16xf32>
    %88 = math.exp %87 : vector<4x16x16xf32>
    %cst_35 = arith.constant dense<0.000000e+00> : vector<4x16xf32>
    %89 = vector.multi_reduction <add>, %88, %cst_35 [2] : vector<4x16x16xf32> to vector<4x16xf32>
    %90 = vector.shape_cast %89 : vector<4x16xf32> to vector<4x16x1xf32>
    %91 = tpu.reciprocal %90 {approx = true} : vector<4x16x1xf32> -> vector<4x16x1xf32>
    %92 = vector.broadcast %91 : vector<4x16x1xf32> to vector<4x16x16xf32>
    %93 = arith.mulf %88, %92 : vector<4x16x16xf32>
    %94 = arith.truncf %93 : vector<4x16x16xf32> to vector<4x16x16xbf16>
    "tpu.trace_start"() <{level = 10 : i32, message = "bqk,bkd->bqd"}> : () -> ()
    %cst_36 = arith.constant dense<0.000000e+00> : vector<4x16x32xf32>
    %95 = tpu.matmul %94, %82, %cst_36 {dimension_numbers = #tpu.dot_dimension_numbers<[2], [1], [1], [2], [0, 0, 0, 1, 1, 2], [0], [0]>} : vector<4x16x16xbf16>, vector<4x16x32xbf16>, vector<4x16x32xf32> -> vector<4x16x32xf32>
    "tpu.trace_stop"() : () -> ()
    %96 = vector.shape_cast %95 : vector<4x16x32xf32> to vector<64x32xf32>
    %97 = arith.truncf %96 : vector<64x32xf32> to vector<64x32xbf16>
    %c64 = arith.constant 64 : index
    %c0_37 = arith.constant 0 : index
    %98 = vector.load %arg7[%c64, %c0_37] : memref<256x128xbf16, #tpu.memory_space<vmem>>, vector<32x128xbf16>
    %cst_38 = arith.constant dense<0.000000e+00> : vector<64x128xf32>
    %99 = tpu.matmul %97, %98, %cst_38 {dimension_numbers = #tpu.dot_dimension_numbers<[1], [0], [0], [1], [0, 0, 1, 1], [], []>} : vector<64x32xbf16>, vector<32x128xbf16>, vector<64x128xf32> -> vector<64x128xf32>
    %100 = arith.addf %79, %99 : vector<64x128xf32>
    %101 = vector.extract_strided_slice %32 {offsets = [0, 0, 96], sizes = [4, 16, 32], strides = [1, 1, 1]} : vector<4x16x256xbf16> to vector<4x16x32xbf16>
    %102 = vector.extract_strided_slice %34 {offsets = [0, 0, 96], sizes = [4, 16, 32], strides = [1, 1, 1]} : vector<4x16x256xbf16> to vector<4x16x32xbf16>
    %103 = vector.extract_strided_slice %36 {offsets = [0, 0, 96], sizes = [4, 16, 32], strides = [1, 1, 1]} : vector<4x16x256xbf16> to vector<4x16x32xbf16>
    "tpu.trace_start"() <{level = 10 : i32, message = "bqd,bkd->bqk"}> : () -> ()
    %cst_39 = arith.constant dense<0.000000e+00> : vector<4x16x16xf32>
    %104 = tpu.matmul %101, %102, %cst_39 {dimension_numbers = #tpu.dot_dimension_numbers<[2], [2], [1], [1], [0, 0, 0, 1, 1, 1], [0], [0]>} : vector<4x16x32xbf16>, vector<4x16x32xbf16>, vector<4x16x16xf32> -> vector<4x16x16xf32>
    "tpu.trace_stop"() : () -> ()
    %cst_40 = arith.constant dense<0xFF800000> : vector<4x16xf32>
    %105 = vector.multi_reduction <maximumf>, %104, %cst_40 [2] : vector<4x16x16xf32> to vector<4x16xf32>
    %106 = vector.shape_cast %105 : vector<4x16xf32> to vector<4x16x1xf32>
    %107 = vector.broadcast %106 : vector<4x16x1xf32> to vector<4x16x16xf32>
    %108 = arith.subf %104, %107 : vector<4x16x16xf32>
    %109 = math.exp %108 : vector<4x16x16xf32>
    %cst_41 = arith.constant dense<0.000000e+00> : vector<4x16xf32>
    %110 = vector.multi_reduction <add>, %109, %cst_41 [2] : vector<4x16x16xf32> to vector<4x16xf32>
    %111 = vector.shape_cast %110 : vector<4x16xf32> to vector<4x16x1xf32>
    %112 = tpu.reciprocal %111 {approx = true} : vector<4x16x1xf32> -> vector<4x16x1xf32>
    %113 = vector.broadcast %112 : vector<4x16x1xf32> to vector<4x16x16xf32>
    %114 = arith.mulf %109, %113 : vector<4x16x16xf32>
    %115 = arith.truncf %114 : vector<4x16x16xf32> to vector<4x16x16xbf16>
    "tpu.trace_start"() <{level = 10 : i32, message = "bqk,bkd->bqd"}> : () -> ()
    %cst_42 = arith.constant dense<0.000000e+00> : vector<4x16x32xf32>
    %116 = tpu.matmul %115, %103, %cst_42 {dimension_numbers = #tpu.dot_dimension_numbers<[2], [1], [1], [2], [0, 0, 0, 1, 1, 2], [0], [0]>} : vector<4x16x16xbf16>, vector<4x16x32xbf16>, vector<4x16x32xf32> -> vector<4x16x32xf32>
    "tpu.trace_stop"() : () -> ()
    %117 = vector.shape_cast %116 : vector<4x16x32xf32> to vector<64x32xf32>
    %118 = arith.truncf %117 : vector<64x32xf32> to vector<64x32xbf16>
    %c96 = arith.constant 96 : index
    %c0_43 = arith.constant 0 : index
    %119 = vector.load %arg7[%c96, %c0_43] : memref<256x128xbf16, #tpu.memory_space<vmem>>, vector<32x128xbf16>
    %cst_44 = arith.constant dense<0.000000e+00> : vector<64x128xf32>
    %120 = tpu.matmul %118, %119, %cst_44 {dimension_numbers = #tpu.dot_dimension_numbers<[1], [0], [0], [1], [0, 0, 1, 1], [], []>} : vector<64x32xbf16>, vector<32x128xbf16>, vector<64x128xf32> -> vector<64x128xf32>
    %121 = arith.addf %100, %120 : vector<64x128xf32>
    %122 = vector.extract_strided_slice %32 {offsets = [0, 0, 128], sizes = [4, 16, 32], strides = [1, 1, 1]} : vector<4x16x256xbf16> to vector<4x16x32xbf16>
    %123 = vector.extract_strided_slice %34 {offsets = [0, 0, 128], sizes = [4, 16, 32], strides = [1, 1, 1]} : vector<4x16x256xbf16> to vector<4x16x32xbf16>
    %124 = vector.extract_strided_slice %36 {offsets = [0, 0, 128], sizes = [4, 16, 32], strides = [1, 1, 1]} : vector<4x16x256xbf16> to vector<4x16x32xbf16>
    "tpu.trace_start"() <{level = 10 : i32, message = "bqd,bkd->bqk"}> : () -> ()
    %cst_45 = arith.constant dense<0.000000e+00> : vector<4x16x16xf32>
    %125 = tpu.matmul %122, %123, %cst_45 {dimension_numbers = #tpu.dot_dimension_numbers<[2], [2], [1], [1], [0, 0, 0, 1, 1, 1], [0], [0]>} : vector<4x16x32xbf16>, vector<4x16x32xbf16>, vector<4x16x16xf32> -> vector<4x16x16xf32>
    "tpu.trace_stop"() : () -> ()
    %cst_46 = arith.constant dense<0xFF800000> : vector<4x16xf32>
    %126 = vector.multi_reduction <maximumf>, %125, %cst_46 [2] : vector<4x16x16xf32> to vector<4x16xf32>
    %127 = vector.shape_cast %126 : vector<4x16xf32> to vector<4x16x1xf32>
    %128 = vector.broadcast %127 : vector<4x16x1xf32> to vector<4x16x16xf32>
    %129 = arith.subf %125, %128 : vector<4x16x16xf32>
    %130 = math.exp %129 : vector<4x16x16xf32>
    %cst_47 = arith.constant dense<0.000000e+00> : vector<4x16xf32>
    %131 = vector.multi_reduction <add>, %130, %cst_47 [2] : vector<4x16x16xf32> to vector<4x16xf32>
    %132 = vector.shape_cast %131 : vector<4x16xf32> to vector<4x16x1xf32>
    %133 = tpu.reciprocal %132 {approx = true} : vector<4x16x1xf32> -> vector<4x16x1xf32>
    %134 = vector.broadcast %133 : vector<4x16x1xf32> to vector<4x16x16xf32>
    %135 = arith.mulf %130, %134 : vector<4x16x16xf32>
    %136 = arith.truncf %135 : vector<4x16x16xf32> to vector<4x16x16xbf16>
    "tpu.trace_start"() <{level = 10 : i32, message = "bqk,bkd->bqd"}> : () -> ()
    %cst_48 = arith.constant dense<0.000000e+00> : vector<4x16x32xf32>
    %137 = tpu.matmul %136, %124, %cst_48 {dimension_numbers = #tpu.dot_dimension_numbers<[2], [1], [1], [2], [0, 0, 0, 1, 1, 2], [0], [0]>} : vector<4x16x16xbf16>, vector<4x16x32xbf16>, vector<4x16x32xf32> -> vector<4x16x32xf32>
    "tpu.trace_stop"() : () -> ()
    %138 = vector.shape_cast %137 : vector<4x16x32xf32> to vector<64x32xf32>
    %139 = arith.truncf %138 : vector<64x32xf32> to vector<64x32xbf16>
    %c128 = arith.constant 128 : index
    %c0_49 = arith.constant 0 : index
    %140 = vector.load %arg7[%c128, %c0_49] : memref<256x128xbf16, #tpu.memory_space<vmem>>, vector<32x128xbf16>
    %cst_50 = arith.constant dense<0.000000e+00> : vector<64x128xf32>
    %141 = tpu.matmul %139, %140, %cst_50 {dimension_numbers = #tpu.dot_dimension_numbers<[1], [0], [0], [1], [0, 0, 1, 1], [], []>} : vector<64x32xbf16>, vector<32x128xbf16>, vector<64x128xf32> -> vector<64x128xf32>
    %142 = arith.addf %121, %141 : vector<64x128xf32>
    %143 = vector.extract_strided_slice %32 {offsets = [0, 0, 160], sizes = [4, 16, 32], strides = [1, 1, 1]} : vector<4x16x256xbf16> to vector<4x16x32xbf16>
    %144 = vector.extract_strided_slice %34 {offsets = [0, 0, 160], sizes = [4, 16, 32], strides = [1, 1, 1]} : vector<4x16x256xbf16> to vector<4x16x32xbf16>
    %145 = vector.extract_strided_slice %36 {offsets = [0, 0, 160], sizes = [4, 16, 32], strides = [1, 1, 1]} : vector<4x16x256xbf16> to vector<4x16x32xbf16>
    "tpu.trace_start"() <{level = 10 : i32, message = "bqd,bkd->bqk"}> : () -> ()
    %cst_51 = arith.constant dense<0.000000e+00> : vector<4x16x16xf32>
    %146 = tpu.matmul %143, %144, %cst_51 {dimension_numbers = #tpu.dot_dimension_numbers<[2], [2], [1], [1], [0, 0, 0, 1, 1, 1], [0], [0]>} : vector<4x16x32xbf16>, vector<4x16x32xbf16>, vector<4x16x16xf32> -> vector<4x16x16xf32>
    "tpu.trace_stop"() : () -> ()
    %cst_52 = arith.constant dense<0xFF800000> : vector<4x16xf32>
    %147 = vector.multi_reduction <maximumf>, %146, %cst_52 [2] : vector<4x16x16xf32> to vector<4x16xf32>
    %148 = vector.shape_cast %147 : vector<4x16xf32> to vector<4x16x1xf32>
    %149 = vector.broadcast %148 : vector<4x16x1xf32> to vector<4x16x16xf32>
    %150 = arith.subf %146, %149 : vector<4x16x16xf32>
    %151 = math.exp %150 : vector<4x16x16xf32>
    %cst_53 = arith.constant dense<0.000000e+00> : vector<4x16xf32>
    %152 = vector.multi_reduction <add>, %151, %cst_53 [2] : vector<4x16x16xf32> to vector<4x16xf32>
    %153 = vector.shape_cast %152 : vector<4x16xf32> to vector<4x16x1xf32>
    %154 = tpu.reciprocal %153 {approx = true} : vector<4x16x1xf32> -> vector<4x16x1xf32>
    %155 = vector.broadcast %154 : vector<4x16x1xf32> to vector<4x16x16xf32>
    %156 = arith.mulf %151, %155 : vector<4x16x16xf32>
    %157 = arith.truncf %156 : vector<4x16x16xf32> to vector<4x16x16xbf16>
    "tpu.trace_start"() <{level = 10 : i32, message = "bqk,bkd->bqd"}> : () -> ()
    %cst_54 = arith.constant dense<0.000000e+00> : vector<4x16x32xf32>
    %158 = tpu.matmul %157, %145, %cst_54 {dimension_numbers = #tpu.dot_dimension_numbers<[2], [1], [1], [2], [0, 0, 0, 1, 1, 2], [0], [0]>} : vector<4x16x16xbf16>, vector<4x16x32xbf16>, vector<4x16x32xf32> -> vector<4x16x32xf32>
    "tpu.trace_stop"() : () -> ()
    %159 = vector.shape_cast %158 : vector<4x16x32xf32> to vector<64x32xf32>
    %160 = arith.truncf %159 : vector<64x32xf32> to vector<64x32xbf16>
    %c160 = arith.constant 160 : index
    %c0_55 = arith.constant 0 : index
    %161 = vector.load %arg7[%c160, %c0_55] : memref<256x128xbf16, #tpu.memory_space<vmem>>, vector<32x128xbf16>
    %cst_56 = arith.constant dense<0.000000e+00> : vector<64x128xf32>
    %162 = tpu.matmul %160, %161, %cst_56 {dimension_numbers = #tpu.dot_dimension_numbers<[1], [0], [0], [1], [0, 0, 1, 1], [], []>} : vector<64x32xbf16>, vector<32x128xbf16>, vector<64x128xf32> -> vector<64x128xf32>
    %163 = arith.addf %142, %162 : vector<64x128xf32>
    %164 = vector.extract_strided_slice %32 {offsets = [0, 0, 192], sizes = [4, 16, 32], strides = [1, 1, 1]} : vector<4x16x256xbf16> to vector<4x16x32xbf16>
    %165 = vector.extract_strided_slice %34 {offsets = [0, 0, 192], sizes = [4, 16, 32], strides = [1, 1, 1]} : vector<4x16x256xbf16> to vector<4x16x32xbf16>
    %166 = vector.extract_strided_slice %36 {offsets = [0, 0, 192], sizes = [4, 16, 32], strides = [1, 1, 1]} : vector<4x16x256xbf16> to vector<4x16x32xbf16>
    "tpu.trace_start"() <{level = 10 : i32, message = "bqd,bkd->bqk"}> : () -> ()
    %cst_57 = arith.constant dense<0.000000e+00> : vector<4x16x16xf32>
    %167 = tpu.matmul %164, %165, %cst_57 {dimension_numbers = #tpu.dot_dimension_numbers<[2], [2], [1], [1], [0, 0, 0, 1, 1, 1], [0], [0]>} : vector<4x16x32xbf16>, vector<4x16x32xbf16>, vector<4x16x16xf32> -> vector<4x16x16xf32>
    "tpu.trace_stop"() : () -> ()
    %cst_58 = arith.constant dense<0xFF800000> : vector<4x16xf32>
    %168 = vector.multi_reduction <maximumf>, %167, %cst_58 [2] : vector<4x16x16xf32> to vector<4x16xf32>
    %169 = vector.shape_cast %168 : vector<4x16xf32> to vector<4x16x1xf32>
    %170 = vector.broadcast %169 : vector<4x16x1xf32> to vector<4x16x16xf32>
    %171 = arith.subf %167, %170 : vector<4x16x16xf32>
    %172 = math.exp %171 : vector<4x16x16xf32>
    %cst_59 = arith.constant dense<0.000000e+00> : vector<4x16xf32>
    %173 = vector.multi_reduction <add>, %172, %cst_59 [2] : vector<4x16x16xf32> to vector<4x16xf32>
    %174 = vector.shape_cast %173 : vector<4x16xf32> to vector<4x16x1xf32>
    %175 = tpu.reciprocal %174 {approx = true} : vector<4x16x1xf32> -> vector<4x16x1xf32>
    %176 = vector.broadcast %175 : vector<4x16x1xf32> to vector<4x16x16xf32>
    %177 = arith.mulf %172, %176 : vector<4x16x16xf32>
    %178 = arith.truncf %177 : vector<4x16x16xf32> to vector<4x16x16xbf16>
    "tpu.trace_start"() <{level = 10 : i32, message = "bqk,bkd->bqd"}> : () -> ()
    %cst_60 = arith.constant dense<0.000000e+00> : vector<4x16x32xf32>
    %179 = tpu.matmul %178, %166, %cst_60 {dimension_numbers = #tpu.dot_dimension_numbers<[2], [1], [1], [2], [0, 0, 0, 1, 1, 2], [0], [0]>} : vector<4x16x16xbf16>, vector<4x16x32xbf16>, vector<4x16x32xf32> -> vector<4x16x32xf32>
    "tpu.trace_stop"() : () -> ()
    %180 = vector.shape_cast %179 : vector<4x16x32xf32> to vector<64x32xf32>
    %181 = arith.truncf %180 : vector<64x32xf32> to vector<64x32xbf16>
    %c192 = arith.constant 192 : index
    %c0_61 = arith.constant 0 : index
    %182 = vector.load %arg7[%c192, %c0_61] : memref<256x128xbf16, #tpu.memory_space<vmem>>, vector<32x128xbf16>
    %cst_62 = arith.constant dense<0.000000e+00> : vector<64x128xf32>
    %183 = tpu.matmul %181, %182, %cst_62 {dimension_numbers = #tpu.dot_dimension_numbers<[1], [0], [0], [1], [0, 0, 1, 1], [], []>} : vector<64x32xbf16>, vector<32x128xbf16>, vector<64x128xf32> -> vector<64x128xf32>
    %184 = arith.addf %163, %183 : vector<64x128xf32>
    %185 = vector.extract_strided_slice %32 {offsets = [0, 0, 224], sizes = [4, 16, 32], strides = [1, 1, 1]} : vector<4x16x256xbf16> to vector<4x16x32xbf16>
    %186 = vector.extract_strided_slice %34 {offsets = [0, 0, 224], sizes = [4, 16, 32], strides = [1, 1, 1]} : vector<4x16x256xbf16> to vector<4x16x32xbf16>
    %187 = vector.extract_strided_slice %36 {offsets = [0, 0, 224], sizes = [4, 16, 32], strides = [1, 1, 1]} : vector<4x16x256xbf16> to vector<4x16x32xbf16>
    "tpu.trace_start"() <{level = 10 : i32, message = "bqd,bkd->bqk"}> : () -> ()
    %cst_63 = arith.constant dense<0.000000e+00> : vector<4x16x16xf32>
    %188 = tpu.matmul %185, %186, %cst_63 {dimension_numbers = #tpu.dot_dimension_numbers<[2], [2], [1], [1], [0, 0, 0, 1, 1, 1], [0], [0]>} : vector<4x16x32xbf16>, vector<4x16x32xbf16>, vector<4x16x16xf32> -> vector<4x16x16xf32>
    "tpu.trace_stop"() : () -> ()
    %cst_64 = arith.constant dense<0xFF800000> : vector<4x16xf32>
    %189 = vector.multi_reduction <maximumf>, %188, %cst_64 [2] : vector<4x16x16xf32> to vector<4x16xf32>
    %190 = vector.shape_cast %189 : vector<4x16xf32> to vector<4x16x1xf32>
    %191 = vector.broadcast %190 : vector<4x16x1xf32> to vector<4x16x16xf32>
    %192 = arith.subf %188, %191 : vector<4x16x16xf32>
    %193 = math.exp %192 : vector<4x16x16xf32>
    %cst_65 = arith.constant dense<0.000000e+00> : vector<4x16xf32>
    %194 = vector.multi_reduction <add>, %193, %cst_65 [2] : vector<4x16x16xf32> to vector<4x16xf32>
    %195 = vector.shape_cast %194 : vector<4x16xf32> to vector<4x16x1xf32>
    %196 = tpu.reciprocal %195 {approx = true} : vector<4x16x1xf32> -> vector<4x16x1xf32>
    %197 = vector.broadcast %196 : vector<4x16x1xf32> to vector<4x16x16xf32>
    %198 = arith.mulf %193, %197 : vector<4x16x16xf32>
    %199 = arith.truncf %198 : vector<4x16x16xf32> to vector<4x16x16xbf16>
    "tpu.trace_start"() <{level = 10 : i32, message = "bqk,bkd->bqd"}> : () -> ()
    %cst_66 = arith.constant dense<0.000000e+00> : vector<4x16x32xf32>
    %200 = tpu.matmul %199, %187, %cst_66 {dimension_numbers = #tpu.dot_dimension_numbers<[2], [1], [1], [2], [0, 0, 0, 1, 1, 2], [0], [0]>} : vector<4x16x16xbf16>, vector<4x16x32xbf16>, vector<4x16x32xf32> -> vector<4x16x32xf32>
    "tpu.trace_stop"() : () -> ()
    %201 = vector.shape_cast %200 : vector<4x16x32xf32> to vector<64x32xf32>
    %202 = arith.truncf %201 : vector<64x32xf32> to vector<64x32xbf16>
    %c224 = arith.constant 224 : index
    %c0_67 = arith.constant 0 : index
    %203 = vector.load %arg7[%c224, %c0_67] : memref<256x128xbf16, #tpu.memory_space<vmem>>, vector<32x128xbf16>
    %cst_68 = arith.constant dense<0.000000e+00> : vector<64x128xf32>
    %204 = tpu.matmul %202, %203, %cst_68 {dimension_numbers = #tpu.dot_dimension_numbers<[1], [0], [0], [1], [0, 0, 1, 1], [], []>} : vector<64x32xbf16>, vector<32x128xbf16>, vector<64x128xf32> -> vector<64x128xf32>
    %205 = arith.addf %184, %204 : vector<64x128xf32>
    %c0_69 = arith.constant 0 : index
    %c0_70 = arith.constant 0 : index
    %206 = vector.load %arg8[%c0_69, %c0_70] : memref<1x128xf32, #tpu.memory_space<vmem>>, vector<1x128xf32>
    %207 = vector.broadcast %206 : vector<1x128xf32> to vector<64x128xf32>
    %208 = arith.addf %205, %207 : vector<64x128xf32>
    %209 = vector.shape_cast %208 : vector<64x128xf32> to vector<4x16x128xf32>
    %c0_71 = arith.constant 0 : index
    %c0_72 = arith.constant 0 : index
    %c0_73 = arith.constant 0 : index
    %210 = vector.load %arg9[%c0_71, %c0_72, %c0_73] : memref<4x16x128xf32, #tpu.memory_space<vmem>>, vector<4x16x128xf32>
    tpu.vector_store %arg9[%c0_71, %c0_72, %c0_73], %209 {strides = array<i32>} : memref<4x16x128xf32, #tpu.memory_space<vmem>>, vector<4x16x128xf32>,
    return
  }
  func.func @transform_0(%arg0: i32) -> (i32, i32, i32) {
    %c0_i32 = arith.constant 0 : i32
    %c0_i32_0 = arith.constant 0 : i32
    %c0_i32_1 = arith.constant 0 : i32
    return %arg0, %c0_i32, %c0_i32_0 : i32, i32, i32
  }
  func.func @transform_1(%arg0: i32) -> (i32, i32) {
    %c0_i32 = arith.constant 0 : i32
    %c0_i32_0 = arith.constant 0 : i32
    %c0_i32_1 = arith.constant 0 : i32
    return %c0_i32, %c0_i32_0 : i32, i32
  }
  func.func @transform_2(%arg0: i32) -> (i32, i32) {
    %c0_i32 = arith.constant 0 : i32
    %c0_i32_0 = arith.constant 0 : i32
    %c0_i32_1 = arith.constant 0 : i32
    return %c0_i32, %c0_i32_0 : i32, i32
  }
  func.func @transform_3(%arg0: i32) -> (i32, i32) {
    %c0_i32 = arith.constant 0 : i32
    %c0_i32_0 = arith.constant 0 : i32
    %c0_i32_1 = arith.constant 0 : i32
    return %c0_i32, %c0_i32_0 : i32, i32
  }
  func.func @transform_4(%arg0: i32) -> (i32, i32) {
    %c0_i32 = arith.constant 0 : i32
    %c0_i32_0 = arith.constant 0 : i32
    %c0_i32_1 = arith.constant 0 : i32
    return %c0_i32, %c0_i32_0 : i32, i32
  }
  func.func @transform_5(%arg0: i32) -> (i32, i32) {
    %c0_i32 = arith.constant 0 : i32
    %c0_i32_0 = arith.constant 0 : i32
    %c0_i32_1 = arith.constant 0 : i32
    return %c0_i32, %c0_i32_0 : i32, i32
  }
  func.func @transform_6(%arg0: i32) -> (i32, i32) {
    %c0_i32 = arith.constant 0 : i32
    %c0_i32_0 = arith.constant 0 : i32
    %c0_i32_1 = arith.constant 0 : i32
    return %c0_i32, %c0_i32_0 : i32, i32
  }
  func.func @transform_7(%arg0: i32) -> (i32, i32) {
    %c0_i32 = arith.constant 0 : i32
    %c0_i32_0 = arith.constant 0 : i32
    %c0_i32_1 = arith.constant 0 : i32
    return %c0_i32, %c0_i32_0 : i32, i32
  }
  func.func @transform_8(%arg0: i32) -> (i32, i32, i32) {
    %c0_i32 = arith.constant 0 : i32
    %c0_i32_0 = arith.constant 0 : i32
    %c0_i32_1 = arith.constant 0 : i32
    return %arg0, %c0_i32, %c0_i32_0 : i32, i32, i32
  }
}

</mosaic_0001>

<bundles_post_ra>
// kernel: tpu_custom_call.1
= control target key start
LH: loop header
LB: loop body
LE: loop exit
PB: predicated region body
PF: predicated region fallthrough
CT: control target
= control target key end

     0   :  { %13 = vsyncpa [#allocation3], 0  ;;  %s8764_s0 = inlined_call_operand.hbm [shape: f32[8,16,128], index: 0, kind: input, shape index: {}]   ;;  %s8765_s1 = inlined_call_operand.vmem [shape: f32[1,128], index: 1, kind: input, shape index: {}]   ;;  %s8766_s2 = inlined_call_operand.vmem [shape: f32[1,128], index: 2, kind: input, shape index: {}]   ;;  %s8767_s3 = inlined_call_operand.hbm [shape: bf16[128,256], index: 3, kind: input, shape index: {}]   ;;  %s8768_s4 = inlined_call_operand.hbm [shape: bf16[128,256], index: 4, kind: input, shape index: {}]   ;;  %s8769_s5 = inlined_call_operand.hbm [shape: bf16[128,256], index: 5, kind: input, shape index: {}]   ;;  %s8770_s6 = inlined_call_operand.hbm [shape: bf16[256,128], index: 6, kind: input, shape index: {}]   ;;  %s8771_s7 = inlined_call_operand.vmem [shape: f32[1,128], index: 7, kind: input, shape index: {}]   ;;  %s8772_s8 = inlined_call_operand.hbm [shape: f32[8,16,128], index: 8, kind: output, shape index: {}]  }
   0x1   :  { %15 = vsyncpa [#allocation3 + $0x1], 0 }
   0x2   :  { %16 = vsyncpa [#allocation6], 0 }
   0x3   :  { %17 = vsyncpa [#allocation9], 0 }
   0x4   :  { %18 = vsyncpa [#allocation4], 0 }
   0x5   :  { %20 = vsyncpa [#allocation4 + $0x1], 0  ;;  %s7522_s27 = smov 0   ;;  %s7524_s28 = smov 0  }
   0x6   :  { %s7526_s29 = smov 0   ;;  %s7528_s30 = smov 0  }
   0x7 LB: > { %8778 = sst [smem:[#allocation16_spill]] %s7445_s27  ;;  %s7543_s9 = sadd.s32 4294967295, %s7457_s30   ;;  %s7457_s30 = sphi %s7528_s30, %s8803_s30   ;;  %s7453_s29 = sphi %s7526_s29, %s8802_s29   ;;  %s7449_s28 = sphi %s7524_s28, %s8801_s28   ;;  %s7445_s27 = sphi %s7522_s27, %s8800_s27  }
   0x8   : > { %s5863_s10 = sadd.s32 4294967294, %s7457_s30   ;;  %p46_p0 = scmp.ne.s32.totalorder %s7449_s28, %s7445_s27 }
   0x9   : > { %p8773_p1 = scmp.eq.s32.totalorder %s7543_s9, 0  ;;  %p223_p3 = scmp.eq.s32.totalorder %s5863_s10, 1 }
   0xa   : > { %p5864_p5 = scmp.ge.s32.totalorder %s7457_s30, 1  ;;  %p230_p7 = scmp.lt.s32.totalorder %s7457_s30, 3 }
   0xb   : > { %p7552_p4 = por %p8773_p1, %p46_p0  ;;  %p7557_p6 = por %p223_p3, %p46_p0 }
   0xc   : > { %p7562_p8 = pnand %p5864_p5, %p230_p7  ;;  %s7459_s14 = smov [#allocation5]  }
   0xd   : > { %s8779_s11 = scalar_select %p7552_p4, 1, 0 }
   0xe   : > { %s8780_s12 = scalar_select %p7557_p6, 1, 0 }
   0xf   : > { %s8782_s13 = scalar_select %p7562_p8, 1, 0 }
  0x10   : > { %8781 = sst [smem:[#allocation17_spill]] %s8780_s12  ;;  %s248_s15 = sshll.u32 %s7459_s14, 4  ;;  %s7566_s15 = int_to_ptr.vmem [resolvable:$true] %s248_s15 }
  0x11   : > { %p6802_p9 = pneg %p7562_p8  ;;  %s7460_s17 = smov [#allocation8]  }
  0x12   : > { %s274_s18 = sshll.u32 %s7460_s17, 4  ;;  %s7461_s19 = smov [#allocation7]   ;;  %s7577_s18 = int_to_ptr.vmem [resolvable:$true] %s274_s18 }
  0x13   : > { %p7573_p11 = pnand %p6802_p9, %p8773_p1  ;;  %s7579_s20 = sshll.u32 %s7461_s19, 4  ;;  %s262_s20 = int_to_ptr.vmem [resolvable:$true] %s7579_s20 }
  0x14   : > { %s7241_s23 = scalar_lea.hbm %s8767_s3, 2048 }
  0x15   : > { %p7242_p12 = scmp.ne.s32.totalorder %s8767_s3, %s7241_s23  ;;  %p7589_p13 = pneg %p7573_p11 }
  0x16   : > { %p7248_p5 = scmp.lt.u32.totalorder %s7241_s23, %s8767_s3 }
  0x17   : > { %p7244_p0 = pnand %p7589_p13, %p7242_p12 }
  0x19   : > { %p7245_p3 = pneg %p7244_p0 }
  0x1b   : > { %p7250_p7 = pnand %p7248_p5, %p7245_p3 }
  0x1d   : > { %7253 = shalt.err (!%p7250_p7)
}
  0x1e   : > { %s7254_s17 = scalar_lea.vmem %s7566_s15, 2048  ;;  %p7262_p2 = scmp.lt.s32.totalorder %s7566_s15, %s7566_s15 }
  0x1f   : > { %p7255_p9 = scmp.ne.s32.totalorder %s7566_s15, %s7254_s17  ;;  %p7263_p6 = scmp.lt.s32.totalorder %s7254_s17, %s7254_s17 }
  0x21   : > { %p7257_p10 = pnand %p7255_p9, %p7589_p13  ;;  %p7264_p12 = por %p7263_p6, %p7262_p2 }
  0x23   : > { %p7258_p1 = pneg %p7257_p10 }
  0x25   : > { %p7265_p0 = pnand %p7264_p12, %p7258_p1 }
  0x27   : > { %7268 = shalt.err (!%p7265_p0)
}
  0x28   : > { %s7462_s19 = smov 128   ;;  %s7463_s21 = smov 8  }
  0x29   : > { %6805 = dma.hbm_to_vmem [thread:$0]  (!%p7573_p11), %s8767_s3, 2048, %s7566_s15, [#allocation6], %s7462_s19, %s7462_s19, %s7463_s21  }
  0x2a   : > { %s7269_s10 = scalar_lea.hbm %s8769_s5, 2048 }
  0x2b   : > { %p7270_p1 = scmp.ne.s32.totalorder %s8769_s5, %s7269_s10  ;;  %p7276_p10 = scmp.lt.u32.totalorder %s7269_s10, %s8769_s5 }
  0x2d   : > { %p7272_p2 = pnand %p7270_p1, %p7589_p13 }
  0x2f   : > { %p7273_p6 = pneg %p7272_p2 }
  0x31   : > { %p7278_p3 = pnand %p7276_p10, %p7273_p6 }
  0x33   : > { %7281 = shalt.err (!%p7278_p3)
}
  0x34   : > { %s7282_s15 = scalar_lea.vmem %s7577_s18, 2048  ;;  %p7290_p12 = scmp.lt.s32.totalorder %s7577_s18, %s7577_s18 }
  0x35   : > { %p7283_p5 = scmp.ne.s32.totalorder %s7577_s18, %s7282_s15  ;;  %p7291_p0 = scmp.lt.s32.totalorder %s7282_s15, %s7282_s15 }
  0x37   : > { %p7285_p7 = pnand %p7283_p5, %p7589_p13  ;;  %p7292_p1 = por %p7291_p0, %p7290_p12 }
  0x39   : > { %p7286_p9 = pneg %p7285_p7 }
  0x3b   : > { %p7293_p2 = pnand %p7292_p1, %p7286_p9 }
  0x3d   : > { %7296 = shalt.err (!%p7293_p2)
}
  0x3e   : > { %6811 = dma.hbm_to_vmem [thread:$0]  (!%p7573_p11), %s8769_s5, 2048, %s7577_s18, [#allocation9], %s7462_s19, %s7462_s19, %s7463_s21  }
  0x3f   : > { %s7297_s24 = scalar_lea.hbm %s8768_s4, 2048 }
  0x40   : > { %p7298_p6 = scmp.ne.s32.totalorder %s8768_s4, %s7297_s24  ;;  %p7304_p5 = scmp.lt.u32.totalorder %s7297_s24, %s8768_s4 }
  0x42   : > { %p7300_p10 = pnand %p7298_p6, %p7589_p13 }
  0x44   : > { %p7301_p3 = pneg %p7300_p10 }
  0x46   : > { %p7306_p7 = pnand %p7304_p5, %p7301_p3 }
  0x48   : > { %7309 = shalt.err (!%p7306_p7)
}
  0x49   : > { %s7310_s15 = scalar_lea.vmem %s262_s20, 2048  ;;  %p7318_p1 = scmp.lt.s32.totalorder %s262_s20, %s262_s20 }
  0x4a   : > { %p7311_p9 = scmp.ne.s32.totalorder %s262_s20, %s7310_s15  ;;  %p7319_p2 = scmp.lt.s32.totalorder %s7310_s15, %s7310_s15 }
  0x4c   : > { %p7313_p12 = pnand %p7311_p9, %p7589_p13  ;;  %p7320_p4 = por %p7319_p2, %p7318_p1 }
  0x4e   : > { %p7314_p0 = pneg %p7313_p12 }
  0x50   : > { %p7321_p8 = pnand %p7320_p4, %p7314_p0 }
  0x52   : > { %7324 = shalt.err (!%p7321_p8)
}
  0x53   : > { %6808 = dma.hbm_to_vmem [thread:$0]  (!%p7573_p11), %s8768_s4, 2048, %s262_s20, [#allocation6], %s7462_s19, %s7462_s19, %s7463_s21  }
  0x54   : > { %s7464_s12 = smov [#allocation10]   ;;  %s7325_s25 = scalar_lea.hbm %s8770_s6, 2048 }
  0x55   : > { %s287_s22 = sshll.u32 %s7464_s12, 4  ;;  %p7326_p4 = scmp.ne.s32.totalorder %s8770_s6, %s7325_s25  ;;  %s288_s22 = int_to_ptr.vmem [resolvable:$true] %s287_s22 }
  0x56   : > { %p7332_p10 = scmp.lt.u32.totalorder %s7325_s25, %s8770_s6 }
  0x57   : > { %p7328_p8 = pnand %p7326_p4, %p7589_p13 }
  0x59   : > { %p7329_p6 = pneg %p7328_p8 }
  0x5b   : > { %p7334_p3 = pnand %p7332_p10, %p7329_p6 }
  0x5d   : > { %7337 = shalt.err (!%p7334_p3)
}
  0x5e   : > { %s7338_s20 = scalar_lea.vmem %s288_s22, 2048  ;;  %p7346_p12 = scmp.lt.s32.totalorder %s288_s22, %s288_s22 }
  0x5f   : > { %p7339_p5 = scmp.ne.s32.totalorder %s288_s22, %s7338_s20  ;;  %p7347_p0 = scmp.lt.s32.totalorder %s7338_s20, %s7338_s20 }
  0x61   : > { %p7341_p7 = pnand %p7339_p5, %p7589_p13  ;;  %p7348_p1 = por %p7347_p0, %p7346_p12 }
  0x63   : > { %p7342_p9 = pneg %p7341_p7 }
  0x65   : > { %p7349_p2 = pnand %p7348_p1, %p7342_p9 }
  0x67   : > { %7352 = shalt.err (!%p7349_p2)
}
  0x68   : > { %s7465_s18 = smov 64   ;;  %s7466_s26 = smov 4  }
  0x69   : > { %6814 = dma.hbm_to_vmem [thread:$0]  (!%p7573_p11), %s8770_s6, 2048, %s288_s22, [#allocation9], %s7465_s18, %s7465_s18, %s7466_s26  }
  0x6a   : > { %s7680_s23 = sadd.s32 1, %s7457_s30   ;;  %s33_s25 = sadd.s32 1, %s7453_s29 }
  0x6b   : > { %s30_s24 = ssub.s32 %s7457_s30, %s7680_s23  ;;  %p40_p4 = scmp.ne.s32.totalorder %s7453_s29, %s7449_s28 }
  0x6c   : > { %p31_p13 = scmp.eq.s32.totalorder %s30_s24, 0  ;;  %p41_p8 = scmp.eq.s32.totalorder %s7457_s30, 0 }
  0x6d   : > { %p8785_p10 = scmp.eq.s32.totalorder %s7543_s9, 1  ;;  %p6827_p5 = scmp.lt.s32.totalorder %s7457_s30, 2 }
  0x6e   : > { %s7689_s10 = scalar_select %p31_p13, %s7453_s29, %s33_s25  }
  0x6f   : > { %p42_p6 = por %p41_p8, %p40_p4  ;;  %p7693_p3 = por %p8785_p10, %p40_p4 }
  0x70   : > { %s304_s16 = sand.u32 1, %s7453_s29   ;;  %s6051_s22 = sshll.u32 %s7457_s30, 10 }
  0x71   : > { %s5870_s17 = sshll.u32 %s304_s16, 6  ;;  %s7703_s18 = scalar_lea.hbm %s8764_s0, %s6051_s22 }
  0x72   : > { %s308_s26 = scalar_lea.vmem [#allocation2], %s5870_s17  ;;  %p7707_p11 = pnand %p6827_p5, %p42_p6 }
  0x73   : > { %s316_s27 = sshll.u32 %s308_s26, 4  ;;  %s7711_s24 = scalar_lea.sflag [#allocation3], %s304_s16  ;;  %s7705_s27 = int_to_ptr.vmem [resolvable:$true] %s316_s27 }
  0x74   : > { %s7353_s25 = scalar_lea.hbm %s7703_s18, 1024  ;;  %p7355_p9 = pneg %p7707_p11 }
  0x75   : > { %p7354_p7 = scmp.ne.s32.totalorder %s7703_s18, %s7353_s25  ;;  %s7358_s15 = scalar_lea.hbm %s8764_s0, 2048 }
  0x76   : > { %p7359_p1 = scmp.lt.u32.totalorder %s7703_s18, %s8764_s0  ;;  %p7360_p2 = scmp.lt.u32.totalorder %s7358_s15, %s7353_s25 }
  0x77   : > { %p7356_p12 = pnand %p7355_p9, %p7354_p7  ;;  %p7362_p4 = scmp.lt.u32.totalorder %s7353_s25, %s7703_s18 }
  0x78   : > { %p7361_p13 = por %p7360_p2, %p7359_p1 }
  0x79   : > { %p7357_p0 = pneg %p7356_p12 }
  0x7a   : > { %p7363_p8 = por %p7362_p4, %p7361_p13 }
  0x7c   : > { %p7364_p6 = pnand %p7363_p8, %p7357_p0 }
  0x7e   : > { %7367 = shalt.err (!%p7364_p6)
}
  0x7f   : > { %s7368_s16 = scalar_lea.vmem %s7705_s27, 1024  ;;  %s7467_s17 = smov [#allocation2]  }
  0x80   : > { %p7369_p10 = scmp.ne.s32.totalorder %s7705_s27, %s7368_s16  ;;  %s7373_s22 = sshll.u32 %s7467_s17, 4  ;;  %s7374_s22 = int_to_ptr.vmem [resolvable:$false] %s7373_s22 }
  0x81   : > { %s7375_s20 = scalar_lea.vmem %s7374_s22, 2048  ;;  %p7376_p12 = scmp.lt.s32.totalorder %s7705_s27, %s7374_s22 }
  0x82   : > { %p7371_p5 = pnand %p7369_p10, %p7355_p9  ;;  %p7377_p1 = scmp.lt.s32.totalorder %s7375_s20, %s7368_s16 }
  0x84   : > { %p7372_p7 = pneg %p7371_p5  ;;  %p7378_p2 = por %p7377_p1, %p7376_p12 }
  0x86   : > { %p7379_p13 = pnand %p7378_p2, %p7372_p7 }
  0x88   : > { %7382 = shalt.err (!%p7379_p13)
}
  0x89   : > { %6818 = dma.hbm_to_vmem [thread:$0]  (!%p7707_p11), %s7703_s18, 1024, %s7705_s27, %s7711_s24, %s7462_s19, %s7462_s19, %s7463_s21  }
  0x8a   : > { %p8788_p9 = scmp.ne.s32.totalorder %s8782_s13, 0 }
  0x8b   : > { %s7745_s25 = sand.u32 (!%p8788_p9), 1, %s7449_s28   ;;  %p8789_p0 = scmp.ne.s32.totalorder (!%p8788_p9), %s8779_s11, 0 }
  0x8c   : > { %328 = sbr.rel (%p8788_p9) target bundleno = 6923 (0x1b0b), region = 52  ;;  %s5875_s15 = sshll.u32 (!%p8788_p9), %s7745_s25, 6 }
  0x8d   : > { %s331_s26 = scalar_lea.sflag (!%p8788_p9), [#allocation3], %s7745_s25  ;;  %s334_s12 = scalar_lea.vmem (!%p8788_p9), [#allocation2], %s5875_s15 }
  0x93   : > { %7428 = dma.done.wait (%p8789_p0), %s331_s26, 1024  }
  0x94   : > { %7430 = vsyncadd (%p8789_p0), %s331_s26, 4294966272  ;;  %p8790_p11 = scmp.eq.s32.totalorder %s7543_s9, 0 }
  0x96   : > { %7432 = dma.done.wait (%p8790_p11), [#allocation6], 4096   ;;  %p8791_p4 = pmov %p8790_p11 }
  0x98   : > { %7434 = vsyncadd (%p8791_p4), [#allocation6], 4294963200  ;;  %p8792_p8 = pmov %p8791_p4 }
  0x99   : > { %p8793_p6 = pmov %p8791_p4 }
  0x9a   : > { %7436 = dma.done.wait (%p8792_p8), [#allocation9], 4096  }
  0x9b   : > { %7438 = vsyncadd (%p8793_p6), [#allocation9], 4294963200  ;;  %v386_v0 = vld [vmem:[%s334_s12] sm:$0xff]  ;;  %v388_v1 = vld [vmem:[%s334_s12 + $0x10] sm:$0xff]  ;;  %vm7470_vm0 = vmmov 0   ;;  %vm1048_vm1 = vcmask 261120  }
  0x9c   : > { %394 = vadd.xlane.f32.xlu0 %v386_v0  ;;  %398 = vadd.xlane.f32.xlu1 %v388_v1  ;;  %v387_v2 = vld [vmem:[%s334_s12 + $0x8] sm:$0xff]  ;;  %v389_v3 = vld [vmem:[%s334_s12 + $0x18] sm:$0xff]  ;;  %v390_v4 = vld [vmem:[%s334_s12 + $0x20] sm:$0xff]  ;;  %vm1237_vm2 = vcmask 130048   ;;  %s7471_s18 = smov 96   ;;  %s7472_s27 = smov 64  }
  0x9d   : > { %v391_v5 = vld [vmem:[%s334_s12 + $0x28] sm:$0xff]  ;;  %v392_v6 = vld [vmem:[%s334_s12 + $0x30] sm:$0xff]  ;;  %v393_v7 = vld [vmem:[%s334_s12 + $0x38] sm:$0xff]  ;;  %s7473_s24 = smov 32   ;;  %s382_s22 = scalar_lea.vmem [#allocation11], %s5875_s15 }
  0x9e   : > { %v6881_v8 = vld [vmem:[#allocation5 + $0x4] ss:$8 sps:$4 sm:$0xff]   ;;  %v6885_v10 = vld [vmem:[#allocation5] ss:$8 sps:$4 sm:$0xff]   ;;  %v6887_v12 = vld [vmem:[#allocation5 + $0x14] ss:$8 sps:$4 sm:$0xff]  }
  0x9f   : > { %v6883_v9 = vld [vmem:[#allocation7 + $0x4] ss:$8 sps:$4 sm:$0xff]   ;;  %v6886_v11 = vld [vmem:[#allocation7] ss:$8 sps:$4 sm:$0xff]   ;;  %v6889_v13 = vld [vmem:[#allocation7 + $0x14] ss:$8 sps:$4 sm:$0xff]   ;;  %613 = vmatprep.subr.bf16.mxu0 %v6881_v8 }
  0xa0   : > { %396 = vadd.xlane.f32.xlu0 %v387_v2  ;;  %400 = vadd.xlane.f32.xlu1 %v389_v3  ;;  %v6891_v46 = vld [vmem:[#allocation5 + $0x10] ss:$8 sps:$4 sm:$0xff]   ;;  %v6893_v48 = vld [vmem:[#allocation5 + $0x24] ss:$8 sps:$4 sm:$0xff]   ;;  %v6897_v50 = vld [vmem:[#allocation5 + $0x20] ss:$8 sps:$4 sm:$0xff]  }
  0xa1   : > { %782 = vmatprep.subr.bf16.mxu1 %v6883_v9  ;;  %614 = vmatpush1.bf16.msra.mxu0 %v6885_v10  ;;  %v6892_v47 = vld [vmem:[#allocation7 + $0x10] ss:$8 sps:$4 sm:$0xff]   ;;  %v6895_v49 = vld [vmem:[#allocation7 + $0x24] ss:$8 sps:$4 sm:$0xff]   ;;  %v6898_v51 = vld [vmem:[#allocation7 + $0x20] ss:$8 sps:$4 sm:$0xff]  }
  0xa2   : > { %783 = vmatpush1.bf16.msra.mxu1 %v6886_v11  ;;  %615 = vmatprep.subr.bf16.mxu0 %v6887_v12  ;;  %v6899_v52 = vld [vmem:[#allocation5 + $0x34] ss:$8 sps:$4 sm:$0xff]   ;;  %v6903_v54 = vld [vmem:[#allocation5 + $0x30] ss:$8 sps:$4 sm:$0xff]   ;;  %v6905_v56 = vld [vmem:[#allocation5 + $0x44] ss:$8 sps:$4 sm:$0xff]  }
  0xa3   : > { %784 = vmatprep.subr.bf16.mxu1 %v6889_v13  ;;  %v6901_v53 = vld [vmem:[#allocation7 + $0x34] ss:$8 sps:$4 sm:$0xff]   ;;  %v6904_v55 = vld [vmem:[#allocation7 + $0x30] ss:$8 sps:$4 sm:$0xff]   ;;  %v6907_v57 = vld [vmem:[#allocation7 + $0x44] ss:$8 sps:$4 sm:$0xff]  }
  0xa4   : > { %402 = vadd.xlane.f32.xlu0 %v390_v4  ;;  %404 = vadd.xlane.f32.xlu1 %v391_v5  ;;  %v6909_v58 = vld [vmem:[#allocation5 + $0x40] ss:$8 sps:$4 sm:$0xff]   ;;  %v6911_v60 = vld [vmem:[#allocation5 + $0x54] ss:$8 sps:$4 sm:$0xff]   ;;  %v6915_v62 = vld [vmem:[#allocation5 + $0x50] ss:$8 sps:$4 sm:$0xff]  }
  0xa5   : > { %616 = vmatpush1.bf16.msra.mxu0 %v6891_v46  ;;  %v6910_v59 = vld [vmem:[#allocation7 + $0x40] ss:$8 sps:$4 sm:$0xff]   ;;  %v6913_v61 = vld [vmem:[#allocation7 + $0x54] ss:$8 sps:$4 sm:$0xff]   ;;  %v6916_v63 = vld [vmem:[#allocation7 + $0x50] ss:$8 sps:$4 sm:$0xff]  }
  0xa6   : > { %785 = vmatpush1.bf16.msra.mxu1 %v6892_v47  ;;  %617 = vmatprep.subr.bf16.mxu0 %v6893_v48  ;;  %v7468_v8 = vmov 0   ;;  %v6931_v9 = vld [vmem:[#allocation8 + $0x4] ss:$8 sps:$4 sm:$0xff]   ;;  %s5752_s20 = sshll.u32 %s382_s22, 4  ;;  %s6053_s26 = sshll.u32 %s7543_s9, 10  ;;  %s8715_s20 = int_to_ptr.vmem [resolvable:$true] %s5752_s20 }
  0xa7   : > { %786 = vmatprep.subr.bf16.mxu1 %v6895_v49  ;;  %645 = vmatprep.mubr.bf16.mxu0 %v7468_v8  ;;  %s8720_s11 = scalar_lea.hbm %s8772_s8, %s6053_s26  ;;  %s5738_s9 = scalar_lea.sflag [#allocation4], %s7745_s25 }
  0xa8   : > { %406 = vadd.xlane.f32.xlu0 %v392_v6  ;;  %408 = vadd.xlane.f32.xlu1 %v393_v7  ;;  %s7383_s13 = scalar_lea.vmem %s8715_s20, 1024  ;;  %s7474_s19 = smov [#allocation11]  }
  0xa9   : > { %618 = vmatpush1.bf16.msra.mxu0 %v6897_v50  ;;  %814 = vmatprep.mubr.bf16.mxu1 %v7468_v8  ;;  %p7384_p10 = scmp.ne.s32.totalorder %s8715_s20, %s7383_s13  ;;  %s7387_s21 = sshll.u32 %s7474_s19, 4  ;;  %s7388_s21 = int_to_ptr.vmem [resolvable:$false] %s7387_s21 }
  0xaa   : > { %787 = vmatpush1.bf16.msra.mxu1 %v6898_v51  ;;  %619 = vmatprep.subr.bf16.mxu0 %v6899_v52  ;;  %p7390_p12 = scmp.lt.s32.totalorder %s8715_s20, %s7388_s21 }
  0xab   : > { %788 = vmatprep.subr.bf16.mxu1 %v6901_v53  ;;  %p7385_p5 = pnand %p7384_p10, %p7693_p3 }
  0xad   : > { %620 = vmatpush1.bf16.msra.mxu0 %v6903_v54  ;;  %v6929_v54 = vld [vmem:[#allocation8] ss:$8 sps:$4 sm:$0xff]   ;;  %p7386_p7 = pneg %p7385_p5 }
  0xae   : > { %789 = vmatpush1.bf16.msra.mxu1 %v6904_v55  ;;  %621 = vmatprep.subr.bf16.mxu0 %v6905_v56  ;;  %v6934_v56 = vld [vmem:[#allocation8 + $0x14] ss:$8 sps:$4 sm:$0xff]  }
  0xaf   : > { %790 = vmatprep.subr.bf16.mxu1 %v6907_v57 }
  0xb1   : > { %622 = vmatpush1.bf16.msra.mxu0 %v6909_v58 }
  0xb2   : > { %791 = vmatpush1.bf16.msra.mxu1 %v6910_v59  ;;  %623 = vmatprep.subr.bf16.mxu0 %v6911_v60 }
  0xb3   : > { %792 = vmatprep.subr.bf16.mxu1 %v6913_v61  ;;  %v6937_v61 = vld [vmem:[#allocation8 + $0x24] ss:$8 sps:$4 sm:$0xff]  }
  0xb5   : > { %624 = vmatpush1.bf16.msra.mxu0 %v6915_v62 }
  0xb6   : > { %793 = vmatpush1.bf16.msra.mxu1 %v6916_v63 }
 0x129   : > { %v395_v14 = vpop.xlane.xlu0 %394  ;;  %v399_v15 = vpop.xlane.xlu1 %398 }
 0x12a   : > { %v411_v16 = vmul.f32 0.0078125, %v395_v14  ;;  %v413_v17 = vmul.f32 0.0078125, %v399_v15 }
 0x12c   : > { %v7763_v18 = vsub.f32 %v386_v0, %v411_v16  ;;  %v7765_v19 = vsub.f32 %v388_v1, %v413_v17  ;;  %v6917_v0 = vld [vmem:[#allocation5 + $0x64] ss:$8 sps:$4 sm:$0xff]  }
 0x12d   : > { %v397_v20 = vpop.xlane.xlu0 %396  ;;  %v401_v21 = vpop.xlane.xlu1 %400  ;;  %v6919_v1 = vld [vmem:[#allocation7 + $0x64] ss:$8 sps:$4 sm:$0xff]   ;;  %625 = vmatprep.subr.bf16.mxu0 %v6917_v0 }
 0x12e   : > { %v412_v22 = vmul.f32 0.0078125, %v397_v20  ;;  %v427_v23 = vmul.f32 %v7763_v18, %v7763_v18  ;;  %v414_v24 = vmul.f32 0.0078125, %v401_v21  ;;  %v429_v25 = vmul.f32 %v7765_v19, %v7765_v19  ;;  %794 = vmatprep.subr.bf16.mxu1 %v6919_v1  ;;  %v6935_v1 = vld [vmem:[#allocation8 + $0x20] ss:$8 sps:$4 sm:$0xff]  }
 0x130   : > { %435 = vadd.xlane.f32.xlu0 %v427_v23  ;;  %v7771_v26 = vsub.f32 %v387_v2, %v412_v22  ;;  %v7773_v27 = vsub.f32 %v389_v3, %v414_v24  ;;  %v6921_v2 = vld [vmem:[#allocation5 + $0x60] ss:$8 sps:$4 sm:$0xff]  }
 0x131   : > { %v403_v28 = vpop.xlane.xlu0 %402  ;;  %v405_v29 = vpop.xlane.xlu1 %404  ;;  %v6922_v3 = vld [vmem:[#allocation7 + $0x60] ss:$8 sps:$4 sm:$0xff]   ;;  %626 = vmatpush1.bf16.msra.mxu0 %v6921_v2 }
 0x132   : > { %v415_v30 = vmul.f32 0.0078125, %v403_v28  ;;  %v428_v31 = vmul.f32 %v7771_v26, %v7771_v26  ;;  %v416_v32 = vmul.f32 0.0078125, %v405_v29  ;;  %v430_v33 = vmul.f32 %v7773_v27, %v7773_v27  ;;  %795 = vmatpush1.bf16.msra.mxu1 %v6922_v3  ;;  %v6940_v3 = vld [vmem:[#allocation8 + $0x34] ss:$8 sps:$4 sm:$0xff]  }
 0x134   : > { %439 = vadd.xlane.f32.xlu0 %v429_v25  ;;  %437 = vadd.xlane.f32.xlu1 %v428_v31  ;;  %v7779_v34 = vsub.f32 %v390_v4, %v415_v30  ;;  %v7781_v35 = vsub.f32 %v391_v5, %v416_v32  ;;  %v6923_v4 = vld [vmem:[#allocation5 + $0x74] ss:$8 sps:$4 sm:$0xff]  }
 0x135   : > { %v407_v36 = vpop.xlane.xlu0 %406  ;;  %v409_v37 = vpop.xlane.xlu1 %408  ;;  %v6925_v5 = vld [vmem:[#allocation7 + $0x74] ss:$8 sps:$4 sm:$0xff]   ;;  %627 = vmatprep.subr.bf16.mxu0 %v6923_v4 }
 0x136   : > { %v417_v38 = vmul.f32 0.0078125, %v407_v36  ;;  %v431_v39 = vmul.f32 %v7779_v34, %v7779_v34  ;;  %v418_v40 = vmul.f32 0.0078125, %v409_v37  ;;  %v432_v41 = vmul.f32 %v7781_v35, %v7781_v35  ;;  %796 = vmatprep.subr.bf16.mxu1 %v6925_v5 }
 0x138   : > { %441 = vadd.xlane.f32.xlu1 %v430_v33  ;;  %443 = vadd.xlane.f32.xlu0 %v431_v39  ;;  %v7787_v42 = vsub.f32 %v392_v6, %v417_v38  ;;  %v7789_v43 = vsub.f32 %v393_v7, %v418_v40  ;;  %v6927_v6 = vld [vmem:[#allocation5 + $0x70] ss:$8 sps:$4 sm:$0xff]   ;;  %v7801_v39 = vld [vmem:[%s8765_s1] ss:$0 sm:$0xff] }
 0x139   : > { %v6928_v7 = vld [vmem:[#allocation7 + $0x70] ss:$8 sps:$4 sm:$0xff]   ;;  %628 = vmatpush1.bf16.msra.mxu0 %v6927_v6 }
 0x13a   : > { %v433_v44 = vmul.f32 %v7787_v42, %v7787_v42  ;;  %v434_v45 = vmul.f32 %v7789_v43, %v7789_v43  ;;  %797 = vmatpush1.bf16.msra.mxu1 %v6928_v7  ;;  %951 = vmatprep.subr.bf16.mxu0 %v6931_v9 }
 0x13b   : > { %6710 = vmatprep.subr.bf16.mxu1 %v6931_v9  ;;  %v6943_v9 = vld [vmem:[#allocation8 + $0x44] ss:$8 sps:$4 sm:$0xff]  }
 0x13c   : > { %445 = vadd.xlane.f32.xlu1 %v432_v41  ;;  %447 = vadd.xlane.f32.xlu0 %v433_v44 }
 0x140   : > { %449 = vadd.xlane.f32.xlu1 %v434_v45 }
 0x1bd   : > { %v436_v10 = vpop.xlane.xlu0 %435 }
 0x1be   : > { %v451_v11 = vmul.f32 0.0078125, %v436_v10 }
 0x1c0   : > { %v459_v12 = vadd.f32 1e-05, %v451_v11 }
 0x1c1   : > { %v438_v13 = vpop.xlane.xlu1 %437  ;;  %v440_v14 = vpop.xlane.xlu0 %439 }
 0x1c2   : > { %6969 = vrsqrt.f32 %v459_v12  ;;  %v452_v15 = vmul.f32 0.0078125, %v438_v13  ;;  %v453_v16 = vmul.f32 0.0078125, %v440_v14  ;;  %v6941_v13 = vld [vmem:[#allocation8 + $0x40] ss:$8 sps:$4 sm:$0xff]  }
 0x1c4   : > { %v460_v17 = vadd.f32 1e-05, %v452_v15  ;;  %v461_v20 = vadd.f32 1e-05, %v453_v16  ;;  %v6946_v15 = vld [vmem:[#allocation8 + $0x54] ss:$8 sps:$4 sm:$0xff]  }
 0x1c5   : > { %v442_v21 = vpop.xlane.xlu1 %441  ;;  %v444_v22 = vpop.xlane.xlu0 %443 }
 0x1c6   : > { %6971 = vrsqrt.f32 %v460_v17  ;;  %v454_v23 = vmul.f32 0.0078125, %v442_v21  ;;  %v455_v25 = vmul.f32 0.0078125, %v444_v22  ;;  %v6944_v17 = vld [vmem:[#allocation8 + $0x50] ss:$8 sps:$4 sm:$0xff]   ;;  %v6947_v22 = vld [vmem:[#allocation8 + $0x60] ss:$8 sps:$4 sm:$0xff]  }
 0x1c7   : > { %6973 = vrsqrt.f32 %v461_v20  ;;  %v6949_v20 = vld [vmem:[#allocation8 + $0x64] ss:$8 sps:$4 sm:$0xff]  }
 0x1c8   : > { %v462_v24 = vadd.f32 1e-05, %v454_v23  ;;  %v463_v31 = vadd.f32 1e-05, %v455_v25  ;;  %v6950_v25 = vld [vmem:[#allocation8 + $0x70] ss:$8 sps:$4 sm:$0xff]  }
 0x1c9   : > { %v446_v28 = vpop.xlane.xlu1 %445  ;;  %v448_v33 = vpop.xlane.xlu0 %447 }
 0x1ca   : > { %6975 = vrsqrt.f32 %v462_v24  ;;  %v456_v29 = vmul.f32 0.0078125, %v446_v28  ;;  %v457_v41 = vmul.f32 0.0078125, %v448_v33  ;;  %v6952_v24 = vld [vmem:[#allocation8 + $0x74] ss:$8 sps:$4 sm:$0xff]   ;;  %v7469_v28 = vmov 0.0  }
 0x1cc   : > { %v6970_v30 = vpop.eup %6969  ;;  %v464_v32 = vadd.f32 1e-05, %v456_v29  ;;  %v465_v50 = vadd.f32 1e-05, %v457_v41 }
 0x1cd   : > { %v450_v36 = vpop.xlane.xlu1 %449  ;;  %v475_v37 = vmul.f32 %v6970_v30, %v7763_v18  ;;  %v7808_v18 = vld [vmem:[%s8766_s2] ss:$0 sm:$0xff] }
 0x1ce   : > { %6977 = vrsqrt.f32 %v464_v32  ;;  %v458_v38 = vmul.f32 0.0078125, %v450_v36 }
 0x1cf   : > { %6979 = vrsqrt.f32 %v463_v31  ;;  %v490_v45 = vmul.f32 %v7801_v39, %v475_v37 }
 0x1d0   : > { %v6972_v40 = vpop.eup %6971  ;;  %v466_v47 = vadd.f32 1e-05, %v458_v38 }
 0x1d1   : > { %v476_v44 = vmul.f32 %v6972_v40, %v7771_v26  ;;  %v6974_v46 = vpop.eup %6973  ;;  %v505_v51 = vadd.f32 %v7808_v18, %v490_v45 }
 0x1d2   : > { %v477_v53 = vmul.f32 %v6974_v46, %v7765_v19  ;;  %6981 = vrsqrt.f32 %v466_v47  ;;  %v6932_v19 = vld [vmem:[#allocation8 + $0x10] ss:$8 sps:$4 sm:$0xff]  }
 0x1d3   : > { %v491_v48 = vmul.f32 %v7801_v39, %v476_v44  ;;  %6983 = vrsqrt.f32 %v465_v50 }
 0x1d4   : > { %v6976_v49 = vpop.eup %6975  ;;  %v492_v59 = vmul.f32 %v7801_v39, %v477_v53 }
 0x1d5   : > { %v506_v52 = vadd.f32 %v7808_v18, %v491_v48  ;;  %v478_v26 = vmul.f32 %v6976_v49, %v7773_v27 }
 0x1d6   : > { %v507_v63 = vadd.f32 %v7808_v18, %v492_v59 }
 0x1d7   : > { %v7815_v55 = vpack.c.bf16 %v506_v52, %v505_v51  ;;  %v493_v57 = vmul.f32 %v7801_v39, %v478_v26 }
 0x1d8   : > { %v6978_v58 = vpop.eup %6977 }
 0x1d9   : > { %646 = vmatmul.mubr.bf16.vlgmr.msra.gmra.mrb[0].mxu0 %v7815_v55  ;;  %815 = vmatmul.mubr.bf16.vlgmr.msra.gmra.mrb[0].mxu1 %v7815_v55  ;;  %v6980_v60 = vpop.eup %6979  ;;  %v508_v27 = vadd.f32 %v7808_v18, %v493_v57  ;;  %v480_v62 = vmul.f32 %v6978_v58, %v7781_v35 }
 0x1da   : > { %952 = vmatpush1.bf16.msra.mxu0 %v6929_v54  ;;  %6718 = vmatpush1.bf16.msra.mxu1 %v6929_v54  ;;  %v479_v0 = vmul.f32 %v6980_v60, %v7779_v34  ;;  %v6938_v34 = vld [vmem:[#allocation8 + $0x30] ss:$8 sps:$4 sm:$0xff]  }
 0x1db   : > { %953 = vmatprep.subr.bf16.mxu0 %v6934_v56  ;;  %6711 = vmatprep.subr.bf16.mxu1 %v6934_v56  ;;  %v7827_v2 = vpack.c.bf16 %v508_v27, %v507_v63  ;;  %v495_v4 = vmul.f32 %v7801_v39, %v480_v62 }
 0x1dc   : > { %655 = vmatprep.mubr.bf16.mxu0 %v7468_v8  ;;  %824 = vmatprep.mubr.bf16.mxu1 %v7468_v8  ;;  %v6982_v5 = vpop.eup %6981  ;;  %v494_v35 = vmul.f32 %v7801_v39, %v479_v0 }
 0x1dd   : > { %v6984_v6 = vpop.eup %6983  ;;  %v510_v7 = vadd.f32 %v7808_v18, %v495_v4  ;;  %v482_v10 = vmul.f32 %v6982_v5, %v7789_v43 }
 0x1de   : > { %954 = vmatpush1.bf16.msra.mxu0 %v6932_v19  ;;  %6719 = vmatpush1.bf16.msra.mxu1 %v6932_v19  ;;  %v509_v11 = vadd.f32 %v7808_v18, %v494_v35  ;;  %v481_v12 = vmul.f32 %v6984_v6, %v7787_v42 }
 0x1df   : > { %955 = vmatprep.subr.bf16.mxu0 %v6937_v61  ;;  %6712 = vmatprep.subr.bf16.mxu1 %v6937_v61  ;;  %v497_v16 = vmul.f32 %v7801_v39, %v482_v10 }
 0x1e0   : > { %v515_v14 = vpack.c.bf16 %v510_v7, %v509_v11  ;;  %v496_v43 = vmul.f32 %v7801_v39, %v481_v12 }
 0x1e1   : > { %656 = vmatmul.mubr.bf16.gmra.mrb[4].mxu0 %v7827_v2  ;;  %825 = vmatmul.mubr.bf16.gmra.mrb[4].mxu1 %v7827_v2  ;;  %v512_v42 = vadd.f32 %v7808_v18, %v497_v16 }
 0x1e2   : > { %956 = vmatpush1.bf16.msra.mxu0 %v6935_v1  ;;  %6720 = vmatpush1.bf16.msra.mxu1 %v6935_v1  ;;  %v511_v21 = vadd.f32 %v7808_v18, %v496_v43 }
 0x1e3   : > { %957 = vmatprep.subr.bf16.mxu0 %v6940_v3  ;;  %6713 = vmatprep.subr.bf16.mxu1 %v6940_v3 }
 0x1e4   : > { %665 = vmatprep.mubr.bf16.mxu0 %v7468_v8  ;;  %834 = vmatprep.mubr.bf16.mxu1 %v7468_v8  ;;  %v516_v23 = vpack.c.bf16 %v512_v42, %v511_v21 }
 0x1e6   : > { %958 = vmatpush1.bf16.msra.mxu0 %v6938_v34  ;;  %6721 = vmatpush1.bf16.msra.mxu1 %v6938_v34 }
 0x1e7   : > { %959 = vmatprep.subr.bf16.mxu0 %v6943_v9  ;;  %6714 = vmatprep.subr.bf16.mxu1 %v6943_v9 }
 0x1e9   : > { %666 = vmatmul.mubr.bf16.gmra.mrb[8].mxu0 %v515_v14  ;;  %835 = vmatmul.mubr.bf16.gmra.mrb[8].mxu1 %v515_v14 }
 0x1ea   : > { %960 = vmatpush1.bf16.msra.mxu0 %v6941_v13  ;;  %6722 = vmatpush1.bf16.msra.mxu1 %v6941_v13 }
 0x1eb   : > { %961 = vmatprep.subr.bf16.mxu0 %v6946_v15  ;;  %6715 = vmatprep.subr.bf16.mxu1 %v6946_v15 }
 0x1ec   : > { %675 = vmatprep.mubr.bf16.mxu0 %v7468_v8  ;;  %844 = vmatprep.mubr.bf16.mxu1 %v7468_v8 }
 0x1ee   : > { %962 = vmatpush1.bf16.msra.mxu0 %v6944_v17  ;;  %6723 = vmatpush1.bf16.msra.mxu1 %v6944_v17 }
 0x1ef   : > { %963 = vmatprep.subr.bf16.mxu0 %v6949_v20  ;;  %6716 = vmatprep.subr.bf16.mxu1 %v6949_v20 }
 0x1f1   : > { %676 = vmatmul.mubr.bf16.gmra.mrb[12].mxu0 %v516_v23  ;;  %845 = vmatmul.mubr.bf16.gmra.mrb[12].mxu1 %v516_v23 }
 0x1f2   : > { %964 = vmatpush1.bf16.msra.mxu0 %v6947_v22  ;;  %6724 = vmatpush1.bf16.msra.mxu1 %v6947_v22 }
 0x1f3   : > { %965 = vmatprep.subr.bf16.mxu0 %v6952_v24  ;;  %6717 = vmatprep.subr.bf16.mxu1 %v6952_v24 }
 0x1f4   : > { %983 = vmatprep.mubr.bf16.mxu0 %v7468_v8  ;;  %1013 = vmatprep.mubr.bf16.mxu1 %v7468_v8 }
 0x1f6   : > { %966 = vmatpush1.bf16.msra.mxu0 %v6950_v25  ;;  %6725 = vmatpush1.bf16.msra.mxu1 %v6950_v25 }
 0x1f7   : > { %6230 = vmatprep.subr.bf16.mxu1 %v7469_v28  ;;  %6254 = vmatprep.subr.bf16.mxu0 %v7469_v28 }
 0x1f9   : > { %984 = vmatmul.mubr.bf16.vlgmr.msra.gmra.mrb[16].mxu0 %v7815_v55  ;;  %1014 = vmatmul.mubr.bf16.vlgmr.msra.gmra.mrb[16].mxu1 %v516_v23 }
 0x1fa   : > { %993 = vmatprep.mubr.bf16.mxu0 %v7468_v8  ;;  %6232 = vmatprep.mubr.msk.bf16.mxu1 %vm7470_vm0, %v7469_v28 }
 0x201   : > { %994 = vmatmul.mubr.bf16.gmra.mrb[20].mxu0 %v7827_v2 }
 0x202   : > { %1003 = vmatprep.mubr.bf16.mxu0 %v7468_v8 }
 0x209   : > { %1004 = vmatmul.mubr.bf16.gmra.mrb[24].mxu0 %v515_v14 }
 0x20a   : > { %6256 = vmatprep.mubr.msk.bf16.mxu0 %vm7470_vm0, %v7469_v28 }
 0x2ac   : > { %v647_v29 = vpop.f32.mrb[0].mxu0  ;;  %v816_v30 = vpop.f32.mrb[0].mxu1 }
 0x2ad   : > { %v649_v31 = vpop.f32.mrb[1].mxu0  ;;  %v818_v32 = vpop.f32.mrb[1].mxu1 }
 0x2ae   : > { %v651_v33 = vpop.f32.mrb[2].mxu0  ;;  %v820_v36 = vpop.f32.mrb[2].mxu1 }
 0x2af   : > { %v7857_v8 = vpack.c.bf16 %v651_v33, %v647_v29  ;;  %v7859_v37 = vpack.c.bf16 %v820_v36, %v816_v30  ;;  %v653_v38 = vpop.f32.mrb[3].mxu0  ;;  %v822_v39 = vpop.f32.mrb[3].mxu1 }
 0x2b0   : > { %v7861_v40 = vpack.c.bf16 %v653_v38, %v649_v31  ;;  %v7863_v41 = vpack.c.bf16 %v822_v39, %v818_v32 }
 0x2b1   : > { %v1053_v44 = vsel %vm1048_vm1, %v7859_v37, 0 }
 0x2b2   : > { %6231 = vmatpush3.bf16.xpose.msra.mxu1 %v1053_v44 }
 0x2b3   : > { %6236 = vmatprep.subr.bf16.mxu1 %v7469_v28 }
 0x2b4   : > { %v657_v45 = vpop.f32.mrb[4].mxu0  ;;  %v826_v46 = vpop.f32.mrb[4].mxu1 }
 0x2b5   : > { %v659_v47 = vpop.f32.mrb[5].mxu0  ;;  %v828_v18 = vpop.f32.mrb[5].mxu1 }
 0x2b6   : > { %v661_v48 = vpop.f32.mrb[6].mxu0  ;;  %v830_v49 = vpop.f32.mrb[6].mxu1 }
 0x2b7   : > { %v7868_v50 = vpack.c.bf16 %v661_v48, %v657_v45  ;;  %v7870_v51 = vpack.c.bf16 %v830_v49, %v826_v46  ;;  %v663_v52 = vpop.f32.mrb[7].mxu0  ;;  %v832_v53 = vpop.f32.mrb[7].mxu1 }
 0x2b8   : > { %v7872_v26 = vpack.c.bf16 %v663_v52, %v659_v47  ;;  %v7874_v54 = vpack.c.bf16 %v832_v53, %v828_v18 }
 0x2b9   : > { %6233 = vmatmul.mubr.msk.bf16.vlgmr.msra.gmra.mrb[20].mxu1 %vm1048_vm1, %v7857_v8  ;;  %v1100_v55 = vsel %vm1048_vm1, %v7870_v51, 0 }
 0x2ba   : > { %6237 = vmatpush3.bf16.xpose.msra.mxu1 %v1100_v55  ;;  %6238 = vmatprep.mubr.msk.bf16.mxu1 %vm7470_vm0, %v7469_v28 }
 0x2bb   : > { %6242 = vmatprep.subr.bf16.mxu1 %v7469_v28 }
 0x2bc   : > { %v667_v56 = vpop.f32.mrb[8].mxu0  ;;  %v836_v57 = vpop.f32.mrb[8].mxu1 }
 0x2bd   : > { %v669_v58 = vpop.f32.mrb[9].mxu0  ;;  %v838_v59 = vpop.f32.mrb[9].mxu1 }
 0x2be   : > { %v671_v60 = vpop.f32.mrb[10].mxu0  ;;  %v840_v19 = vpop.f32.mrb[10].mxu1 }
 0x2bf   : > { %v7883_v27 = vpack.c.bf16 %v671_v60, %v667_v56  ;;  %v7885_v61 = vpack.c.bf16 %v840_v19, %v836_v57  ;;  %v673_v62 = vpop.f32.mrb[11].mxu0  ;;  %v842_v63 = vpop.f32.mrb[11].mxu1 }
 0x2c0   : > { %v7887_v0 = vpack.c.bf16 %v673_v62, %v669_v58  ;;  %v7889_v1 = vpack.c.bf16 %v842_v63, %v838_v59 }
 0x2c1   : > { %6239 = vmatmul.mubr.msk.bf16.vlgmr.msra.gmra.mrb[24].mxu1 %vm1048_vm1, %v7868_v50  ;;  %v1147_v2 = vsel %vm1048_vm1, %v7885_v61, 0 }
 0x2c2   : > { %6243 = vmatpush3.bf16.xpose.msra.mxu1 %v1147_v2  ;;  %6244 = vmatprep.mubr.msk.bf16.mxu1 %vm7470_vm0, %v7469_v28 }
 0x2c3   : > { %6248 = vmatprep.subr.bf16.mxu1 %v7469_v28 }
 0x2c4   : > { %v677_v3 = vpop.f32.mrb[12].mxu0  ;;  %v846_v4 = vpop.f32.mrb[12].mxu1 }
 0x2c5   : > { %v679_v5 = vpop.f32.mrb[13].mxu0  ;;  %v848_v35 = vpop.f32.mrb[13].mxu1 }
 0x2c6   : > { %v681_v6 = vpop.f32.mrb[14].mxu0  ;;  %v850_v34 = vpop.f32.mrb[14].mxu1 }
 0x2c7   : > { %v7898_v7 = vpack.c.bf16 %v681_v6, %v677_v3  ;;  %v7900_v9 = vpack.c.bf16 %v850_v34, %v846_v4  ;;  %v683_v10 = vpop.f32.mrb[15].mxu0  ;;  %v852_v11 = vpop.f32.mrb[15].mxu1 }
 0x2c8   : > { %v7902_v12 = vpack.c.bf16 %v683_v10, %v679_v5  ;;  %v7904_v13 = vpack.c.bf16 %v852_v11, %v848_v35 }
 0x2c9   : > { %6245 = vmatmul.mubr.msk.bf16.vlgmr.msra.gmra.mrb[28].mxu1 %vm1048_vm1, %v7883_v27  ;;  %v1194_v14 = vsel %vm1048_vm1, %v7900_v9, 0 }
 0x2ca   : > { %6249 = vmatpush3.bf16.xpose.msra.mxu1 %v1194_v14  ;;  %6250 = vmatprep.mubr.msk.bf16.mxu1 %vm7470_vm0, %v7469_v28 }
 0x2cb   : > { %6260 = vmatprep.subr.bf16.mxu1 %v7469_v28 }
 0x2cc   : > { %v985_v15 = vpop.f32.mrb[16].mxu0  ;;  %v1015_v16 = vpop.f32.mrb[16].mxu1 }
 0x2cd   : > { %v987_v43 = vpop.f32.mrb[17].mxu0  ;;  %v1017_v17 = vpop.f32.mrb[17].mxu1 }
 0x2ce   : > { %v989_v42 = vpop.f32.mrb[18].mxu0  ;;  %v1019_v20 = vpop.f32.mrb[18].mxu1 }
 0x2cf   : > { %v7913_v21 = vpack.c.bf16 %v989_v42, %v985_v15  ;;  %v7915_v22 = vpack.c.bf16 %v1019_v20, %v1015_v16  ;;  %v991_v23 = vpop.f32.mrb[19].mxu0  ;;  %v1021_v24 = vpop.f32.mrb[19].mxu1 }
 0x2d0   : > { %v7917_v25 = vpack.c.bf16 %v991_v23, %v987_v43  ;;  %v7919_v29 = vpack.c.bf16 %v1021_v24, %v1017_v17 }
 0x2d1   : > { %6251 = vmatmul.mubr.msk.bf16.vlgmr.msra.gmra.mrb[32].mxu1 %vm1048_vm1, %v7898_v7  ;;  %6255 = vmatpush3.bf16.msra.mxu0 %v7913_v21 }
 0x2d2   : > { %6262 = vmatprep.mubr.msk.bf16.mxu1 %vm7470_vm0, %v7469_v28  ;;  %6266 = vmatprep.subr.bf16.mxu0 %v7469_v28 }
 0x2d4   : > { %v995_v30 = vpop.f32.mrb[20].mxu0 }
 0x2d5   : > { %v997_v31 = vpop.f32.mrb[21].mxu0 }
 0x2d6   : > { %v999_v32 = vpop.f32.mrb[22].mxu0 }
 0x2d7   : > { %v7927_v33 = vpack.c.bf16 %v999_v32, %v995_v30  ;;  %v1001_v36 = vpop.f32.mrb[23].mxu0 }
 0x2d8   : > { %v7929_v38 = vpack.c.bf16 %v1001_v36, %v997_v31 }
 0x2d9   : > { %6261 = vmatpush3.bf16.msra.mxu1 %v7927_v33 }
 0x2da   : > { %6272 = vmatprep.subr.bf16.mxu1 %v7469_v28 }
 0x2dc   : > { %v1005_v39 = vpop.f32.mrb[24].mxu0 }
 0x2dd   : > { %v1007_v44 = vpop.f32.mrb[25].mxu0 }
 0x2de   : > { %v1009_v45 = vpop.f32.mrb[26].mxu0 }
 0x2df   : > { %v7933_v46 = vpack.c.bf16 %v1009_v45, %v1005_v39  ;;  %v1011_v47 = vpop.f32.mrb[27].mxu0 }
 0x2e0   : > { %v7935_v18 = vpack.c.bf16 %v1011_v47, %v1007_v44 }
 0x38c   : > { %v7937_v48 = vpop.f32.mrb[20].mxu1 }
 0x38d   : > { %v6234_v49 = vpop.f32.mrb[21].mxu1 }
 0x38e   : > { %v7939_v52 = vpop.f32.mrb[22].mxu1 }
 0x38f   : > { %v6235_v53 = vpop.f32.mrb[23].mxu1 }
 0x390   : > { %v1238_v53 = vsel %vm1237_vm2, %v7937_v48, -inf }
 0x394   : > { %v1136_v55 = vpop.f32.mrb[24].mxu1 }
 0x395   : > { %v6240_v56 = vpop.f32.mrb[25].mxu1  ;;  %v1244_v57 = vsel %vm1237_vm2, %v1136_v55, -inf }
 0x396   : > { %1245 = vmax.xlane.f32.xlu0 %v1244_v57  ;;  %v1139_v58 = vpop.f32.mrb[26].mxu1  ;;  %v1241_v57 = vsel %vm1237_vm2, %v7939_v52, -inf }
 0x397   : > { %v6241_v59 = vpop.f32.mrb[27].mxu1  ;;  %v1247_v60 = vsel %vm1237_vm2, %v1139_v58, -inf }
 0x398   : > { %1248 = vmax.xlane.f32.xlu1 %v1247_v60 }
 0x39c   : > { %v7943_v19 = vpop.f32.mrb[28].mxu1 }
 0x39d   : > { %v6246_v62 = vpop.f32.mrb[29].mxu1 }
 0x39e   : > { %v7945_v63 = vpop.f32.mrb[30].mxu1 }
 0x39f   : > { %v6247_v2 = vpop.f32.mrb[31].mxu1  ;;  %v1253_v56 = vsel %vm1237_vm2, %v7945_v63, -inf }
 0x3a4   : > { %v1230_v3 = vpop.f32.mrb[32].mxu1 }
 0x3a5   : > { %v6252_v4 = vpop.f32.mrb[33].mxu1  ;;  %v1256_v5 = vsel %vm1237_vm2, %v1230_v3, -inf }
 0x3a6   : > { %1257 = vmax.xlane.f32.xlu0 %v1256_v5  ;;  %v1233_v35 = vpop.f32.mrb[34].mxu1 }
 0x3a7   : > { %v6253_v6 = vpop.f32.mrb[35].mxu1  ;;  %v1259_v34 = vsel %vm1237_vm2, %v1233_v35, -inf }
 0x3a8   : > { %1260 = vmax.xlane.f32.xlu1 %v1259_v34 }
 0x423   : > { %v1246_v10 = vpop.xlane.xlu0 %1245 }
 0x424   : > { %v1264_v11 = vsub.f32 %v1136_v55, %v1246_v10  ;;  %v1250_v55 = vsel %vm1237_vm2, %v7943_v19, -inf }
 0x425   : > { %v1249_v14 = vpop.xlane.xlu1 %1248 }
 0x426   : > { %v1274_v15 = vmul.f32 1.442695, %v1264_v11  ;;  %v1265_v16 = vsub.f32 %v1139_v58, %v1249_v14 }
 0x428   : > { %6985 = vpow2.f32 %v1274_v15  ;;  %v1276_v43 = vmul.f32 1.442695, %v1265_v16 }
 0x42a   : > { %6987 = vpow2.f32 %v1276_v43 }
 0x432   : > { %v6986_v17 = vpop.eup %6985 }
 0x433   : > { %v1258_v42 = vpop.xlane.xlu0 %1257  ;;  %v1292_v20 = vsel %vm1237_vm2, %v6986_v17, 0.0 }
 0x434   : > { %v6988_v23 = vpop.eup %6987  ;;  %v1268_v24 = vsub.f32 %v1230_v3, %v1258_v42  ;;  %1293 = vadd.xlane.f32.xlu0 %v1292_v20 }
 0x435   : > { %v1261_v30 = vpop.xlane.xlu1 %1260  ;;  %v1295_v31 = vsel %vm1237_vm2, %v6988_v23, 0.0 }
 0x436   : > { %v1282_v32 = vmul.f32 1.442695, %v1268_v24  ;;  %v1269_v36 = vsub.f32 %v1233_v35, %v1261_v30  ;;  %1296 = vadd.xlane.f32.xlu1 %v1295_v31 }
 0x438   : > { %6989 = vpow2.f32 %v1282_v32  ;;  %v1284_v39 = vmul.f32 1.442695, %v1269_v36 }
 0x43a   : > { %6991 = vpow2.f32 %v1284_v39 }
 0x442   : > { %v6990_v44 = vpop.eup %6989 }
 0x443   : > { %v1304_v45 = vsel %vm1237_vm2, %v6990_v44, 0.0 }
 0x444   : > { %v6992_v47 = vpop.eup %6991  ;;  %1305 = vadd.xlane.f32.xlu0 %v1304_v45 }
 0x445   : > { %v1307_v49 = vsel %vm1237_vm2, %v6992_v47, 0.0 }
 0x446   : > { %1308 = vadd.xlane.f32.xlu1 %v1307_v49 }
 0x457   : > { %1568 = vrot.lane.b32.xlu1 %v7868_v50, %s7471_s18 }
 0x45a   : > { %1571 = vrot.lane.b32.xlu0 %v7870_v51, %s7471_s18 }
 0x45b   : > { %1677 = vrot.lane.b32.xlu1 %v7900_v9, %s7471_s18 }
 0x45f   : > { %1674 = vrot.lane.b32.xlu1 %v7898_v7, %s7471_s18 }
 0x479   : > { %1239 = vmax.xlane.f32.xlu0 %v1238_v53 }
 0x47d   : > { %1251 = vmax.xlane.f32.xlu0 %v1250_v55 }
 0x481   : > { %1254 = vmax.xlane.f32.xlu0 %v1253_v56 }
 0x483   : > { %1242 = vmax.xlane.f32.xlu1 %v1241_v57 }
 0x4c1   : > { %v1294_v58 = vpop.xlane.xlu0 %1293 }
 0x4c2   : > { %6993 = vrcp.f32 %v1294_v58 }
 0x4c3   : > { %v1297_v59 = vpop.xlane.xlu1 %1296 }
 0x4c4   : > { %6995 = vrcp.f32 %v1297_v59 }
 0x4cc   : > { %v6994_v60 = vpop.eup %6993 }
 0x4cd   : > { %v1320_v2 = vmul.f32 %v6994_v60, %v6986_v17 }
 0x4ce   : > { %v6996_v62 = vpop.eup %6995 }
 0x4cf   : > { %v1321_v3 = vmul.f32 %v6996_v62, %v6988_v23 }
 0x4d1   : > { %v1306_v4 = vpop.xlane.xlu0 %1305  ;;  %v1327_v5 = vpack.c.bf16 %v1321_v3, %v1320_v2 }
 0x4d2   : > { %6997 = vrcp.f32 %v1306_v4 }
 0x4d3   : > { %v1309_v35 = vpop.xlane.xlu1 %1308  ;;  %6263 = vmatmul.mubr.msk.bf16.vlgmr.msra.gmra.mrb[36].mxu1 %vm1237_vm2, %v1327_v5 }
 0x4d4   : > { %6999 = vrcp.f32 %v1309_v35  ;;  %6273 = vmatpush3.bf16.msra.mxu1 %v7915_v22  ;;  %6274 = vmatprep.mubr.msk.bf16.mxu1 %vm7470_vm0, %v7469_v28 }
 0x4d5   : > { %6284 = vmatprep.subr.bf16.mxu1 %v7469_v28  ;;  %v1572_v14 = vpop.permute.xlu0 %1571 }
 0x4d6   : > { %v1577_v43 = vsel %vm1048_vm1, %v1572_v14, 0 }
 0x4d7   : > { %v1569_v16 = vpop.permute.xlu1 %1568 }
 0x4db   : > { %v1678_v17 = vpop.permute.xlu1 %1677 }
 0x4dc   : > { %v6998_v6 = vpop.eup %6997  ;;  %v1683_v42 = vsel %vm1048_vm1, %v1678_v17, 0 }
 0x4dd   : > { %v1324_v10 = vmul.f32 %v6998_v6, %v6990_v44 }
 0x4de   : > { %v7000_v34 = vpop.eup %6999 }
 0x4df   : > { %v1325_v11 = vmul.f32 %v7000_v34, %v6992_v47  ;;  %v1675_v20 = vpop.permute.xlu1 %1674 }
 0x4e1   : > { %v1329_v15 = vpack.c.bf16 %v1325_v11, %v1324_v10 }
 0x4e3   : > { %6275 = vmatmul.mubr.msk.bf16.vlgmr.msra.gmra.mrb[40].mxu1 %vm1237_vm2, %v1329_v15 }
 0x4e4   : > { %6285 = vmatpush3.bf16.xpose.msra.mxu1 %v1577_v43  ;;  %6286 = vmatprep.mubr.msk.bf16.mxu1 %vm7470_vm0, %v7469_v28 }
 0x4e5   : > { %6296 = vmatprep.subr.bf16.mxu1 %v7469_v28 }
 0x4eb   : > { %6287 = vmatmul.mubr.msk.bf16.vlgmr.msra.gmra.mrb[44].mxu1 %vm1048_vm1, %v1569_v16 }
 0x4ec   : > { %6297 = vmatpush3.bf16.xpose.msra.mxu1 %v1683_v42  ;;  %6298 = vmatprep.mubr.msk.bf16.mxu1 %vm7470_vm0, %v7469_v28 }
 0x4ed   : > { %6308 = vmatprep.subr.bf16.mxu1 %v7469_v28 }
 0x4f3   : > { %6299 = vmatmul.mubr.msk.bf16.vlgmr.msra.gmra.mrb[48].mxu1 %vm1048_vm1, %v1675_v20 }
 0x4f4   : > { %6310 = vmatprep.mubr.msk.bf16.mxu1 %vm7470_vm0, %v7469_v28 }
 0x506   : > { %v1240_v23 = vpop.xlane.xlu0 %1239 }
 0x507   : > { %v1262_v24 = vsub.f32 %v7937_v48, %v1240_v23 }
 0x509   : > { %v1270_v30 = vmul.f32 1.442695, %v1262_v24 }
 0x50a   : > { %v1252_v31 = vpop.xlane.xlu0 %1251 }
 0x50b   : > { %7001 = vpow2.f32 %v1270_v30  ;;  %v1266_v32 = vsub.f32 %v7943_v19, %v1252_v31 }
 0x50d   : > { %v1278_v36 = vmul.f32 1.442695, %v1266_v32 }
 0x50e   : > { %v1255_v39 = vpop.xlane.xlu0 %1254 }
 0x50f   : > { %7003 = vpow2.f32 %v1278_v36  ;;  %v1267_v44 = vsub.f32 %v7945_v63, %v1255_v39 }
 0x510   : > { %v1243_v45 = vpop.xlane.xlu1 %1242 }
 0x511   : > { %v1263_v47 = vsub.f32 %v7939_v52, %v1243_v45  ;;  %v1280_v49 = vmul.f32 1.442695, %v1267_v44 }
 0x513   : > { %v1272_v53 = vmul.f32 1.442695, %v1263_v47 }
 0x515   : > { %v7002_v55 = vpop.eup %7001  ;;  %7005 = vpow2.f32 %v1272_v53 }
 0x516   : > { %v1286_v56 = vsel %vm1237_vm2, %v7002_v55, 0.0  ;;  %7007 = vpow2.f32 %v1280_v49 }
 0x517   : > { %1287 = vadd.xlane.f32.xlu0 %v1286_v56 }
 0x519   : > { %v7004_v48 = vpop.eup %7003 }
 0x51a   : > { %v1298_v57 = vsel %vm1237_vm2, %v7004_v48, 0.0 }
 0x51b   : > { %1299 = vadd.xlane.f32.xlu0 %v1298_v57 }
 0x51f   : > { %v7006_v19 = vpop.eup %7005 }
 0x520   : > { %v1289_v58 = vsel %vm1237_vm2, %v7006_v19, 0.0  ;;  %v7008_v59 = vpop.eup %7007 }
 0x521   : > { %1290 = vadd.xlane.f32.xlu1 %v1289_v58  ;;  %v1301_v63 = vsel %vm1237_vm2, %v7008_v59, 0.0 }
 0x525   : > { %1302 = vadd.xlane.f32.xlu1 %v1301_v63 }
 0x531   : > { %1518 = vrot.lane.b32.xlu0 %v7859_v37, %s7471_s18 }
 0x536   : > { %1515 = vrot.lane.b32.xlu1 %v7857_v8, %s7471_s18 }
 0x53a   : > { %1624 = vrot.lane.b32.xlu1 %v7885_v61, %s7471_s18 }
 0x53e   : > { %1621 = vrot.lane.b32.xlu1 %v7883_v27, %s7471_s18 }
 0x5a4   : > { %v1288_v4 = vpop.xlane.xlu0 %1287 }
 0x5a5   : > { %7009 = vrcp.f32 %v1288_v4 }
 0x5a6   : > { %v8003_v52 = vpop.f32.mrb[36].mxu1 }
 0x5a7   : > { %v6264_v60 = vpop.f32.mrb[37].mxu1 }
 0x5a8   : > { %v8005_v62 = vpop.f32.mrb[38].mxu1  ;;  %v1300_v35 = vpop.xlane.xlu0 %1299 }
 0x5a9   : > { %v1507_v2 = vpack.c.bf16 %v8005_v62, %v8003_v52  ;;  %v6265_v3 = vpop.f32.mrb[39].mxu1 }
 0x5ac   : > { %v1519_v49 = vpop.permute.xlu0 %1518 }
 0x5ad   : > { %v1524_v57 = vsel %vm1048_vm1, %v1519_v49, 0 }
 0x5ae   : > { %v1291_v5 = vpop.xlane.xlu1 %1290 }
 0x5af   : > { %7011 = vrcp.f32 %v1291_v5  ;;  %v7010_v10 = vpop.eup %7009 }
 0x5b0   : > { %v1318_v17 = vmul.f32 %v7010_v10, %v7002_v55 }
 0x5b2   : > { %v1303_v6 = vpop.xlane.xlu1 %1302 }
 0x5b3   : > { %7013 = vrcp.f32 %v1303_v6 }
 0x5b4   : > { %7015 = vrcp.f32 %v1300_v35 }
 0x5b6   : > { %v8009_v34 = vpop.f32.mrb[40].mxu1  ;;  %v1516_v55 = vpop.permute.xlu1 %1515 }
 0x5b7   : > { %v6276_v11 = vpop.f32.mrb[41].mxu1 }
 0x5b8   : > { %v8011_v14 = vpop.f32.mrb[42].mxu1 }
 0x5b9   : > { %v7012_v15 = vpop.eup %7011  ;;  %v6277_v43 = vpop.f32.mrb[43].mxu1 }
 0x5ba   : > { %v1319_v42 = vmul.f32 %v7012_v15, %v7006_v19  ;;  %v1625_v60 = vpop.permute.xlu1 %1624 }
 0x5bb   : > { %v1630_v3 = vsel %vm1048_vm1, %v1625_v60, 0 }
 0x5bc   : > { %v1326_v20 = vpack.c.bf16 %v1319_v42, %v1318_v17 }
 0x5bd   : > { %v7014_v23 = vpop.eup %7013 }
 0x5be   : > { %6257 = vmatmul.mubr.msk.bf16.vlgmr.msra.gmra.mrb[28].mxu0 %vm1237_vm2, %v1326_v20  ;;  %v1613_v24 = vpop.f32.mrb[44].mxu1  ;;  %v7016_v30 = vpop.eup %7015  ;;  %v1323_v36 = vmul.f32 %v7014_v23, %v7008_v59 }
 0x5bf   : > { %6267 = vmatpush3.bf16.msra.mxu0 %v7933_v46  ;;  %v6288_v31 = vpop.f32.mrb[45].mxu1  ;;  %v1732_v32 = vsel %vm1237_vm2, %v1613_v24, -inf  ;;  %6268 = vmatprep.mubr.msk.bf16.mxu0 %vm7470_vm0, %v7469_v28  ;;  %v1322_v47 = vmul.f32 %v7016_v30, %v7004_v48  ;;  %v1622_v4 = vpop.permute.xlu1 %1621 }
 0x5c0   : > { %1733 = vmax.xlane.f32.xlu0 %v1732_v32  ;;  %v1616_v39 = vpop.f32.mrb[46].mxu1  ;;  %6278 = vmatprep.subr.bf16.mxu0 %v7469_v28 }
 0x5c1   : > { %v6289_v44 = vpop.f32.mrb[47].mxu1  ;;  %v1735_v45 = vsel %vm1237_vm2, %v1616_v39, -inf  ;;  %v1328_v53 = vpack.c.bf16 %v1323_v36, %v1322_v47 }
 0x5c2   : > { %1736 = vmax.xlane.f32.xlu1 %v1735_v45 }
 0x5c6   : > { %6269 = vmatmul.mubr.msk.bf16.vlgmr.msra.gmra.mrb[32].mxu0 %vm1237_vm2, %v1328_v53  ;;  %v1719_v56 = vpop.f32.mrb[48].mxu1 }
 0x5c7   : > { %v6300_v19 = vpop.f32.mrb[49].mxu1  ;;  %v1744_v58 = vsel %vm1237_vm2, %v1719_v56, -inf  ;;  %6280 = vmatprep.mubr.msk.bf16.mxu0 %vm7470_vm0, %v7469_v28 }
 0x5c8   : > { %6279 = vmatpush3.bf16.xpose.msra.mxu0 %v1524_v57  ;;  %1745 = vmax.xlane.f32.xlu0 %v1744_v58  ;;  %v1722_v59 = vpop.f32.mrb[50].mxu1 }
 0x5c9   : > { %v6301_v63 = vpop.f32.mrb[51].mxu1  ;;  %6290 = vmatprep.subr.bf16.mxu0 %v7469_v28  ;;  %v1747_v48 = vsel %vm1237_vm2, %v1722_v59, -inf }
 0x5cc   : > { %1748 = vmax.xlane.f32.xlu0 %v1747_v48 }
 0x5cf   : > { %6281 = vmatmul.mubr.msk.bf16.vlgmr.msra.gmra.mrb[36].mxu0 %vm1048_vm1, %v1516_v55 }
 0x5d0   : > { %6291 = vmatpush3.bf16.xpose.msra.mxu0 %v1630_v3  ;;  %6292 = vmatprep.mubr.msk.bf16.mxu0 %vm7470_vm0, %v7469_v28 }
 0x5d1   : > { %6302 = vmatprep.subr.bf16.mxu0 %v7469_v28 }
 0x5d7   : > { %6293 = vmatmul.mubr.msk.bf16.vlgmr.msra.gmra.mrb[40].mxu0 %vm1048_vm1, %v1622_v4 }
 0x5d8   : > { %6304 = vmatprep.mubr.msk.bf16.mxu0 %vm7470_vm0, %v7469_v28 }
 0x64d   : > { %v1734_v5 = vpop.xlane.xlu0 %1733 }
 0x64e   : > { %v1752_v35 = vsub.f32 %v1613_v24, %v1734_v5 }
 0x64f   : > { %v1737_v6 = vpop.xlane.xlu1 %1736 }
 0x650   : > { %v1762_v10 = vmul.f32 1.442695, %v1752_v35  ;;  %v1753_v11 = vsub.f32 %v1616_v39, %v1737_v6 }
 0x652   : > { %7017 = vpow2.f32 %v1762_v10  ;;  %v1764_v15 = vmul.f32 1.442695, %v1753_v11 }
 0x654   : > { %7019 = vpow2.f32 %v1764_v15 }
 0x655   : > { %v1746_v43 = vpop.xlane.xlu0 %1745 }
 0x656   : > { %v1756_v17 = vsub.f32 %v1719_v56, %v1746_v43 }
 0x658   : > { %v1770_v42 = vmul.f32 1.442695, %v1756_v17 }
 0x659   : > { %v1749_v36 = vpop.xlane.xlu0 %1748 }
 0x65a   : > { %7021 = vpow2.f32 %v1770_v42  ;;  %v1757_v39 = vsub.f32 %v1722_v59, %v1749_v36 }
 0x65c   : > { %v7018_v20 = vpop.eup %7017  ;;  %v1772_v44 = vmul.f32 1.442695, %v1757_v39 }
 0x65d   : > { %v1780_v23 = vsel %vm1237_vm2, %v7018_v20, 0.0 }
 0x65e   : > { %v7020_v30 = vpop.eup %7019  ;;  %1781 = vadd.xlane.f32.xlu0 %v1780_v23  ;;  %7023 = vpow2.f32 %v1772_v44 }
 0x65f   : > { %v1783_v31 = vsel %vm1237_vm2, %v7020_v30, 0.0 }
 0x660   : > { %1784 = vadd.xlane.f32.xlu1 %v1783_v31 }
 0x664   : > { %v8039_v32 = vpop.eup %7021 }
 0x665   : > { %v1792_v24 = vsel %vm1237_vm2, %v8039_v32, 0.0 }
 0x666   : > { %1793 = vadd.xlane.f32.xlu0 %v1792_v24 }
 0x668   : > { %v7024_v45 = vpop.eup %7023 }
 0x669   : > { %v1795_v57 = vsel %vm1237_vm2, %v7024_v45, 0.0 }
 0x671   : > { %1963 = vrot.lane.b32.xlu1 %v7915_v22, %s7471_s18 }
 0x67c   : > { %1867 = vrot.lane.b32.xlu0 %v7927_v33, %s7471_s18 }
 0x680   : > { %2249 = vrot.lane.b32.xlu0 %v7870_v51, %s7472_s27 }
 0x684   : > { %2300 = vrot.lane.b32.xlu0 %v7885_v61, %s7472_s27 }
 0x688   : > { %2351 = vrot.lane.b32.xlu0 %v7900_v9, %s7472_s27 }
 0x691   : > { %v8053_v47 = vpop.f32.mrb[28].mxu0 }
 0x692   : > { %v6258_v49 = vpop.f32.mrb[29].mxu0 }
 0x693   : > { %v8055_v53 = vpop.f32.mrb[30].mxu0 }
 0x694   : > { %v1506_v55 = vpack.c.bf16 %v8055_v53, %v8053_v47  ;;  %v6259_v56 = vpop.f32.mrb[31].mxu0 }
 0x695   : > { %1796 = vadd.xlane.f32.xlu1 %v1795_v57 }
 0x699   : > { %v8060_v19 = vpop.f32.mrb[32].mxu0 }
 0x69a   : > { %v6270_v58 = vpop.f32.mrb[33].mxu0 }
 0x69b   : > { %v8062_v59 = vpop.f32.mrb[34].mxu0 }
 0x69c   : > { %v6271_v48 = vpop.f32.mrb[35].mxu0 }
 0x6a2   : > { %v1560_v60 = vpop.f32.mrb[36].mxu0 }
 0x6a3   : > { %v6282_v3 = vpop.f32.mrb[37].mxu0  ;;  %v1726_v35 = vsel %vm1237_vm2, %v1560_v60, -inf }
 0x6a4   : > { %v8066_v4 = vpop.f32.mrb[38].mxu0 }
 0x6a5   : > { %v6283_v5 = vpop.f32.mrb[39].mxu0  ;;  %v1729_v42 = vsel %vm1237_vm2, %v8066_v4, -inf }
 0x6a6   : > { %2198 = vrot.lane.b32.xlu1 %v7859_v37, %s7472_s27 }
 0x6a7   : > { %1727 = vmax.xlane.f32.xlu0 %v1726_v35 }
 0x6aa   : > { %v1666_v6 = vpop.f32.mrb[40].mxu0  ;;  %2196 = vrot.lane.b32.xlu1 %v7857_v8, %s7472_s27 }
 0x6ab   : > { %v6294_v10 = vpop.f32.mrb[41].mxu0  ;;  %v1738_v11 = vsel %vm1237_vm2, %v1666_v6, -inf }
 0x6ac   : > { %1739 = vmax.xlane.f32.xlu0 %v1738_v11  ;;  %v8074_v15 = vpop.f32.mrb[42].mxu0 }
 0x6ad   : > { %v6295_v43 = vpop.f32.mrb[43].mxu0  ;;  %v1741_v17 = vsel %vm1237_vm2, %v8074_v15, -inf }
 0x6ae   : > { %2247 = vrot.lane.b32.xlu1 %v7868_v50, %s7472_s27 }
 0x6b0   : > { %1742 = vmax.xlane.f32.xlu0 %v1741_v17 }
 0x6b2   : > { %2298 = vrot.lane.b32.xlu1 %v7883_v27, %s7472_s27 }
 0x6b6   : > { %2349 = vrot.lane.b32.xlu1 %v7898_v7, %s7472_s27 }
 0x6da   : > { %1730 = vmax.xlane.f32.xlu1 %v1729_v42 }
 0x6eb   : > { %v1782_v23 = vpop.xlane.xlu0 %1781 }
 0x6ec   : > { %7025 = vrcp.f32 %v1782_v23 }
 0x6ed   : > { %v1785_v31 = vpop.xlane.xlu1 %1784 }
 0x6ee   : > { %7027 = vrcp.f32 %v1785_v31 }
 0x6f1   : > { %v1964_v58 = vpop.permute.xlu1 %1963 }
 0x6f3   : > { %v1794_v24 = vpop.xlane.xlu0 %1793 }
 0x6f4   : > { %7029 = vrcp.f32 %v1794_v24 }
 0x6f6   : > { %v7026_v36 = vpop.eup %7025 }
 0x6f7   : > { %v1868_v39 = vpop.permute.xlu0 %1867  ;;  %v1808_v49 = vmul.f32 %v7026_v36, %v7018_v20 }
 0x6f8   : > { %v7028_v44 = vpop.eup %7027  ;;  %6309 = vmatpush3.bf16.msra.mxu1 %v1868_v39 }
 0x6f9   : > { %v1809_v56 = vmul.f32 %v7028_v44, %v7020_v30  ;;  %6320 = vmatprep.subr.bf16.mxu1 %v7469_v28 }
 0x6fb   : > { %v1815_v57 = vpack.c.bf16 %v1809_v56, %v1808_v49  ;;  %v2250_v3 = vpop.permute.xlu0 %2249 }
 0x6fd   : > { %6311 = vmatmul.mubr.msk.bf16.vlgmr.msra.gmra.mrb[52].mxu1 %vm1237_vm2, %v1815_v57 }
 0x6fe   : > { %6321 = vmatpush3.bf16.msra.mxu1 %v1964_v58  ;;  %6322 = vmatprep.mubr.msk.bf16.mxu1 %vm7470_vm0, %v7469_v28  ;;  %v7030_v35 = vpop.eup %7029 }
 0x6ff   : > { %6350 = vmatprep.subr.bf16.mxu1 %v7469_v28  ;;  %v2301_v5 = vpop.permute.xlu0 %2300  ;;  %v1812_v30 = vmul.f32 %v7030_v35, %v8039_v32 }
 0x703   : > { %v2352_v43 = vpop.permute.xlu0 %2351 }
 0x722   : > { %v1797_v48 = vpop.xlane.xlu1 %1796 }
 0x723   : > { %7031 = vrcp.f32 %v1797_v48 }
 0x726   : > { %v2199_v11 = vpop.permute.xlu1 %2198 }
 0x727   : > { %v2204_v42 = vsel %vm1048_vm1, %v2199_v11, 0 }
 0x72a   : > { %v2197_v36 = vpop.permute.xlu1 %2196 }
 0x72d   : > { %v7032_v20 = vpop.eup %7031 }
 0x72e   : > { %v1813_v10 = vmul.f32 %v7032_v20, %v7024_v45  ;;  %v2255_v45 = vsel %vm1048_vm1, %v2250_v3, 0  ;;  %v2248_v49 = vpop.permute.xlu1 %2247  ;;  %v2357_v3 = vsel %vm1048_vm1, %v2352_v43, 0 }
 0x730   : > { %v1817_v17 = vpack.c.bf16 %v1813_v10, %v1812_v30 }
 0x732   : > { %6323 = vmatmul.mubr.msk.bf16.vlgmr.msra.gmra.mrb[56].mxu1 %vm1237_vm2, %v1817_v17  ;;  %v2299_v58 = vpop.permute.xlu1 %2298 }
 0x733   : > { %6351 = vmatpush3.bf16.xpose.msra.mxu1 %v2204_v42  ;;  %6352 = vmatprep.mubr.msk.bf16.mxu1 %vm7470_vm0, %v7469_v28 }
 0x734   : > { %v1728_v23 = vpop.xlane.xlu0 %1727  ;;  %6356 = vmatprep.subr.bf16.mxu1 %v7469_v28 }
 0x735   : > { %v1750_v31 = vsub.f32 %v1560_v60, %v1728_v23  ;;  %v2306_v60 = vsel %vm1048_vm1, %v2301_v5, 0 }
 0x736   : > { %v2350_v5 = vpop.permute.xlu1 %2349 }
 0x737   : > { %v1758_v24 = vmul.f32 1.442695, %v1750_v31 }
 0x739   : > { %7033 = vpow2.f32 %v1758_v24  ;;  %v1740_v32 = vpop.xlane.xlu0 %1739 }
 0x73a   : > { %v1754_v39 = vsub.f32 %v1666_v6, %v1740_v32  ;;  %6353 = vmatmul.mubr.msk.bf16.vlgmr.msra.gmra.mrb[60].mxu1 %vm1048_vm1, %v2197_v36 }
 0x73b   : > { %6357 = vmatpush3.bf16.xpose.msra.mxu1 %v2255_v45  ;;  %6358 = vmatprep.mubr.msk.bf16.mxu1 %vm7470_vm0, %v7469_v28 }
 0x73c   : > { %v1766_v44 = vmul.f32 1.442695, %v1754_v39  ;;  %6362 = vmatprep.subr.bf16.mxu1 %v7469_v28 }
 0x73d   : > { %v1743_v35 = vpop.xlane.xlu0 %1742 }
 0x73e   : > { %7035 = vpow2.f32 %v1766_v44  ;;  %v1755_v20 = vsub.f32 %v8074_v15, %v1743_v35 }
 0x740   : > { %v1768_v11 = vmul.f32 1.442695, %v1755_v20 }
 0x742   : > { %6359 = vmatmul.mubr.msk.bf16.vlgmr.msra.gmra.mrb[64].mxu1 %vm1048_vm1, %v2248_v49 }
 0x743   : > { %v8104_v56 = vpop.eup %7033  ;;  %6363 = vmatpush3.bf16.xpose.msra.mxu1 %v2306_v60  ;;  %6364 = vmatprep.mubr.msk.bf16.mxu1 %vm7470_vm0, %v7469_v28 }
 0x744   : > { %v1774_v6 = vsel %vm1237_vm2, %v8104_v56, 0.0  ;;  %6368 = vmatprep.subr.bf16.mxu1 %v7469_v28 }
 0x745   : > { %1775 = vadd.xlane.f32.xlu0 %v1774_v6 }
 0x748   : > { %v8111_v57 = vpop.eup %7035 }
 0x749   : > { %v1786_v48 = vsel %vm1237_vm2, %v8111_v57, 0.0 }
 0x74a   : > { %1787 = vadd.xlane.f32.xlu0 %v1786_v48  ;;  %6365 = vmatmul.mubr.msk.bf16.vlgmr.msra.gmra.mrb[68].mxu1 %vm1048_vm1, %v2299_v58 }
 0x74b   : > { %6369 = vmatpush3.bf16.xpose.msra.mxu1 %v2357_v3  ;;  %6370 = vmatprep.mubr.msk.bf16.mxu1 %vm7470_vm0, %v7469_v28 }
 0x74c   : > { %6380 = vmatprep.subr.bf16.mxu1 %v7469_v28 }
 0x752   : > { %6371 = vmatmul.mubr.msk.bf16.vlgmr.msra.gmra.mrb[72].mxu1 %vm1048_vm1, %v2350_v5 }
 0x753   : > { %6382 = vmatprep.mubr.msk.bf16.mxu1 %vm7470_vm0, %v7469_v28 }
 0x760   : > { %1819 = vrot.lane.b32.xlu0 %v7913_v21, %s7471_s18 }
 0x767   : > { %v1731_v30 = vpop.xlane.xlu1 %1730 }
 0x768   : > { %v1751_v10 = vsub.f32 %v8066_v4, %v1731_v30 }
 0x76a   : > { %v1760_v43 = vmul.f32 1.442695, %v1751_v10 }
 0x76c   : > { %7037 = vpow2.f32 %v1760_v43 }
 0x76d   : > { %7039 = vpow2.f32 %v1768_v11 }
 0x776   : > { %v7038_v17 = vpop.eup %7037 }
 0x777   : > { %v1777_v42 = vsel %vm1237_vm2, %v7038_v17, 0.0  ;;  %v7040_v23 = vpop.eup %7039 }
 0x778   : > { %1778 = vadd.xlane.f32.xlu1 %v1777_v42  ;;  %v1789_v31 = vsel %vm1237_vm2, %v7040_v23, 0.0 }
 0x77c   : > { %1790 = vadd.xlane.f32.xlu1 %v1789_v31 }
 0x78d   : > { %1915 = vrot.lane.b32.xlu1 %v7933_v46, %s7471_s18 }
 0x7d0   : > { %v8131_v24 = vpop.f32.mrb[52].mxu1 }
 0x7d1   : > { %v6312_v15 = vpop.f32.mrb[53].mxu1 }
 0x7d2   : > { %v8133_v36 = vpop.f32.mrb[54].mxu1  ;;  %v1776_v4 = vpop.xlane.xlu0 %1775 }
 0x7d3   : > { %v2011_v32 = vpack.c.bf16 %v8133_v36, %v8131_v24  ;;  %v6313_v45 = vpop.f32.mrb[55].mxu1  ;;  %7041 = vrcp.f32 %v1776_v4  ;;  %v8794_v24 = vpack.c.bf16 %v8062_v59, %v8060_v19  ;;  %v8795_v36 = vpack.c.bf16 %v8011_v14, %v8009_v34 }
 0x7d7   : > { %v1788_v39 = vpop.xlane.xlu0 %1787 }
 0x7db   : > { %v1820_v44 = vpop.permute.xlu0 %1819 }
 0x7dc   : > { %6303 = vmatpush3.bf16.msra.mxu0 %v1820_v44 }
 0x7dd   : > { %6314 = vmatprep.subr.bf16.mxu0 %v7469_v28  ;;  %v7042_v20 = vpop.eup %7041 }
 0x7de   : > { %v1806_v15 = vmul.f32 %v7042_v20, %v8104_v56 }
 0x805   : > { %v8138_v49 = vpop.f32.mrb[56].mxu1  ;;  %v1779_v60 = vpop.xlane.xlu1 %1778 }
 0x806   : > { %7043 = vrcp.f32 %v1779_v60  ;;  %v6324_v6 = vpop.f32.mrb[57].mxu1 }
 0x807   : > { %v8140_v58 = vpop.f32.mrb[58].mxu1 }
 0x808   : > { %v2013_v48 = vpack.c.bf16 %v8140_v58, %v8138_v49  ;;  %v6325_v3 = vpop.f32.mrb[59].mxu1 }
 0x809   : > { %v1791_v5 = vpop.xlane.xlu1 %1790 }
 0x80a   : > { %7045 = vrcp.f32 %v1791_v5 }
 0x80b   : > { %7047 = vrcp.f32 %v1788_v39 }
 0x80d   : > { %v2240_v35 = vpop.f32.mrb[60].mxu1  ;;  %v1916_v60 = vpop.permute.xlu1 %1915 }
 0x80e   : > { %v6354_v30 = vpop.f32.mrb[61].mxu1  ;;  %v2400_v10 = vsel %vm1237_vm2, %v2240_v35, -inf }
 0x80f   : > { %v2243_v11 = vpop.f32.mrb[62].mxu1  ;;  %2401 = vmax.xlane.f32.xlu1 %v2400_v10 }
 0x810   : > { %v7044_v43 = vpop.eup %7043  ;;  %v6355_v42 = vpop.f32.mrb[63].mxu1  ;;  %v2403_v31 = vsel %vm1237_vm2, %v2243_v11, -inf }
 0x811   : > { %v1807_v4 = vmul.f32 %v7044_v43, %v7038_v17  ;;  %2404 = vmax.xlane.f32.xlu0 %v2403_v31 }
 0x813   : > { %v1814_v45 = vpack.c.bf16 %v1807_v4, %v1806_v15 }
 0x814   : > { %v7046_v44 = vpop.eup %7045 }
 0x815   : > { %6305 = vmatmul.mubr.msk.bf16.vlgmr.msra.gmra.mrb[44].mxu0 %vm1237_vm2, %v1814_v45  ;;  %v2291_v39 = vpop.f32.mrb[64].mxu1  ;;  %v7048_v6 = vpop.eup %7047  ;;  %v1811_v30 = vmul.f32 %v7046_v44, %v7040_v23 }
 0x816   : > { %6315 = vmatpush3.bf16.msra.mxu0 %v1916_v60  ;;  %v6360_v3 = vpop.f32.mrb[65].mxu1  ;;  %v2406_v5 = vsel %vm1237_vm2, %v2291_v39, -inf  ;;  %6316 = vmatprep.mubr.msk.bf16.mxu0 %vm7470_vm0, %v7469_v28  ;;  %v1810_v20 = vmul.f32 %v7048_v6, %v8111_v57 }
 0x817   : > { %v2294_v10 = vpop.f32.mrb[66].mxu1  ;;  %2407 = vmax.xlane.f32.xlu0 %v2406_v5 }
 0x818   : > { %v6361_v56 = vpop.f32.mrb[67].mxu1  ;;  %v2409_v17 = vsel %vm1237_vm2, %v2294_v10, -inf  ;;  %v1816_v43 = vpack.c.bf16 %v1811_v30, %v1810_v20  ;;  %v6953_v30 = vld [vmem:[#allocation10 + $0x10] sm:$0xff]  }
 0x819   : > { %2410 = vmax.xlane.f32.xlu1 %v2409_v17  ;;  %6326 = vmatprep.subr.bf16.mxu0 %v6953_v30  ;;  %v6954_v56 = vld [vmem:[#allocation10 + $0x18] sm:$0xff]   ;;  %v8161_v17 = vld [vmem:[#allocation10] sm:$0xff]  }
 0x81d   : > { %6317 = vmatmul.mubr.msk.bf16.vlgmr.msra.gmra.mrb[48].mxu0 %vm1237_vm2, %v1816_v43  ;;  %v2342_v42 = vpop.f32.mrb[68].mxu1 }
 0x81e   : > { %v6366_v31 = vpop.f32.mrb[69].mxu1  ;;  %v2412_v15 = vsel %vm1237_vm2, %v2342_v42, -inf  ;;  %6327 = vmatpush3.bf16.msra.mxu0 %v6953_v30 }
 0x81f   : > { %v2345_v4 = vpop.f32.mrb[70].mxu1  ;;  %2413 = vmax.xlane.f32.xlu0 %v2412_v15  ;;  %6328 = vmatprep.subr.bf16.mxu0 %v6954_v56 }
 0x820   : > { %v6367_v45 = vpop.f32.mrb[71].mxu1  ;;  %v2415_v23 = vsel %vm1237_vm2, %v2345_v4, -inf }
 0x821   : > { %2416 = vmax.xlane.f32.xlu1 %v2415_v23 }
 0x822   : > { %6329 = vmatpush3.bf16.msra.mxu0 %v6954_v56 }
 0x823   : > { %6338 = vmatprep.subr.bf16.mxu0 %v8161_v17 }
 0x825   : > { %v2393_v44 = vpop.f32.mrb[72].mxu1 }
 0x826   : > { %v6372_v60 = vpop.f32.mrb[73].mxu1  ;;  %v2418_v3 = vsel %vm1237_vm2, %v2393_v44, -inf }
 0x827   : > { %v8157_v5 = vpop.f32.mrb[74].mxu1  ;;  %2419 = vmax.xlane.f32.xlu0 %v2418_v3 }
 0x828   : > { %v6373_v57 = vpop.f32.mrb[75].mxu1  ;;  %v2421_v6 = vsel %vm1237_vm2, %v8157_v5, -inf }
 0x829   : > { %2422 = vmax.xlane.f32.xlu1 %v2421_v6 }
 0x89c   : > { %v2402_v20 = vpop.xlane.xlu1 %2401 }
 0x89d   : > { %v2424_v43 = vsub.f32 %v2240_v35, %v2402_v20 }
 0x89e   : > { %v2405_v31 = vpop.xlane.xlu0 %2404 }
 0x89f   : > { %v2432_v15 = vmul.f32 1.442695, %v2424_v43  ;;  %v2425_v45 = vsub.f32 %v2243_v11, %v2405_v31 }
 0x8a1   : > { %7049 = vpow2.f32 %v2432_v15  ;;  %v2434_v23 = vmul.f32 1.442695, %v2425_v45 }
 0x8a3   : > { %7051 = vpow2.f32 %v2434_v23 }
 0x8a4   : > { %v2408_v60 = vpop.xlane.xlu0 %2407 }
 0x8a5   : > { %v2426_v3 = vsub.f32 %v2291_v39, %v2408_v60 }
 0x8a6   : > { %v2411_v57 = vpop.xlane.xlu1 %2410 }
 0x8a7   : > { %v2436_v6 = vmul.f32 1.442695, %v2426_v3  ;;  %v2427_v30 = vsub.f32 %v2294_v10, %v2411_v57 }
 0x8a9   : > { %7053 = vpow2.f32 %v2436_v6  ;;  %v2438_v16 = vmul.f32 1.442695, %v2427_v30 }
 0x8ab   : > { %v8164_v56 = vpop.eup %7049  ;;  %7055 = vpow2.f32 %v2438_v16 }
 0x8ac   : > { %v2414_v63 = vpop.xlane.xlu0 %2413  ;;  %v2448_v35 = vsel %vm1237_vm2, %v8164_v56, 0.0 }
 0x8ad   : > { %v8168_v20 = vpop.eup %7051  ;;  %v2428_v11 = vsub.f32 %v2342_v42, %v2414_v63  ;;  %2449 = vadd.xlane.f32.xlu0 %v2448_v35 }
 0x8ae   : > { %v2417_v43 = vpop.xlane.xlu1 %2416  ;;  %v2451_v39 = vsel %vm1237_vm2, %v8168_v20, 0.0 }
 0x8af   : > { %v2440_v31 = vmul.f32 1.442695, %v2428_v11  ;;  %v2429_v15 = vsub.f32 %v2345_v4, %v2417_v43  ;;  %2452 = vadd.xlane.f32.xlu1 %v2451_v39 }
 0x8b1   : > { %7057 = vpow2.f32 %v2440_v31  ;;  %v2442_v10 = vmul.f32 1.442695, %v2429_v15 }
 0x8b3   : > { %v8172_v45 = vpop.eup %7053  ;;  %7059 = vpow2.f32 %v2442_v10 }
 0x8b4   : > { %v2420_v16 = vpop.xlane.xlu0 %2419  ;;  %v2454_v23 = vsel %vm1237_vm2, %v8172_v45, 0.0 }
 0x8b5   : > { %v8176_v60 = vpop.eup %7055  ;;  %v2430_v63 = vsub.f32 %v2393_v44, %v2420_v16  ;;  %2455 = vadd.xlane.f32.xlu0 %v2454_v23 }
 0x8b6   : > { %v2457_v42 = vsel %vm1237_vm2, %v8176_v60, 0.0  ;;  %v2423_v11 = vpop.xlane.xlu1 %2422 }
 0x8b7   : > { %v2444_v3 = vmul.f32 1.442695, %v2430_v63  ;;  %2458 = vadd.xlane.f32.xlu1 %v2457_v42  ;;  %v2431_v43 = vsub.f32 %v8157_v5, %v2423_v11  ;;  %v6956_v63 = vld [vmem:[#allocation10 + $0x8] sm:$0xff]  }
 0x8b9   : > { %7061 = vpow2.f32 %v2444_v3  ;;  %v2446_v39 = vmul.f32 1.442695, %v2431_v43 }
 0x8bb   : > { %v8180_v4 = vpop.eup %7057  ;;  %7063 = vpow2.f32 %v2446_v39 }
 0x8bc   : > { %v2460_v57 = vsel %vm1237_vm2, %v8180_v4, 0.0 }
 0x8bd   : > { %v8184_v6 = vpop.eup %7059  ;;  %2461 = vadd.xlane.f32.xlu0 %v2460_v57 }
 0x8be   : > { %v2463_v30 = vsel %vm1237_vm2, %v8184_v6, 0.0 }
 0x8bf   : > { %2464 = vadd.xlane.f32.xlu1 %v2463_v30 }
 0x8c3   : > { %v8188_v44 = vpop.eup %7061 }
 0x8c4   : > { %v2466_v35 = vsel %vm1237_vm2, %v8188_v44, 0.0 }
 0x8c5   : > { %2467 = vadd.xlane.f32.xlu0 %v2466_v35  ;;  %v8213_v3 = vpop.eup %7063 }
 0x8d0   : > { %2539 = vrot.lane.b32.xlu1 %v7927_v33, %s7472_s27 }
 0x8d4   : > { %2586 = vrot.lane.b32.xlu1 %v7933_v46, %s7472_s27 }
 0x8db   : > { %2492 = vrot.lane.b32.xlu0 %v7913_v21, %s7472_s27 }
 0x8df   : > { %2787 = vrot.lane.b32.xlu0 %v7859_v37, %s7473_s24 }
 0x8e3   : > { %2838 = vrot.lane.b32.xlu0 %v7870_v51, %s7473_s24 }
 0x8e7   : > { %2836 = vrot.lane.b32.xlu0 %v7868_v50, %s7473_s24 }
 0x8e8   : > { %v1859_v31 = vpop.f32.mrb[44].mxu0 }
 0x8e9   : > { %v6306_v15 = vpop.f32.mrb[45].mxu0 }
 0x8ea   : > { %v1862_v10 = vpop.f32.mrb[46].mxu0 }
 0x8eb   : > { %v2010_v16 = vpack.c.bf16 %v1862_v10, %v1859_v31  ;;  %2887 = vrot.lane.b32.xlu0 %v7883_v27, %s7473_s24  ;;  %v6307_v23 = vpop.f32.mrb[47].mxu0  ;;  %v2469_v27 = vsel %vm1237_vm2, %v8213_v3, 0.0 }
 0x8ed   : > { %6330 = vmatprep.mubr.msk.bf16.mxu0 %vm1048_vm1, %v2010_v16 }
 0x8ee   : > { %6331 = vmatmul.mubr.msk.bf16.vlgmr.msra.gmra.mrb[52].mxu0 %vm1048_vm1, %v2011_v32 }
 0x8ef   : > { %6339 = vmatpush3.bf16.msra.mxu0 %v8161_v17 }
 0x8f0   : > { %v1955_v37 = vpop.f32.mrb[48].mxu0  ;;  %6340 = vmatprep.subr.bf16.mxu0 %v6956_v63 }
 0x8f1   : > { %v6318_v50 = vpop.f32.mrb[49].mxu0 }
 0x8f2   : > { %v1958_v51 = vpop.f32.mrb[50].mxu0 }
 0x8f3   : > { %v2012_v5 = vpack.c.bf16 %v1958_v51, %v1955_v37  ;;  %v6319_v42 = vpop.f32.mrb[51].mxu0  ;;  %6341 = vmatpush3.bf16.msra.mxu0 %v6956_v63 }
 0x8f4   : > { %6374 = vmatprep.subr.bf16.mxu0 %v7469_v28  ;;  %v6958_v42 = vld [vmem:[#allocation10 + $0x28] sm:$0xff]  }
 0x8f5   : > { %6334 = vmatprep.mubr.msk.bf16.mxu0 %vm1048_vm1, %v2012_v5 }
 0x8f6   : > { %6335 = vmatmul.mubr.msk.bf16.gmra.mrb[56].mxu0 %vm1048_vm1, %v2013_v48 }
 0x8f7   : > { %6342 = vmatprep.mubr.msk.bf16.mxu0 %vm1048_vm1, %v1506_v55 }
 0x8f8   : > { %2470 = vadd.xlane.f32.xlu1 %v2469_v27 }
 0x8fe   : > { %6343 = vmatmul.mubr.msk.bf16.vlgmr.msra.gmra.mrb[52].mxu0 %vm1048_vm1, %v1507_v2 }
 0x8ff   : > { %6346 = vmatprep.mubr.msk.bf16.mxu0 %vm1048_vm1, %v8794_v24 }
 0x906   : > { %6347 = vmatmul.mubr.msk.bf16.gmra.mrb[56].mxu0 %vm1048_vm1, %v8795_v36 }
 0x907   : > { %6376 = vmatprep.mubr.msk.bf16.mxu0 %vm7470_vm0, %v7469_v28 }
 0x909   : > { %2633 = vrot.lane.b32.xlu1 %v7915_v22, %s7472_s27 }
 0x90d   : > { %2785 = vrot.lane.b32.xlu1 %v7857_v8, %s7473_s24 }
 0x911   : > { %2889 = vrot.lane.b32.xlu1 %v7885_v61, %s7473_s24 }
 0x915   : > { %2940 = vrot.lane.b32.xlu1 %v7900_v9, %s7473_s24 }
 0x919   : > { %2938 = vrot.lane.b32.xlu1 %v7898_v7, %s7473_s24 }
 0x93a   : > { %v2450_v52 = vpop.xlane.xlu0 %2449 }
 0x93c   : > { %v2453_v62 = vpop.xlane.xlu1 %2452 }
 0x942   : > { %v2456_v2 = vpop.xlane.xlu0 %2455 }
 0x943   : > { %7065 = vrcp.f32 %v2456_v2 }
 0x944   : > { %v2459_v34 = vpop.xlane.xlu1 %2458 }
 0x945   : > { %7067 = vrcp.f32 %v2459_v34 }
 0x946   : > { %7069 = vrcp.f32 %v2453_v62 }
 0x947   : > { %7071 = vrcp.f32 %v2450_v52 }
 0x94a   : > { %v2462_v8 = vpop.xlane.xlu0 %2461 }
 0x94c   : > { %v2465_v14 = vpop.xlane.xlu1 %2464 }
 0x94d   : > { %v7066_v47 = vpop.eup %7065  ;;  %7073 = vrcp.f32 %v2465_v14 }
 0x94e   : > { %v2482_v61 = vmul.f32 %v7066_v47, %v8172_v45  ;;  %7075 = vrcp.f32 %v2462_v8  ;;  %v6957_v45 = vld [vmem:[#allocation10 + $0x20] sm:$0xff]  }
 0x94f   : > { %v7068_v53 = vpop.eup %7067 }
 0x950   : > { %v2483_v9 = vmul.f32 %v7068_v53, %v8176_v60  ;;  %v2540_v55 = vpop.permute.xlu1 %2539  ;;  %v7070_v19 = vpop.eup %7069 }
 0x951   : > { %6381 = vmatpush3.bf16.msra.mxu1 %v2540_v55  ;;  %v7072_v32 = vpop.eup %7071  ;;  %v2481_v49 = vmul.f32 %v7070_v19, %v8168_v20 }
 0x952   : > { %v2468_v7 = vpop.xlane.xlu0 %2467  ;;  %v2489_v59 = vpack.c.bf16 %v2483_v9, %v2482_v61  ;;  %6392 = vmatprep.subr.bf16.mxu1 %v7469_v28  ;;  %v2480_v58 = vmul.f32 %v7072_v32, %v8164_v56 }
 0x953   : > { %7077 = vrcp.f32 %v2468_v7 }
 0x954   : > { %6383 = vmatmul.mubr.msk.bf16.vlgmr.msra.gmra.mrb[76].mxu1 %vm1237_vm2, %v2489_v59  ;;  %v2488_v17 = vpack.c.bf16 %v2481_v49, %v2480_v58  ;;  %v2587_v57 = vpop.permute.xlu1 %2586 }
 0x955   : > { %6394 = vmatprep.mubr.msk.bf16.mxu1 %vm7470_vm0, %v7469_v28 }
 0x956   : > { %v2493_v48 = vpop.permute.xlu0 %2492 }
 0x957   : > { %6375 = vmatpush3.bf16.msra.mxu0 %v2493_v48  ;;  %v7074_v60 = vpop.eup %7073 }
 0x958   : > { %6386 = vmatprep.subr.bf16.mxu0 %v7469_v28  ;;  %v7076_v30 = vpop.eup %7075  ;;  %v2485_v20 = vmul.f32 %v7074_v60, %v8184_v6 }
 0x959   : > { %v2484_v56 = vmul.f32 %v7076_v30, %v8180_v4 }
 0x95a   : > { %6377 = vmatmul.mubr.msk.bf16.vlgmr.msra.gmra.mrb[60].mxu0 %vm1237_vm2, %v2488_v17  ;;  %v2788_v10 = vpop.permute.xlu0 %2787 }
 0x95b   : > { %6387 = vmatpush3.bf16.msra.mxu0 %v2587_v57  ;;  %6388 = vmatprep.mubr.msk.bf16.mxu0 %vm7470_vm0, %v7469_v28  ;;  %v2490_v35 = vpack.c.bf16 %v2485_v20, %v2484_v56  ;;  %v2793_v4 = vsel %vm1048_vm1, %v2788_v10, 0 }
 0x95c   : > { %6398 = vmatprep.subr.bf16.mxu0 %v6957_v45 }
 0x95d   : > { %v7078_v39 = vpop.eup %7077 }
 0x95e   : > { %v2486_v15 = vmul.f32 %v7078_v39, %v8188_v44  ;;  %v2839_v63 = vpop.permute.xlu0 %2838 }
 0x95f   : > { %v2844_v50 = vsel %vm1048_vm1, %v2839_v63, 0 }
 0x962   : > { %6389 = vmatmul.mubr.msk.bf16.vlgmr.msra.gmra.mrb[64].mxu0 %vm1237_vm2, %v2490_v35  ;;  %v2837_v51 = vpop.permute.xlu0 %2836 }
 0x963   : > { %6399 = vmatpush3.bf16.msra.mxu0 %v6957_v45 }
 0x964   : > { %6400 = vmatprep.subr.bf16.mxu0 %v6958_v42 }
 0x966   : > { %v2888_v56 = vpop.permute.xlu0 %2887 }
 0x967   : > { %6401 = vmatpush3.bf16.msra.mxu0 %v6958_v42 }
 0x968   : > { %6422 = vmatprep.subr.bf16.mxu0 %v7469_v28 }
 0x985   : > { %v2471_v11 = vpop.xlane.xlu1 %2470 }
 0x986   : > { %7079 = vrcp.f32 %v2471_v11 }
 0x989   : > { %v2634_v43 = vpop.permute.xlu1 %2633 }
 0x98a   : > { %6393 = vmatpush3.bf16.msra.mxu1 %v2634_v43 }
 0x98b   : > { %6410 = vmatprep.subr.bf16.mxu1 %v7469_v28 }
 0x98d   : > { %v2786_v23 = vpop.permute.xlu1 %2785 }
 0x990   : > { %v7080_v31 = vpop.eup %7079 }
 0x991   : > { %v2487_v6 = vmul.f32 %v7080_v31, %v8213_v3  ;;  %v2890_v37 = vpop.permute.xlu1 %2889 }
 0x992   : > { %v2895_v53 = vsel %vm1048_vm1, %v2890_v37, 0 }
 0x993   : > { %v2491_v16 = vpack.c.bf16 %v2487_v6, %v2486_v15 }
 0x995   : > { %6395 = vmatmul.mubr.msk.bf16.vlgmr.msra.gmra.mrb[80].mxu1 %vm1237_vm2, %v2491_v16  ;;  %v2941_v44 = vpop.permute.xlu1 %2940 }
 0x996   : > { %6411 = vmatpush3.bf16.xpose.msra.mxu1 %v2793_v4  ;;  %6412 = vmatprep.mubr.msk.bf16.mxu1 %vm7470_vm0, %v7469_v28  ;;  %v2946_v5 = vsel %vm1048_vm1, %v2941_v44, 0 }
 0x997   : > { %6416 = vmatprep.subr.bf16.mxu1 %v7469_v28 }
 0x999   : > { %v2939_v3 = vpop.permute.xlu1 %2938 }
 0x99d   : > { %6413 = vmatmul.mubr.msk.bf16.vlgmr.msra.gmra.mrb[84].mxu1 %vm1048_vm1, %v2786_v23 }
 0x99e   : > { %6417 = vmatpush3.bf16.xpose.msra.mxu1 %v2844_v50  ;;  %6418 = vmatprep.mubr.msk.bf16.mxu1 %vm7470_vm0, %v7469_v28 }
 0x99f   : > { %6428 = vmatprep.subr.bf16.mxu1 %v7469_v28 }
 0x9a5   : > { %6419 = vmatmul.mubr.msk.bf16.vlgmr.msra.gmra.mrb[88].mxu1 %vm1048_vm1, %v2837_v51 }
 0x9a6   : > { %6429 = vmatpush3.bf16.xpose.msra.mxu1 %v2946_v5  ;;  %6430 = vmatprep.mubr.msk.bf16.mxu1 %vm7470_vm0, %v7469_v28 }
 0x9a7   : > { %6440 = vmatprep.subr.bf16.mxu1 %v7469_v28 }
 0x9ad   : > { %6431 = vmatmul.mubr.msk.bf16.vlgmr.msra.gmra.mrb[92].mxu1 %vm1048_vm1, %v2939_v3 }
 0x9ae   : > { %6442 = vmatprep.mubr.msk.bf16.mxu1 %vm7470_vm0, %v7469_v28 }
 0xa27   : > { %v2579_v27 = vpop.f32.mrb[76].mxu1 }
 0xa28   : > { %v6384_v24 = vpop.f32.mrb[77].mxu1 }
 0xa29   : > { %v2582_v36 = vpop.f32.mrb[78].mxu1 }
 0xa2a   : > { %v2681_v52 = vpack.c.bf16 %v2582_v36, %v2579_v27  ;;  %v6385_v62 = vpop.f32.mrb[79].mxu1 }
 0xa2d   : > { %v2532_v2 = vpop.f32.mrb[60].mxu0 }
 0xa2e   : > { %v6378_v34 = vpop.f32.mrb[61].mxu0 }
 0xa2f   : > { %v2535_v14 = vpop.f32.mrb[62].mxu0 }
 0xa30   : > { %v2680_v47 = vpack.c.bf16 %v2535_v14, %v2532_v2  ;;  %v6379_v8 = vpop.f32.mrb[63].mxu0 }
 0xa32   : > { %6402 = vmatprep.mubr.msk.bf16.mxu0 %vm1048_vm1, %v2680_v47 }
 0xa33   : > { %6403 = vmatmul.mubr.msk.bf16.vlgmr.msra.gmra.mrb[52].mxu0 %vm1048_vm1, %v2681_v52 }
 0xa34   : > { %6423 = vmatpush3.bf16.xpose.msra.mxu0 %v2895_v53 }
 0xa35   : > { %v2626_v61 = vpop.f32.mrb[64].mxu0  ;;  %6434 = vmatprep.subr.bf16.mxu0 %v7469_v28 }
 0xa36   : > { %v6390_v9 = vpop.f32.mrb[65].mxu0 }
 0xa37   : > { %v2629_v55 = vpop.f32.mrb[66].mxu0 }
 0xa38   : > { %v2682_v19 = vpack.c.bf16 %v2629_v55, %v2626_v61  ;;  %v6391_v7 = vpop.f32.mrb[67].mxu0 }
 0xa3a   : > { %6406 = vmatprep.mubr.msk.bf16.mxu0 %vm1048_vm1, %v2682_v19 }
 0xa68   : > { %v2673_v59 = vpop.f32.mrb[80].mxu1 }
 0xa69   : > { %v6396_v32 = vpop.f32.mrb[81].mxu1 }
 0xa6a   : > { %v2676_v49 = vpop.f32.mrb[82].mxu1 }
 0xa6b   : > { %v2683_v58 = vpack.c.bf16 %v2676_v49, %v2673_v59  ;;  %v6397_v48 = vpop.f32.mrb[83].mxu1 }
 0xa6d   : > { %6407 = vmatmul.mubr.msk.bf16.gmra.mrb[56].mxu0 %vm1048_vm1, %v2683_v58 }
 0xa6e   : > { %6424 = vmatprep.mubr.msk.bf16.mxu0 %vm7470_vm0, %v7469_v28 }
 0xa70   : > { %v2829_v17 = vpop.f32.mrb[84].mxu1 }
 0xa71   : > { %v6414_v45 = vpop.f32.mrb[85].mxu1  ;;  %v2989_v60 = vsel %vm1237_vm2, %v2829_v17, -inf }
 0xa72   : > { %2990 = vmax.xlane.f32.xlu0 %v2989_v60  ;;  %v2832_v57 = vpop.f32.mrb[86].mxu1 }
 0xa73   : > { %v6415_v30 = vpop.f32.mrb[87].mxu1  ;;  %v2992_v20 = vsel %vm1237_vm2, %v2832_v57, -inf }
 0xa74   : > { %2993 = vmax.xlane.f32.xlu1 %v2992_v20 }
 0xa75   : > { %6425 = vmatmul.mubr.msk.bf16.vlgmr.msra.gmra.mrb[68].mxu0 %vm1048_vm1, %v2888_v56 }
 0xa76   : > { %6436 = vmatprep.mubr.msk.bf16.mxu0 %vm7470_vm0, %v7469_v28 }
 0xa78   : > { %v2880_v35 = vpop.f32.mrb[88].mxu1 }
 0xa79   : > { %v6420_v11 = vpop.f32.mrb[89].mxu1  ;;  %v2995_v43 = vsel %vm1237_vm2, %v2880_v35, -inf }
 0xa7a   : > { %2996 = vmax.xlane.f32.xlu0 %v2995_v43  ;;  %v2883_v39 = vpop.f32.mrb[90].mxu1 }
 0xa7b   : > { %v6421_v31 = vpop.f32.mrb[91].mxu1  ;;  %v2998_v15 = vsel %vm1237_vm2, %v2883_v39, -inf }
 0xa7e   : > { %2999 = vmax.xlane.f32.xlu0 %v2998_v15 }
 0xa80   : > { %v2982_v6 = vpop.f32.mrb[92].mxu1 }
 0xa81   : > { %v6432_v10 = vpop.f32.mrb[93].mxu1  ;;  %v3007_v8 = vsel %vm1237_vm2, %v2982_v6, -inf }
 0xa82   : > { %v2985_v16 = vpop.f32.mrb[94].mxu1 }
 0xa83   : > { %v6433_v4 = vpop.f32.mrb[95].mxu1  ;;  %v3010_v61 = vsel %vm1237_vm2, %v2985_v16, -inf }
 0xaff   : > { %v2991_v23 = vpop.xlane.xlu0 %2990 }
 0xb00   : > { %v3013_v50 = vsub.f32 %v2829_v17, %v2991_v23 }
 0xb01   : > { %v2994_v37 = vpop.xlane.xlu1 %2993 }
 0xb02   : > { %v3014_v44 = vsub.f32 %v2832_v57, %v2994_v37  ;;  %v3021_v5 = vmul.f32 1.442695, %v3013_v50 }
 0xb04   : > { %v3023_v3 = vmul.f32 1.442695, %v3014_v44  ;;  %7081 = vpow2.f32 %v3021_v5 }
 0xb06   : > { %7083 = vpow2.f32 %v3023_v3 }
 0xb07   : > { %v2997_v63 = vpop.xlane.xlu0 %2996 }
 0xb08   : > { %v3015_v42 = vsub.f32 %v2880_v35, %v2997_v63 }
 0xb0a   : > { %v3025_v24 = vmul.f32 1.442695, %v3015_v42 }
 0xb0b   : > { %v3000_v51 = vpop.xlane.xlu0 %2999 }
 0xb0c   : > { %v3016_v27 = vsub.f32 %v2883_v39, %v3000_v51  ;;  %7085 = vpow2.f32 %v3025_v24 }
 0xb0e   : > { %v3027_v36 = vmul.f32 1.442695, %v3016_v27  ;;  %v8306_v53 = vpop.eup %7081 }
 0xb0f   : > { %v3037_v55 = vsel %vm1237_vm2, %v8306_v53, 0.0 }
 0xb10   : > { %7087 = vpow2.f32 %v3027_v36  ;;  %v7084_v9 = vpop.eup %7083 }
 0xb11   : > { %v3040_v7 = vsel %vm1237_vm2, %v7084_v9, 0.0 }
 0xb16   : > { %v7086_v19 = vpop.eup %7085 }
 0xb17   : > { %v3043_v32 = vsel %vm1237_vm2, %v7086_v19, 0.0 }
 0xb1a   : > { %v7088_v59 = vpop.eup %7087 }
 0xb1b   : > { %v3046_v49 = vsel %vm1237_vm2, %v7088_v59, 0.0 }
 0xb48   : > { %v2931_v52 = vpop.f32.mrb[68].mxu0 }
 0xb49   : > { %v6426_v62 = vpop.f32.mrb[69].mxu0  ;;  %v3001_v2 = vsel %vm1237_vm2, %v2931_v52, -inf }
 0xb4a   : > { %3002 = vmax.xlane.f32.xlu0 %v3001_v2  ;;  %v2934_v34 = vpop.f32.mrb[70].mxu0 }
 0xb4b   : > { %v6427_v14 = vpop.f32.mrb[71].mxu0  ;;  %v3004_v47 = vsel %vm1237_vm2, %v2934_v34, -inf }
 0xb4c   : > { %3005 = vmax.xlane.f32.xlu1 %v3004_v47  ;;  %v6959_v14 = vld [vmem:[#allocation10 + $0x30] sm:$0xff]  }
 0xb4e   : > { %3008 = vmax.xlane.f32.xlu0 %v3007_v8 }
 0xb50   : > { %3011 = vmax.xlane.f32.xlu1 %v3010_v61 }
 0xb52   : > { %3038 = vadd.xlane.f32.xlu0 %v3037_v55 }
 0xb54   : > { %3041 = vadd.xlane.f32.xlu1 %v3040_v7 }
 0xb56   : > { %3044 = vadd.xlane.f32.xlu0 %v3043_v32 }
 0xb58   : > { %3047 = vadd.xlane.f32.xlu1 %v3046_v49 }
 0xbd7   : > { %v3003_v58 = vpop.xlane.xlu0 %3002 }
 0xbd8   : > { %v3017_v48 = vsub.f32 %v2931_v52, %v3003_v58 }
 0xbd9   : > { %v3006_v17 = vpop.xlane.xlu1 %3005 }
 0xbda   : > { %v3029_v57 = vmul.f32 1.442695, %v3017_v48  ;;  %v3018_v10 = vsub.f32 %v2934_v34, %v3006_v17  ;;  %v3378_v48 = vsel %vm1048_vm1, %v7863_v41, 0 }
 0xbdb   : > { %v3009_v45 = vpop.xlane.xlu0 %3008 }
 0xbdc   : > { %v3019_v60 = vsub.f32 %v2982_v6, %v3009_v45  ;;  %v6960_v45 = vld [vmem:[#allocation10 + $0x38] sm:$0xff]  }
 0xbdd   : > { %v3012_v30 = vpop.xlane.xlu1 %3011 }
 0xbde   : > { %v3033_v20 = vmul.f32 1.442695, %v3019_v60  ;;  %v3020_v56 = vsub.f32 %v2985_v16, %v3012_v30  ;;  %v3031_v16 = vmul.f32 1.442695, %v3018_v10  ;;  %v3425_v60 = vsel %vm1048_vm1, %v7874_v54, 0 }
 0xbdf   : > { %v3039_v37 = vpop.xlane.xlu0 %3038  ;;  %v3472_v10 = vsel %vm1048_vm1, %v7889_v1, 0 }
 0xbe0   : > { %7089 = vpow2.f32 %v3033_v20  ;;  %v3035_v35 = vmul.f32 1.442695, %v3020_v56 }
 0xbe1   : > { %7091 = vpow2.f32 %v3029_v57  ;;  %v3042_v63 = vpop.xlane.xlu1 %3041  ;;  %v3519_v57 = vsel %vm1048_vm1, %v7904_v13, 0 }
 0xbe2   : > { %7093 = vpow2.f32 %v3035_v35 }
 0xbe3   : > { %7095 = vpow2.f32 %v3031_v16 }
 0xbe5   : > { %v3048_v50 = vpop.xlane.xlu1 %3047 }
 0xbe6   : > { %7097 = vrcp.f32 %v3048_v50 }
 0xbe7   : > { %7099 = vrcp.f32 %v3042_v63 }
 0xbea   : > { %v7090_v11 = vpop.eup %7089 }
 0xbeb   : > { %v8314_v43 = vpop.eup %7091  ;;  %v3055_v39 = vsel %vm1237_vm2, %v7090_v11, 0.0 }
 0xbec   : > { %v7094_v31 = vpop.eup %7093  ;;  %3056 = vadd.xlane.f32.xlu0 %v3055_v39  ;;  %v3049_v6 = vsel %vm1237_vm2, %v8314_v43, 0.0 }
 0xbed   : > { %v3058_v15 = vsel %vm1237_vm2, %v7094_v31, 0.0  ;;  %v7096_v4 = vpop.eup %7095 }
 0xbee   : > { %3059 = vadd.xlane.f32.xlu1 %v3058_v15  ;;  %v3052_v23 = vsel %vm1237_vm2, %v7096_v4, 0.0 }
 0xbf0   : > { %3050 = vadd.xlane.f32.xlu0 %v3049_v6 }
 0xbff   : > { %3128 = vrot.lane.b32.xlu1 %v7927_v33, %s7473_s24  ;;  %v3045_v33 = vpop.xlane.xlu0 %3044 }
 0xc00   : > { %7101 = vrcp.f32 %v3045_v33 }
 0xc01   : > { %7103 = vrcp.f32 %v3039_v37 }
 0xc03   : > { %3175 = vrot.lane.b32.xlu1 %v7933_v46, %s7473_s24 }
 0xc06   : > { %3081 = vrot.lane.b32.xlu0 %v7913_v21, %s7473_s24  ;;  %v7098_v21 = vpop.eup %7097 }
 0xc07   : > { %v7100_v44 = vpop.eup %7099  ;;  %v3072_v42 = vmul.f32 %v7098_v21, %v7088_v59 }
 0xc08   : > { %v3070_v24 = vmul.f32 %v7100_v44, %v7084_v9 }
 0xc0a   : > { %v7102_v5 = vpop.eup %7101 }
 0xc0b   : > { %v7104_v27 = vpop.eup %7103  ;;  %v3071_v36 = vmul.f32 %v7102_v5, %v7086_v19 }
 0xc0d   : > { %v3078_v2 = vpack.c.bf16 %v3072_v42, %v3071_v36 }
 0xc27   : > { %3053 = vadd.xlane.f32.xlu1 %v3052_v23 }
 0xc38   : > { %3222 = vrot.lane.b32.xlu1 %v7915_v22, %s7473_s24  ;;  %v3069_v22 = vmul.f32 %v7104_v27, %v8306_v53 }
 0xc3a   : > { %v3077_v34 = vpack.c.bf16 %v3070_v24, %v3069_v22 }
 0xc79   : > { %v3057_v46 = vpop.xlane.xlu0 %3056 }
 0xc7b   : > { %v3060_v51 = vpop.xlane.xlu1 %3059 }
 0xc7c   : > { %7105 = vrcp.f32 %v3060_v51 }
 0xc7d   : > { %v3051_v3 = vpop.xlane.xlu0 %3050  ;;  %7107 = vrcp.f32 %v3057_v46 }
 0xc7e   : > { %7109 = vrcp.f32 %v3051_v3 }
 0xc7f   : > { %v3129_v52 = vpop.permute.xlu1 %3128 }
 0xc80   : > { %6441 = vmatpush3.bf16.msra.mxu1 %v3129_v52 }
 0xc81   : > { %v3082_v62 = vpop.permute.xlu0 %3081  ;;  %6452 = vmatprep.subr.bf16.mxu1 %v7469_v28 }
 0xc82   : > { %6435 = vmatpush3.bf16.msra.mxu0 %v3082_v62 }
 0xc83   : > { %6443 = vmatmul.mubr.msk.bf16.vlgmr.msra.gmra.mrb[96].mxu1 %vm1237_vm2, %v3078_v2  ;;  %6446 = vmatprep.subr.bf16.mxu0 %v7469_v28  ;;  %v3176_v47 = vpop.permute.xlu1 %3175 }
 0xc84   : > { %6454 = vmatprep.mubr.msk.bf16.mxu1 %vm7470_vm0, %v7469_v28 }
 0xc85   : > { %6437 = vmatmul.mubr.msk.bf16.vlgmr.msra.gmra.mrb[72].mxu0 %vm1237_vm2, %v3077_v34 }
 0xc86   : > { %6447 = vmatpush3.bf16.msra.mxu0 %v3176_v47  ;;  %6448 = vmatprep.mubr.msk.bf16.mxu0 %vm7470_vm0, %v7469_v28  ;;  %v7106_v8 = vpop.eup %7105 }
 0xc87   : > { %6458 = vmatprep.subr.bf16.mxu0 %v6959_v14  ;;  %v7108_v61 = vpop.eup %7107  ;;  %v3076_v9 = vmul.f32 %v7106_v8, %v7094_v31 }
 0xc88   : > { %v3075_v55 = vmul.f32 %v7108_v61, %v7090_v11  ;;  %v7110_v59 = vpop.eup %7109 }
 0xc89   : > { %v3073_v49 = vmul.f32 %v7110_v59, %v8314_v43 }
 0xc8a   : > { %v3080_v7 = vpack.c.bf16 %v3076_v9, %v3075_v55 }
 0xcb4   : > { %v3054_v53 = vpop.xlane.xlu1 %3053 }
 0xcb5   : > { %7111 = vrcp.f32 %v3054_v53 }
 0xcb8   : > { %v3223_v19 = vpop.permute.xlu1 %3222 }
 0xcb9   : > { %6453 = vmatpush3.bf16.msra.mxu1 %v3223_v19 }
 0xcba   : > { %6470 = vmatprep.subr.bf16.mxu1 %v7469_v28 }
 0xcbc   : > { %6455 = vmatmul.mubr.msk.bf16.vlgmr.msra.gmra.mrb[100].mxu1 %vm1237_vm2, %v3080_v7 }
 0xcbd   : > { %6472 = vmatprep.mubr.msk.bf16.mxu1 %vm7470_vm0, %v7469_v28 }
 0xcbf   : > { %v7112_v32 = vpop.eup %7111 }
 0xcc0   : > { %v3074_v58 = vmul.f32 %v7112_v32, %v7096_v4 }
 0xcc2   : > { %6471 = vmatpush3.bf16.xpose.msra.mxu1 %v3378_v48  ;;  %v3079_v17 = vpack.c.bf16 %v3074_v58, %v3073_v49 }
 0xcc3   : > { %6476 = vmatprep.subr.bf16.mxu1 %v7469_v28 }
 0xcc4   : > { %6449 = vmatmul.mubr.msk.bf16.vlgmr.msra.gmra.mrb[76].mxu0 %vm1237_vm2, %v3079_v17 }
 0xcc5   : > { %6459 = vmatpush3.bf16.msra.mxu0 %v6959_v14 }
 0xcc6   : > { %6460 = vmatprep.subr.bf16.mxu0 %v6960_v45 }
 0xcc9   : > { %6473 = vmatmul.mubr.msk.bf16.vlgmr.msra.gmra.mrb[104].mxu1 %vm1048_vm1, %v7861_v40  ;;  %6461 = vmatpush3.bf16.msra.mxu0 %v6960_v45 }
 0xcca   : > { %6477 = vmatpush3.bf16.xpose.msra.mxu1 %v3425_v60  ;;  %6478 = vmatprep.mubr.msk.bf16.mxu1 %vm7470_vm0, %v7469_v28 }
 0xccb   : > { %6488 = vmatprep.subr.bf16.mxu1 %v7469_v28  ;;  %6482 = vmatprep.subr.bf16.mxu0 %v7469_v28 }
 0xcd1   : > { %6479 = vmatmul.mubr.msk.bf16.vlgmr.msra.gmra.mrb[108].mxu1 %vm1048_vm1, %v7872_v26 }
 0xcd2   : > { %6489 = vmatpush3.bf16.xpose.msra.mxu1 %v3519_v57  ;;  %6490 = vmatprep.mubr.msk.bf16.mxu1 %vm7470_vm0, %v7469_v28 }
 0xcd3   : > { %6500 = vmatprep.subr.bf16.mxu1 %v7469_v28 }
 0xcd9   : > { %6491 = vmatmul.mubr.msk.bf16.vlgmr.msra.gmra.mrb[112].mxu1 %vm1048_vm1, %v7902_v12 }
 0xcda   : > { %6501 = vmatpush3.bf16.msra.mxu1 %v7929_v38  ;;  %6502 = vmatprep.mubr.msk.bf16.mxu1 %vm7470_vm0, %v7469_v28 }
 0xcdb   : > { %6512 = vmatprep.subr.bf16.mxu1 %v7469_v28 }
 0xd56   : > { %v3168_v30 = vpop.f32.mrb[96].mxu1 }
 0xd57   : > { %v6444_v20 = vpop.f32.mrb[97].mxu1 }
 0xd58   : > { %v3121_v56 = vpop.f32.mrb[72].mxu0  ;;  %v3171_v35 = vpop.f32.mrb[98].mxu1 }
 0xd59   : > { %v3270_v11 = vpack.c.bf16 %v3171_v35, %v3168_v30  ;;  %v6438_v43 = vpop.f32.mrb[73].mxu0  ;;  %v6445_v39 = vpop.f32.mrb[99].mxu1 }
 0xd5a   : > { %v3124_v31 = vpop.f32.mrb[74].mxu0 }
 0xd5b   : > { %v3269_v15 = vpack.c.bf16 %v3124_v31, %v3121_v56  ;;  %v6439_v6 = vpop.f32.mrb[75].mxu0 }
 0xd5d   : > { %6462 = vmatprep.mubr.msk.bf16.mxu0 %vm1048_vm1, %v3269_v15 }
 0xd5e   : > { %6463 = vmatmul.mubr.msk.bf16.vlgmr.msra.gmra.mrb[52].mxu0 %vm1048_vm1, %v3270_v11 }
 0xd5f   : > { %6483 = vmatpush3.bf16.xpose.msra.mxu0 %v3472_v10 }
 0xd60   : > { %6494 = vmatprep.subr.bf16.mxu0 %v7469_v28 }
 0xd8f   : > { %v3262_v16 = vpop.f32.mrb[100].mxu1 }
 0xd90   : > { %v6456_v4 = vpop.f32.mrb[101].mxu1 }
 0xd91   : > { %v3265_v23 = vpop.f32.mrb[102].mxu1 }
 0xd92   : > { %v3272_v63 = vpack.c.bf16 %v3265_v23, %v3262_v16  ;;  %v6457_v37 = vpop.f32.mrb[103].mxu1 }
 0xd97   : > { %v3215_v50 = vpop.f32.mrb[76].mxu0 }
 0xd98   : > { %v6450_v33 = vpop.f32.mrb[77].mxu0 }
 0xd99   : > { %v3218_v46 = vpop.f32.mrb[78].mxu0 }
 0xd9a   : > { %v3271_v21 = vpack.c.bf16 %v3218_v46, %v3215_v50  ;;  %v6451_v44 = vpop.f32.mrb[79].mxu0 }
 0xd9c   : > { %6466 = vmatprep.mubr.msk.bf16.mxu0 %vm1048_vm1, %v3271_v21  ;;  %v3414_v51 = vpop.f32.mrb[104].mxu1 }
 0xd9d   : > { %6467 = vmatmul.mubr.msk.bf16.gmra.mrb[56].mxu0 %vm1048_vm1, %v3272_v63  ;;  %v6474_v5 = vpop.f32.mrb[105].mxu1  ;;  %v3562_v42 = vsel %vm1237_vm2, %v3414_v51, -inf }
 0xd9e   : > { %3563 = vmax.xlane.f32.xlu0 %v3562_v42  ;;  %v3417_v3 = vpop.f32.mrb[106].mxu1  ;;  %6484 = vmatprep.mubr.msk.bf16.mxu0 %vm7470_vm0, %v7469_v28 }
 0xd9f   : > { %v6475_v27 = vpop.f32.mrb[107].mxu1  ;;  %v3565_v24 = vsel %vm1237_vm2, %v3417_v3, -inf }
 0xda0   : > { %3566 = vmax.xlane.f32.xlu1 %v3565_v24 }
 0xda4   : > { %v3461_v36 = vpop.f32.mrb[108].mxu1 }
 0xda5   : > { %v6480_v52 = vpop.f32.mrb[109].mxu1  ;;  %6485 = vmatmul.mubr.msk.bf16.vlgmr.msra.gmra.mrb[80].mxu0 %vm1048_vm1, %v7887_v0  ;;  %v3568_v22 = vsel %vm1237_vm2, %v3461_v36, -inf }
 0xda6   : > { %6495 = vmatpush3.bf16.msra.mxu0 %v7917_v25  ;;  %3569 = vmax.xlane.f32.xlu0 %v3568_v22  ;;  %v3464_v62 = vpop.f32.mrb[110].mxu1 }
 0xda7   : > { %v6481_v2 = vpop.f32.mrb[111].mxu1  ;;  %6496 = vmatprep.mubr.msk.bf16.mxu0 %vm7470_vm0, %v7469_v28  ;;  %6506 = vmatprep.subr.bf16.mxu0 %v7469_v28  ;;  %v3571_v34 = vsel %vm1237_vm2, %v3464_v62, -inf }
 0xdaa   : > { %3572 = vmax.xlane.f32.xlu0 %v3571_v34 }
 0xdac   : > { %v3555_v14 = vpop.f32.mrb[112].mxu1 }
 0xdad   : > { %v6492_v47 = vpop.f32.mrb[113].mxu1  ;;  %v3580_v11 = vsel %vm1237_vm2, %v3555_v14, -inf }
 0xdae   : > { %v3558_v8 = vpop.f32.mrb[114].mxu1 }
 0xdaf   : > { %v6493_v53 = vpop.f32.mrb[115].mxu1  ;;  %v3583_v39 = vsel %vm1237_vm2, %v3558_v8, -inf }
 0xe2b   : > { %v3564_v61 = vpop.xlane.xlu0 %3563 }
 0xe2c   : > { %v3586_v19 = vsub.f32 %v3414_v51, %v3564_v61 }
 0xe2d   : > { %v3567_v55 = vpop.xlane.xlu1 %3566 }
 0xe2e   : > { %v3587_v7 = vsub.f32 %v3417_v3, %v3567_v55  ;;  %v3594_v32 = vmul.f32 1.442695, %v3586_v19 }
 0xe30   : > { %v3596_v58 = vmul.f32 1.442695, %v3587_v7  ;;  %7113 = vpow2.f32 %v3594_v32 }
 0xe32   : > { %7115 = vpow2.f32 %v3596_v58 }
 0xe33   : > { %v3570_v9 = vpop.xlane.xlu0 %3569 }
 0xe34   : > { %v3588_v49 = vsub.f32 %v3461_v36, %v3570_v9 }
 0xe36   : > { %v3598_v17 = vmul.f32 1.442695, %v3588_v49 }
 0xe37   : > { %v3573_v59 = vpop.xlane.xlu0 %3572 }
 0xe38   : > { %v3589_v48 = vsub.f32 %v3464_v62, %v3573_v59  ;;  %7117 = vpow2.f32 %v3598_v17 }
 0xe3a   : > { %v3600_v45 = vmul.f32 1.442695, %v3589_v48  ;;  %v7114_v43 = vpop.eup %7113 }
 0xe3b   : > { %v3610_v15 = vsel %vm1237_vm2, %v7114_v43, 0.0 }
 0xe3c   : > { %7119 = vpow2.f32 %v3600_v45  ;;  %v7116_v31 = vpop.eup %7115  ;;  %v6961_v45 = vld [vmem:[#allocation10 + $0x40] sm:$0xff]  }
 0xe3d   : > { %v3613_v10 = vsel %vm1237_vm2, %v7116_v31, 0.0 }
 0xe42   : > { %v7118_v6 = vpop.eup %7117 }
 0xe43   : > { %v3616_v4 = vsel %vm1237_vm2, %v7118_v6, 0.0 }
 0xe46   : > { %v7120_v16 = vpop.eup %7119 }
 0xe47   : > { %v3619_v23 = vsel %vm1237_vm2, %v7120_v16, 0.0 }
 0xe78   : > { %v3508_v60 = vpop.f32.mrb[80].mxu0 }
 0xe79   : > { %v6486_v57 = vpop.f32.mrb[81].mxu0  ;;  %v3574_v30 = vsel %vm1237_vm2, %v3508_v60, -inf }
 0xe7a   : > { %3575 = vmax.xlane.f32.xlu0 %v3574_v30  ;;  %v3511_v20 = vpop.f32.mrb[82].mxu0 }
 0xe7b   : > { %v6487_v56 = vpop.f32.mrb[83].mxu0  ;;  %v3577_v35 = vsel %vm1237_vm2, %v3511_v20, -inf }
 0xe7c   : > { %3578 = vmax.xlane.f32.xlu1 %v3577_v35 }
 0xe7e   : > { %3581 = vmax.xlane.f32.xlu0 %v3580_v11 }
 0xe80   : > { %3584 = vmax.xlane.f32.xlu1 %v3583_v39 }
 0xe82   : > { %3611 = vadd.xlane.f32.xlu0 %v3610_v15  ;;  %v6962_v15 = vld [vmem:[#allocation10 + $0x48] sm:$0xff]  }
 0xe84   : > { %3614 = vadd.xlane.f32.xlu1 %v3613_v10 }
 0xe86   : > { %3617 = vadd.xlane.f32.xlu0 %v3616_v4 }
 0xe88   : > { %3620 = vadd.xlane.f32.xlu1 %v3619_v23 }
 0xf07   : > { %v3576_v63 = vpop.xlane.xlu0 %3575 }
 0xf08   : > { %v3590_v37 = vsub.f32 %v3508_v60, %v3576_v63 }
 0xf09   : > { %v3579_v50 = vpop.xlane.xlu1 %3578 }
 0xf0a   : > { %v3602_v33 = vmul.f32 1.442695, %v3590_v37  ;;  %v3591_v46 = vsub.f32 %v3511_v20, %v3579_v50 }
 0xf0b   : > { %v3582_v21 = vpop.xlane.xlu0 %3581 }
 0xf0c   : > { %7121 = vpow2.f32 %v3602_v33  ;;  %v3604_v44 = vmul.f32 1.442695, %v3591_v46  ;;  %v3592_v51 = vsub.f32 %v3555_v14, %v3582_v21 }
 0xf0d   : > { %v3585_v5 = vpop.xlane.xlu1 %3584 }
 0xf0e   : > { %7123 = vpow2.f32 %v3604_v44  ;;  %v3606_v42 = vmul.f32 1.442695, %v3592_v51  ;;  %v3593_v3 = vsub.f32 %v3558_v8, %v3585_v5 }
 0xf0f   : > { %v3612_v27 = vpop.xlane.xlu0 %3611 }
 0xf10   : > { %7125 = vpow2.f32 %v3606_v42  ;;  %v3608_v24 = vmul.f32 1.442695, %v3593_v3 }
 0xf11   : > { %7127 = vrcp.f32 %v3612_v27  ;;  %v3615_v36 = vpop.xlane.xlu1 %3614 }
 0xf12   : > { %7129 = vpow2.f32 %v3608_v24 }
 0xf13   : > { %7131 = vrcp.f32 %v3615_v36  ;;  %v3618_v52 = vpop.xlane.xlu0 %3617 }
 0xf14   : > { %7133 = vrcp.f32 %v3618_v52 }
 0xf15   : > { %v3621_v22 = vpop.xlane.xlu1 %3620 }
 0xf16   : > { %v7122_v62 = vpop.eup %7121  ;;  %7135 = vrcp.f32 %v3621_v22 }
 0xf17   : > { %v3622_v2 = vsel %vm1237_vm2, %v7122_v62, 0.0 }
 0xf18   : > { %v7124_v34 = vpop.eup %7123  ;;  %3623 = vadd.xlane.f32.xlu0 %v3622_v2 }
 0xf19   : > { %v3625_v14 = vsel %vm1237_vm2, %v7124_v34, 0.0 }
 0xf1a   : > { %v7126_v47 = vpop.eup %7125  ;;  %3626 = vadd.xlane.f32.xlu1 %v3625_v14 }
 0xf1b   : > { %v7128_v8 = vpop.eup %7127  ;;  %v3628_v53 = vsel %vm1237_vm2, %v7126_v47, 0.0 }
 0xf1c   : > { %v7130_v61 = vpop.eup %7129  ;;  %3629 = vadd.xlane.f32.xlu0 %v3628_v53  ;;  %v3642_v7 = vmul.f32 %v7128_v8, %v7114_v43 }
 0xf1d   : > { %v7132_v9 = vpop.eup %7131  ;;  %v3631_v55 = vsel %vm1237_vm2, %v7130_v61, 0.0 }
 0xf1e   : > { %v7134_v19 = vpop.eup %7133  ;;  %v3643_v59 = vmul.f32 %v7132_v9, %v7116_v31  ;;  %3632 = vadd.xlane.f32.xlu1 %v3631_v55 }
 0xf1f   : > { %v3644_v58 = vmul.f32 %v7134_v19, %v7118_v6 }
 0xf20   : > { %v7136_v32 = vpop.eup %7135  ;;  %v3650_v49 = vpack.c.bf16 %v3643_v59, %v3642_v7 }
 0xf21   : > { %v3645_v48 = vmul.f32 %v7136_v32, %v7120_v16 }
 0xf22   : > { %6497 = vmatmul.mubr.msk.bf16.vlgmr.msra.gmra.mrb[84].mxu0 %vm1237_vm2, %v3650_v49 }
 0xf23   : > { %6507 = vmatpush3.bf16.msra.mxu0 %v7935_v18  ;;  %v3651_v17 = vpack.c.bf16 %v3645_v48, %v3644_v58  ;;  %6508 = vmatprep.mubr.msk.bf16.mxu0 %vm7470_vm0, %v7469_v28 }
 0xf24   : > { %6518 = vmatprep.subr.bf16.mxu0 %v6961_v45 }
 0xf25   : > { %6503 = vmatmul.mubr.msk.bf16.vlgmr.msra.gmra.mrb[116].mxu1 %vm1237_vm2, %v3651_v17 }
 0xf26   : > { %6513 = vmatpush3.bf16.msra.mxu1 %v7919_v29  ;;  %6514 = vmatprep.mubr.msk.bf16.mxu1 %vm7470_vm0, %v7469_v28 }
 0xf27   : > { %6530 = vmatprep.subr.bf16.mxu1 %v7469_v28 }
 0xf2f   : > { %3936 = vrot.lane.b32.xlu1 %v7861_v40, %s7471_s18 }
 0xf32   : > { %3939 = vrot.lane.b32.xlu0 %v7863_v41, %s7471_s18 }
 0xf33   : > { %3992 = vrot.lane.b32.xlu1 %v7874_v54, %s7471_s18 }
 0xf36   : > { %3989 = vrot.lane.b32.xlu0 %v7872_v26, %s7471_s18 }
 0xf37   : > { %4045 = vrot.lane.b32.xlu1 %v7889_v1, %s7471_s18 }
 0xf3a   : > { %4042 = vrot.lane.b32.xlu0 %v7887_v0, %s7471_s18 }
 0xf3b   : > { %4098 = vrot.lane.b32.xlu1 %v7904_v13, %s7471_s18 }
 0xf3f   : > { %4095 = vrot.lane.b32.xlu1 %v7902_v12, %s7471_s18 }
 0xfa5   : > { %v3624_v60 = vpop.xlane.xlu0 %3623 }
 0xfa6   : > { %7137 = vrcp.f32 %v3624_v60 }
 0xfa7   : > { %v3627_v57 = vpop.xlane.xlu1 %3626 }
 0xfa8   : > { %7139 = vrcp.f32 %v3627_v57 }
 0xfa9   : > { %v3630_v30 = vpop.xlane.xlu0 %3629 }
 0xfaa   : > { %7141 = vrcp.f32 %v3630_v30 }
 0xfab   : > { %v3633_v20 = vpop.xlane.xlu1 %3632 }
 0xfac   : > { %7143 = vrcp.f32 %v3633_v20 }
 0xfad   : > { %v3940_v23 = vpop.permute.xlu0 %3939 }
 0xfae   : > { %v3945_v37 = vsel %vm1048_vm1, %v3940_v23, 0 }
 0xfaf   : > { %v3937_v10 = vpop.permute.xlu1 %3936 }
 0xfb0   : > { %v7138_v56 = vpop.eup %7137 }
 0xfb1   : > { %v3646_v11 = vmul.f32 %v7138_v56, %v7122_v62  ;;  %v3990_v44 = vpop.permute.xlu0 %3989 }
 0xfb2   : > { %v7140_v35 = vpop.eup %7139 }
 0xfb3   : > { %v3647_v43 = vmul.f32 %v7140_v35, %v7124_v34  ;;  %v3993_v50 = vpop.permute.xlu1 %3992 }
 0xfb4   : > { %v7142_v39 = vpop.eup %7141  ;;  %v3998_v46 = vsel %vm1048_vm1, %v3993_v50, 0 }
 0xfb5   : > { %v3652_v31 = vpack.c.bf16 %v3647_v43, %v3646_v11  ;;  %v3648_v16 = vmul.f32 %v7142_v39, %v7126_v47  ;;  %v4043_v57 = vpop.permute.xlu0 %4042 }
 0xfb6   : > { %v7144_v6 = vpop.eup %7143 }
 0xfb7   : > { %v3649_v4 = vmul.f32 %v7144_v6, %v7130_v61  ;;  %6509 = vmatmul.mubr.msk.bf16.vlgmr.msra.gmra.mrb[88].mxu0 %vm1237_vm2, %v3652_v31  ;;  %v4046_v33 = vpop.permute.xlu1 %4045 }
 0xfb8   : > { %6519 = vmatpush3.bf16.msra.mxu0 %v6961_v45  ;;  %v4051_v14 = vsel %vm1048_vm1, %v4046_v33, 0 }
 0xfb9   : > { %v3653_v63 = vpack.c.bf16 %v3649_v4, %v3648_v16  ;;  %6520 = vmatprep.subr.bf16.mxu0 %v6962_v15 }
 0xfbb   : > { %6515 = vmatmul.mubr.msk.bf16.vlgmr.msra.gmra.mrb[120].mxu1 %vm1237_vm2, %v3653_v63  ;;  %v4099_v21 = vpop.permute.xlu1 %4098 }
 0xfbc   : > { %6531 = vmatpush3.bf16.xpose.msra.mxu1 %v3945_v37  ;;  %6532 = vmatprep.mubr.msk.bf16.mxu1 %vm7470_vm0, %v7469_v28  ;;  %v4104_v51 = vsel %vm1048_vm1, %v4099_v21, 0 }
 0xfbd   : > { %6536 = vmatprep.subr.bf16.mxu1 %v7469_v28  ;;  %6521 = vmatpush3.bf16.msra.mxu0 %v6962_v15 }
 0xfbe   : > { %6542 = vmatprep.subr.bf16.mxu0 %v7469_v28 }
 0xfbf   : > { %v4096_v5 = vpop.permute.xlu1 %4095 }
 0xfc3   : > { %6533 = vmatmul.mubr.msk.bf16.vlgmr.msra.gmra.mrb[124].mxu1 %vm1048_vm1, %v3937_v10 }
 0xfc4   : > { %6537 = vmatpush3.bf16.xpose.msra.mxu1 %v3998_v46  ;;  %6538 = vmatprep.mubr.msk.bf16.mxu1 %vm7470_vm0, %v7469_v28 }
 0xfc5   : > { %6548 = vmatprep.subr.bf16.mxu1 %v7469_v28 }
 0xfcb   : > { %6539 = vmatmul.mubr.msk.bf16.vlgmr.msra.gmra.mrb[128].mxu1 %vm1048_vm1, %v3990_v44 }
 0xfcc   : > { %6549 = vmatpush3.bf16.xpose.msra.mxu1 %v4104_v51  ;;  %6550 = vmatprep.mubr.msk.bf16.mxu1 %vm7470_vm0, %v7469_v28 }
 0xfcd   : > { %6560 = vmatprep.subr.bf16.mxu1 %v7469_v28 }
 0xfd3   : > { %6551 = vmatmul.mubr.msk.bf16.vlgmr.msra.gmra.mrb[132].mxu1 %vm1048_vm1, %v4096_v5 }
 0xfd4   : > { %6562 = vmatprep.mubr.msk.bf16.mxu1 %vm7470_vm0, %v7469_v28 }
 0xff5   : > { %v3691_v42 = vpop.f32.mrb[84].mxu0 }
 0xff6   : > { %v6498_v3 = vpop.f32.mrb[85].mxu0 }
 0xff7   : > { %v3694_v27 = vpop.f32.mrb[86].mxu0 }
 0xff8   : > { %v3830_v24 = vpack.c.bf16 %v3694_v27, %v3691_v42  ;;  %v6499_v36 = vpop.f32.mrb[87].mxu0  ;;  %v3735_v52 = vpop.f32.mrb[116].mxu1 }
 0xff9   : > { %v6504_v22 = vpop.f32.mrb[117].mxu1 }
 0xffa   : > { %6522 = vmatprep.mubr.msk.bf16.mxu0 %vm1048_vm1, %v3830_v24  ;;  %v3738_v62 = vpop.f32.mrb[118].mxu1 }
 0xffb   : > { %v3831_v2 = vpack.c.bf16 %v3738_v62, %v3735_v52  ;;  %v6505_v34 = vpop.f32.mrb[119].mxu1 }
 0xffd   : > { %6523 = vmatmul.mubr.msk.bf16.vlgmr.msra.gmra.mrb[52].mxu0 %vm1048_vm1, %v3831_v2 }
 0xffe   : > { %6543 = vmatpush3.bf16.xpose.msra.mxu0 %v4051_v14 }
 0xfff   : > { %6554 = vmatprep.subr.bf16.mxu0 %v7469_v28 }
0x108a   : > { %v3779_v47 = vpop.f32.mrb[88].mxu0 }
0x108b   : > { %v6510_v8 = vpop.f32.mrb[89].mxu0 }
0x108c   : > { %v3782_v53 = vpop.f32.mrb[90].mxu0 }
0x108d   : > { %v3832_v61 = vpack.c.bf16 %v3782_v53, %v3779_v47  ;;  %v6511_v9 = vpop.f32.mrb[91].mxu0 }
0x108e   : > { %v3823_v55 = vpop.f32.mrb[120].mxu1 }
0x108f   : > { %v6516_v19 = vpop.f32.mrb[121].mxu1  ;;  %6526 = vmatprep.mubr.msk.bf16.mxu0 %vm1048_vm1, %v3832_v61 }
0x1090   : > { %v3826_v7 = vpop.f32.mrb[122].mxu1 }
0x1091   : > { %v3833_v59 = vpack.c.bf16 %v3826_v7, %v3823_v55  ;;  %v6517_v32 = vpop.f32.mrb[123].mxu1 }
0x1093   : > { %6527 = vmatmul.mubr.msk.bf16.gmra.mrb[56].mxu0 %vm1048_vm1, %v3833_v59 }
0x1094   : > { %6544 = vmatprep.mubr.msk.bf16.mxu0 %vm7470_vm0, %v7469_v28 }
0x1096   : > { %v3981_v49 = vpop.f32.mrb[124].mxu1 }
0x1097   : > { %v6534_v58 = vpop.f32.mrb[125].mxu1  ;;  %v4147_v48 = vsel %vm1237_vm2, %v3981_v49, -inf }
0x1098   : > { %4148 = vmax.xlane.f32.xlu0 %v4147_v48  ;;  %v3984_v17 = vpop.f32.mrb[126].mxu1 }
0x1099   : > { %v6535_v45 = vpop.f32.mrb[127].mxu1  ;;  %v4150_v60 = vsel %vm1237_vm2, %v3984_v17, -inf }
0x109a   : > { %4151 = vmax.xlane.f32.xlu1 %v4150_v60 }
0x109b   : > { %6545 = vmatmul.mubr.msk.bf16.vlgmr.msra.gmra.mrb[92].mxu0 %vm1048_vm1, %v4043_v57 }
0x109c   : > { %6556 = vmatprep.mubr.msk.bf16.mxu0 %vm7470_vm0, %v7469_v28 }
0x109e   : > { %v4034_v30 = vpop.f32.mrb[128].mxu1 }
0x109f   : > { %v6540_v20 = vpop.f32.mrb[129].mxu1  ;;  %v4153_v56 = vsel %vm1237_vm2, %v4034_v30, -inf }
0x10a0   : > { %4154 = vmax.xlane.f32.xlu0 %v4153_v56  ;;  %v4037_v35 = vpop.f32.mrb[130].mxu1 }
0x10a1   : > { %v6541_v11 = vpop.f32.mrb[131].mxu1  ;;  %v4156_v43 = vsel %vm1237_vm2, %v4037_v35, -inf }
0x10a4   : > { %4157 = vmax.xlane.f32.xlu0 %v4156_v43 }
0x10a6   : > { %v4140_v39 = vpop.f32.mrb[132].mxu1 }
0x10a7   : > { %v6552_v31 = vpop.f32.mrb[133].mxu1  ;;  %v4165_v52 = vsel %vm1237_vm2, %v4140_v39, -inf }
0x10a8   : > { %v4143_v15 = vpop.f32.mrb[134].mxu1 }
0x10a9   : > { %v6553_v6 = vpop.f32.mrb[135].mxu1  ;;  %v4168_v62 = vsel %vm1237_vm2, %v4143_v15, -inf }
0x1125   : > { %v4149_v10 = vpop.xlane.xlu0 %4148 }
0x1126   : > { %v4171_v23 = vsub.f32 %v3981_v49, %v4149_v10 }
0x1127   : > { %v4152_v4 = vpop.xlane.xlu1 %4151 }
0x1128   : > { %v4172_v63 = vsub.f32 %v3984_v17, %v4152_v4  ;;  %v4179_v50 = vmul.f32 1.442695, %v4171_v23 }
0x112a   : > { %v4181_v46 = vmul.f32 1.442695, %v4172_v63  ;;  %7145 = vpow2.f32 %v4179_v50 }
0x112c   : > { %7147 = vpow2.f32 %v4181_v46 }
0x112d   : > { %v4155_v16 = vpop.xlane.xlu0 %4154 }
0x112e   : > { %v4173_v33 = vsub.f32 %v4034_v30, %v4155_v16 }
0x1130   : > { %v4183_v44 = vmul.f32 1.442695, %v4173_v33 }
0x1131   : > { %v4158_v37 = vpop.xlane.xlu0 %4157 }
0x1132   : > { %v4174_v21 = vsub.f32 %v4037_v35, %v4158_v37  ;;  %7149 = vpow2.f32 %v4183_v44 }
0x1134   : > { %v4185_v51 = vmul.f32 1.442695, %v4174_v21  ;;  %v8462_v22 = vpop.eup %7145 }
0x1135   : > { %v4195_v34 = vsel %vm1237_vm2, %v8462_v22, 0.0 }
0x1136   : > { %7151 = vpow2.f32 %v4185_v51  ;;  %v8465_v2 = vpop.eup %7147 }
0x1137   : > { %v4198_v47 = vsel %vm1237_vm2, %v8465_v2, 0.0 }
0x113c   : > { %v8469_v14 = vpop.eup %7149 }
0x113d   : > { %v4201_v53 = vsel %vm1237_vm2, %v8469_v14, 0.0 }
0x1140   : > { %v7152_v8 = vpop.eup %7151 }
0x1141   : > { %v4204_v61 = vsel %vm1237_vm2, %v7152_v8, 0.0 }
0x116e   : > { %v4087_v5 = vpop.f32.mrb[92].mxu0 }
0x116f   : > { %v6546_v42 = vpop.f32.mrb[93].mxu0  ;;  %v4159_v3 = vsel %vm1237_vm2, %v4087_v5, -inf }
0x1170   : > { %4160 = vmax.xlane.f32.xlu0 %v4159_v3  ;;  %v4090_v27 = vpop.f32.mrb[94].mxu0 }
0x1171   : > { %v6547_v24 = vpop.f32.mrb[95].mxu0  ;;  %v4162_v36 = vsel %vm1237_vm2, %v4090_v27, -inf }
0x1172   : > { %4163 = vmax.xlane.f32.xlu1 %v4162_v36  ;;  %v6963_v24 = vld [vmem:[#allocation10 + $0x50] sm:$0xff]  }
0x1174   : > { %4166 = vmax.xlane.f32.xlu0 %v4165_v52 }
0x1176   : > { %4169 = vmax.xlane.f32.xlu1 %v4168_v62 }
0x1178   : > { %4196 = vadd.xlane.f32.xlu0 %v4195_v34 }
0x117a   : > { %4199 = vadd.xlane.f32.xlu1 %v4198_v47 }
0x117c   : > { %4202 = vadd.xlane.f32.xlu0 %v4201_v53 }
0x117e   : > { %4205 = vadd.xlane.f32.xlu1 %v4204_v61 }
0x11fd   : > { %v4161_v9 = vpop.xlane.xlu0 %4160 }
0x11fe   : > { %v4175_v55 = vsub.f32 %v4087_v5, %v4161_v9 }
0x11ff   : > { %v4164_v19 = vpop.xlane.xlu1 %4163 }
0x1200   : > { %v4187_v32 = vmul.f32 1.442695, %v4175_v55  ;;  %v4176_v35 = vsub.f32 %v4090_v27, %v4164_v19 }
0x1201   : > { %v4167_v7 = vpop.xlane.xlu0 %4166 }
0x1202   : > { %v4177_v59 = vsub.f32 %v4140_v39, %v4167_v7  ;;  %v4189_v11 = vmul.f32 1.442695, %v4176_v35 }
0x1203   : > { %v4170_v49 = vpop.xlane.xlu1 %4169 }
0x1204   : > { %v4191_v58 = vmul.f32 1.442695, %v4177_v59  ;;  %v4178_v48 = vsub.f32 %v4143_v15, %v4170_v49 }
0x1205   : > { %v4197_v15 = vpop.xlane.xlu0 %4196 }
0x1206   : > { %7153 = vpow2.f32 %v4191_v58  ;;  %v4193_v17 = vmul.f32 1.442695, %v4178_v48 }
0x1207   : > { %7155 = vpow2.f32 %v4187_v32  ;;  %v4200_v31 = vpop.xlane.xlu1 %4199  ;;  %v6964_v32 = vld [vmem:[#allocation10 + $0x58] sm:$0xff]  }
0x1208   : > { %7157 = vpow2.f32 %v4193_v17 }
0x1209   : > { %7159 = vpow2.f32 %v4189_v11  ;;  %v4203_v10 = vpop.xlane.xlu0 %4202 }
0x120b   : > { %v4206_v6 = vpop.xlane.xlu1 %4205 }
0x120c   : > { %7161 = vrcp.f32 %v4206_v6 }
0x120d   : > { %7163 = vrcp.f32 %v4200_v31 }
0x120e   : > { %7165 = vrcp.f32 %v4203_v10 }
0x120f   : > { %7167 = vrcp.f32 %v4197_v15 }
0x1210   : > { %v8476_v45 = vpop.eup %7153 }
0x1211   : > { %v8478_v60 = vpop.eup %7155  ;;  %v4213_v57 = vsel %vm1237_vm2, %v8476_v45, 0.0 }
0x1212   : > { %v8482_v30 = vpop.eup %7157  ;;  %4214 = vadd.xlane.f32.xlu0 %v4213_v57  ;;  %v4207_v56 = vsel %vm1237_vm2, %v8478_v60, 0.0 }
0x1213   : > { %v4216_v20 = vsel %vm1237_vm2, %v8482_v30, 0.0  ;;  %v7160_v43 = vpop.eup %7159 }
0x1214   : > { %4217 = vadd.xlane.f32.xlu1 %v4216_v20  ;;  %v4210_v39 = vsel %vm1237_vm2, %v7160_v43, 0.0 }
0x1216   : > { %4208 = vadd.xlane.f32.xlu0 %v4207_v56  ;;  %v7162_v4 = vpop.eup %7161 }
0x1217   : > { %v7164_v23 = vpop.eup %7163  ;;  %v4230_v50 = vmul.f32 %v7162_v4, %v7152_v8 }
0x1218   : > { %v7166_v37 = vpop.eup %7165  ;;  %v4228_v21 = vmul.f32 %v7164_v23, %v8465_v2 }
0x1219   : > { %v7168_v46 = vpop.eup %7167  ;;  %v4229_v44 = vmul.f32 %v7166_v37, %v8469_v14 }
0x121a   : > { %v4227_v5 = vmul.f32 %v7168_v46, %v8462_v22 }
0x121b   : > { %v4236_v3 = vpack.c.bf16 %v4230_v50, %v4229_v44 }
0x121c   : > { %v4235_v27 = vpack.c.bf16 %v4228_v21, %v4227_v5 }
0x1225   : > { %4288 = vrot.lane.b32.xlu1 %v7929_v38, %s7471_s18 }
0x1229   : > { %4336 = vrot.lane.b32.xlu1 %v7935_v18, %s7471_s18 }
0x122c   : > { %4240 = vrot.lane.b32.xlu0 %v7917_v25, %s7471_s18 }
0x1230   : > { %4538 = vrot.lane.b32.xlu0 %v7863_v41, %s7472_s27 }
0x1234   : > { %4589 = vrot.lane.b32.xlu0 %v7874_v54, %s7472_s27 }
0x1238   : > { %4587 = vrot.lane.b32.xlu0 %v7872_v26, %s7472_s27 }
0x123c   : > { %4638 = vrot.lane.b32.xlu0 %v7887_v0, %s7472_s27 }
0x124d   : > { %4211 = vadd.xlane.f32.xlu1 %v4210_v39 }
0x125e   : > { %4384 = vrot.lane.b32.xlu1 %v7919_v29, %s7471_s18  ;;  %s7389_s18 = scalar_lea.vmem %s7388_s21, 2048 }
0x125f   : > { %p7391_p1 = scmp.lt.s32.totalorder %s7389_s18, %s7383_s13 }
0x1261   : > { %p7392_p2 = por %p7391_p1, %p7390_p12 }
0x1262   : > { %4536 = vrot.lane.b32.xlu1 %v7861_v40, %s7472_s27 }
0x1263   : > { %p7393_p13 = pnand %p7392_p2, %p7386_p7 }
0x1266   : > { %4640 = vrot.lane.b32.xlu1 %v7889_v1, %s7472_s27 }
0x126a   : > { %4691 = vrot.lane.b32.xlu1 %v7904_v13, %s7472_s27 }
0x126e   : > { %4689 = vrot.lane.b32.xlu1 %v7902_v12, %s7472_s27 }
0x129f   : > { %v4215_v16 = vpop.xlane.xlu0 %4214 }
0x12a1   : > { %v4218_v63 = vpop.xlane.xlu1 %4217 }
0x12a2   : > { %7169 = vrcp.f32 %v4218_v63 }
0x12a3   : > { %v4209_v33 = vpop.xlane.xlu0 %4208  ;;  %7171 = vrcp.f32 %v4215_v16 }
0x12a4   : > { %7173 = vrcp.f32 %v4209_v33 }
0x12a5   : > { %v4289_v51 = vpop.permute.xlu1 %4288 }
0x12a6   : > { %6561 = vmatpush3.bf16.msra.mxu1 %v4289_v51 }
0x12a7   : > { %v4241_v42 = vpop.permute.xlu0 %4240  ;;  %6572 = vmatprep.subr.bf16.mxu1 %v7469_v28 }
0x12a8   : > { %6555 = vmatpush3.bf16.msra.mxu0 %v4241_v42 }
0x12a9   : > { %6563 = vmatmul.mubr.msk.bf16.vlgmr.msra.gmra.mrb[136].mxu1 %vm1237_vm2, %v4236_v3  ;;  %6566 = vmatprep.subr.bf16.mxu0 %v7469_v28  ;;  %v4337_v36 = vpop.permute.xlu1 %4336 }
0x12aa   : > { %6574 = vmatprep.mubr.msk.bf16.mxu1 %vm7470_vm0, %v7469_v28 }
0x12ab   : > { %6557 = vmatmul.mubr.msk.bf16.vlgmr.msra.gmra.mrb[96].mxu0 %vm1237_vm2, %v4235_v27  ;;  %v4539_v53 = vpop.permute.xlu0 %4538 }
0x12ac   : > { %6567 = vmatpush3.bf16.msra.mxu0 %v4337_v36  ;;  %6568 = vmatprep.mubr.msk.bf16.mxu0 %vm7470_vm0, %v7469_v28  ;;  %v7170_v52 = vpop.eup %7169  ;;  %v4544_v19 = vsel %vm1048_vm1, %v4539_v53, 0 }
0x12ad   : > { %6578 = vmatprep.subr.bf16.mxu0 %v6963_v24  ;;  %v7172_v62 = vpop.eup %7171  ;;  %v4234_v2 = vmul.f32 %v7170_v52, %v8482_v30 }
0x12ae   : > { %v4233_v34 = vmul.f32 %v7172_v62, %v8476_v45  ;;  %v7174_v8 = vpop.eup %7173 }
0x12af   : > { %v4231_v9 = vmul.f32 %v7174_v8, %v8478_v60  ;;  %v4590_v49 = vpop.permute.xlu0 %4589 }
0x12b0   : > { %v4238_v47 = vpack.c.bf16 %v4234_v2, %v4233_v34  ;;  %v4595_v48 = vsel %vm1048_vm1, %v4590_v49, 0 }
0x12b3   : > { %v4588_v45 = vpop.permute.xlu0 %4587 }
0x12b7   : > { %v4639_v36 = vpop.permute.xlu0 %4638 }
0x12da   : > { %v4212_v22 = vpop.xlane.xlu1 %4211 }
0x12db   : > { %7175 = vrcp.f32 %v4212_v22 }
0x12de   : > { %v4385_v14 = vpop.permute.xlu1 %4384 }
0x12df   : > { %6573 = vmatpush3.bf16.msra.mxu1 %v4385_v14 }
0x12e0   : > { %6590 = vmatprep.subr.bf16.mxu1 %v7469_v28 }
0x12e2   : > { %6575 = vmatmul.mubr.msk.bf16.vlgmr.msra.gmra.mrb[140].mxu1 %vm1237_vm2, %v4238_v47  ;;  %v4537_v7 = vpop.permute.xlu1 %4536 }
0x12e3   : > { %6592 = vmatprep.mubr.msk.bf16.mxu1 %vm7470_vm0, %v7469_v28 }
0x12e5   : > { %v7176_v61 = vpop.eup %7175 }
0x12e6   : > { %v4232_v55 = vmul.f32 %v7176_v61, %v7160_v43  ;;  %v4641_v58 = vpop.permute.xlu1 %4640 }
0x12e7   : > { %v4646_v10 = vsel %vm1048_vm1, %v4641_v58, 0 }
0x12e8   : > { %6591 = vmatpush3.bf16.xpose.msra.mxu1 %v4544_v19  ;;  %v4237_v59 = vpack.c.bf16 %v4232_v55, %v4231_v9 }
0x12e9   : > { %6596 = vmatprep.subr.bf16.mxu1 %v7469_v28 }
0x12ea   : > { %6569 = vmatmul.mubr.msk.bf16.vlgmr.msra.gmra.mrb[100].mxu0 %vm1237_vm2, %v4237_v59  ;;  %v4692_v17 = vpop.permute.xlu1 %4691 }
0x12eb   : > { %6579 = vmatpush3.bf16.msra.mxu0 %v6963_v24  ;;  %v4697_v60 = vsel %vm1048_vm1, %v4692_v17, 0 }
0x12ec   : > { %6580 = vmatprep.subr.bf16.mxu0 %v6964_v32 }
0x12ee   : > { %v4690_v57 = vpop.permute.xlu1 %4689 }
0x12ef   : > { %6593 = vmatmul.mubr.msk.bf16.vlgmr.msra.gmra.mrb[144].mxu1 %vm1048_vm1, %v4537_v7  ;;  %6581 = vmatpush3.bf16.msra.mxu0 %v6964_v32 }
0x12f0   : > { %6597 = vmatpush3.bf16.xpose.msra.mxu1 %v4595_v48  ;;  %6598 = vmatprep.mubr.msk.bf16.mxu1 %vm7470_vm0, %v7469_v28 }
0x12f1   : > { %6608 = vmatprep.subr.bf16.mxu1 %v7469_v28  ;;  %6602 = vmatprep.subr.bf16.mxu0 %v7469_v28 }
0x12f7   : > { %6599 = vmatmul.mubr.msk.bf16.vlgmr.msra.gmra.mrb[148].mxu1 %vm1048_vm1, %v4588_v45 }
0x12f8   : > { %6609 = vmatpush3.bf16.xpose.msra.mxu1 %v4697_v60  ;;  %6610 = vmatprep.mubr.msk.bf16.mxu1 %vm7470_vm0, %v7469_v28 }
0x12f9   : > { %6620 = vmatprep.subr.bf16.mxu1 %v7469_v28 }
0x12ff   : > { %6611 = vmatmul.mubr.msk.bf16.vlgmr.msra.gmra.mrb[152].mxu1 %vm1048_vm1, %v4690_v57 }
0x1300   : > { %6622 = vmatprep.mubr.msk.bf16.mxu1 %vm7470_vm0, %v7469_v28 }
0x137c   : > { %v4328_v30 = vpop.f32.mrb[136].mxu1 }
0x137d   : > { %v6564_v20 = vpop.f32.mrb[137].mxu1 }
0x137e   : > { %v4280_v56 = vpop.f32.mrb[96].mxu0  ;;  %v4331_v35 = vpop.f32.mrb[138].mxu1 }
0x137f   : > { %v4432_v11 = vpack.c.bf16 %v4331_v35, %v4328_v30  ;;  %v6558_v43 = vpop.f32.mrb[97].mxu0  ;;  %v6565_v39 = vpop.f32.mrb[139].mxu1 }
0x1380   : > { %v4283_v31 = vpop.f32.mrb[98].mxu0 }
0x1381   : > { %v4431_v15 = vpack.c.bf16 %v4283_v31, %v4280_v56  ;;  %v6559_v6 = vpop.f32.mrb[99].mxu0 }
0x1383   : > { %6582 = vmatprep.mubr.msk.bf16.mxu0 %vm1048_vm1, %v4431_v15 }
0x1384   : > { %6583 = vmatmul.mubr.msk.bf16.vlgmr.msra.gmra.mrb[52].mxu0 %vm1048_vm1, %v4432_v11 }
0x1385   : > { %6603 = vmatpush3.bf16.xpose.msra.mxu0 %v4646_v10 }
0x1386   : > { %6614 = vmatprep.subr.bf16.mxu0 %v7469_v28 }
0x13b5   : > { %v4424_v16 = vpop.f32.mrb[140].mxu1 }
0x13b6   : > { %v6576_v4 = vpop.f32.mrb[141].mxu1 }
0x13b7   : > { %v4427_v23 = vpop.f32.mrb[142].mxu1 }
0x13b8   : > { %v4434_v63 = vpack.c.bf16 %v4427_v23, %v4424_v16  ;;  %v6577_v37 = vpop.f32.mrb[143].mxu1 }
0x13bd   : > { %v4376_v50 = vpop.f32.mrb[100].mxu0 }
0x13be   : > { %v6570_v33 = vpop.f32.mrb[101].mxu0 }
0x13bf   : > { %v4379_v46 = vpop.f32.mrb[102].mxu0 }
0x13c0   : > { %v4433_v21 = vpack.c.bf16 %v4379_v46, %v4376_v50  ;;  %v6571_v44 = vpop.f32.mrb[103].mxu0 }
0x13c2   : > { %6586 = vmatprep.mubr.msk.bf16.mxu0 %vm1048_vm1, %v4433_v21  ;;  %v4580_v51 = vpop.f32.mrb[144].mxu1 }
0x13c3   : > { %6587 = vmatmul.mubr.msk.bf16.gmra.mrb[56].mxu0 %vm1048_vm1, %v4434_v63  ;;  %v6594_v5 = vpop.f32.mrb[145].mxu1  ;;  %v4740_v42 = vsel %vm1237_vm2, %v4580_v51, -inf }
0x13c4   : > { %4741 = vmax.xlane.f32.xlu0 %v4740_v42  ;;  %v4583_v3 = vpop.f32.mrb[146].mxu1  ;;  %6604 = vmatprep.mubr.msk.bf16.mxu0 %vm7470_vm0, %v7469_v28 }
0x13c5   : > { %v6595_v27 = vpop.f32.mrb[147].mxu1  ;;  %v4743_v24 = vsel %vm1237_vm2, %v4583_v3, -inf }
0x13c6   : > { %4744 = vmax.xlane.f32.xlu1 %v4743_v24 }
0x13ca   : > { %v4631_v52 = vpop.f32.mrb[148].mxu1 }
0x13cb   : > { %v6600_v22 = vpop.f32.mrb[149].mxu1  ;;  %6605 = vmatmul.mubr.msk.bf16.vlgmr.msra.gmra.mrb[104].mxu0 %vm1048_vm1, %v4639_v36  ;;  %v4746_v62 = vsel %vm1237_vm2, %v4631_v52, -inf }
0x13cc   : > { %4747 = vmax.xlane.f32.xlu0 %v4746_v62  ;;  %v4634_v2 = vpop.f32.mrb[150].mxu1  ;;  %6616 = vmatprep.mubr.msk.bf16.mxu0 %vm7470_vm0, %v7469_v28 }
0x13cd   : > { %v6601_v34 = vpop.f32.mrb[151].mxu1  ;;  %v4749_v14 = vsel %vm1237_vm2, %v4634_v2, -inf }
0x13d0   : > { %4750 = vmax.xlane.f32.xlu0 %v4749_v14 }
0x13d2   : > { %v4733_v47 = vpop.f32.mrb[152].mxu1 }
0x13d3   : > { %v6612_v8 = vpop.f32.mrb[153].mxu1  ;;  %v4758_v43 = vsel %vm1237_vm2, %v4733_v47, -inf }
0x13d4   : > { %v4736_v53 = vpop.f32.mrb[154].mxu1 }
0x13d5   : > { %v6613_v61 = vpop.f32.mrb[155].mxu1  ;;  %v4761_v31 = vsel %vm1237_vm2, %v4736_v53, -inf }
0x1451   : > { %v4742_v9 = vpop.xlane.xlu0 %4741 }
0x1452   : > { %v4764_v7 = vsub.f32 %v4580_v51, %v4742_v9 }
0x1453   : > { %v4745_v19 = vpop.xlane.xlu1 %4744 }
0x1454   : > { %v4765_v59 = vsub.f32 %v4583_v3, %v4745_v19  ;;  %v4772_v49 = vmul.f32 1.442695, %v4764_v7 }
0x1456   : > { %v4774_v48 = vmul.f32 1.442695, %v4765_v59  ;;  %7177 = vpow2.f32 %v4772_v49 }
0x1458   : > { %7179 = vpow2.f32 %v4774_v48  ;;  %v6965_v48 = vld [vmem:[#allocation10 + $0x60] sm:$0xff]  }
0x1459   : > { %v4748_v55 = vpop.xlane.xlu0 %4747 }
0x145a   : > { %v4766_v58 = vsub.f32 %v4631_v52, %v4748_v55 }
0x145c   : > { %v4776_v45 = vmul.f32 1.442695, %v4766_v58 }
0x145d   : > { %v4751_v32 = vpop.xlane.xlu0 %4750 }
0x145e   : > { %v4767_v17 = vsub.f32 %v4634_v2, %v4751_v32  ;;  %7181 = vpow2.f32 %v4776_v45 }
0x1460   : > { %v4778_v60 = vmul.f32 1.442695, %v4767_v17  ;;  %v8566_v39 = vpop.eup %7177 }
0x1461   : > { %v4788_v6 = vsel %vm1237_vm2, %v8566_v39, 0.0 }
0x1462   : > { %7183 = vpow2.f32 %v4778_v60  ;;  %v8569_v15 = vpop.eup %7179 }
0x1463   : > { %v4791_v16 = vsel %vm1237_vm2, %v8569_v15, 0.0 }
0x1468   : > { %v8573_v10 = vpop.eup %7181 }
0x1469   : > { %v4794_v23 = vsel %vm1237_vm2, %v8573_v10, 0.0 }
0x146c   : > { %v7184_v4 = vpop.eup %7183 }
0x146d   : > { %v4797_v63 = vsel %vm1237_vm2, %v7184_v4, 0.0 }
0x149e   : > { %v4682_v57 = vpop.f32.mrb[104].mxu0 }
0x149f   : > { %v6606_v30 = vpop.f32.mrb[105].mxu0  ;;  %v4752_v20 = vsel %vm1237_vm2, %v4682_v57, -inf }
0x14a0   : > { %4753 = vmax.xlane.f32.xlu0 %v4752_v20  ;;  %v4685_v56 = vpop.f32.mrb[106].mxu0 }
0x14a1   : > { %v6607_v35 = vpop.f32.mrb[107].mxu0  ;;  %v4755_v11 = vsel %vm1237_vm2, %v4685_v56, -inf }
0x14a2   : > { %4756 = vmax.xlane.f32.xlu1 %v4755_v11 }
0x14a4   : > { %4759 = vmax.xlane.f32.xlu0 %v4758_v43 }
0x14a6   : > { %4762 = vmax.xlane.f32.xlu1 %v4761_v31 }
0x14a8   : > { %4789 = vadd.xlane.f32.xlu0 %v4788_v6 }
0x14aa   : > { %4792 = vadd.xlane.f32.xlu1 %v4791_v16 }
0x14ac   : > { %4795 = vadd.xlane.f32.xlu0 %v4794_v23 }
0x14ae   : > { %4798 = vadd.xlane.f32.xlu1 %v4797_v63 }
0x152d   : > { %v4754_v37 = vpop.xlane.xlu0 %4753 }
0x152e   : > { %v4768_v50 = vsub.f32 %v4682_v57, %v4754_v37 }
0x152f   : > { %v4757_v33 = vpop.xlane.xlu1 %4756 }
0x1530   : > { %v4780_v44 = vmul.f32 1.442695, %v4768_v50  ;;  %v4769_v2 = vsub.f32 %v4685_v56, %v4757_v33 }
0x1531   : > { %v4760_v46 = vpop.xlane.xlu0 %4759 }
0x1532   : > { %v4770_v21 = vsub.f32 %v4733_v47, %v4760_v46  ;;  %v4782_v34 = vmul.f32 1.442695, %v4769_v2 }
0x1533   : > { %v4763_v51 = vpop.xlane.xlu1 %4762 }
0x1534   : > { %v4784_v5 = vmul.f32 1.442695, %v4770_v21  ;;  %v4771_v42 = vsub.f32 %v4736_v53, %v4763_v51 }
0x1536   : > { %7185 = vpow2.f32 %v4784_v5  ;;  %v4786_v3 = vmul.f32 1.442695, %v4771_v42 }
0x1537   : > { %7187 = vpow2.f32 %v4780_v44 }
0x1538   : > { %7189 = vpow2.f32 %v4786_v3 }
0x1539   : > { %7191 = vpow2.f32 %v4782_v34 }
0x1540   : > { %v8580_v27 = vpop.eup %7185 }
0x1541   : > { %v8582_v24 = vpop.eup %7187  ;;  %v4806_v36 = vsel %vm1237_vm2, %v8580_v27, 0.0 }
0x1542   : > { %v8586_v52 = vpop.eup %7189  ;;  %4807 = vadd.xlane.f32.xlu0 %v4806_v36  ;;  %v4800_v62 = vsel %vm1237_vm2, %v8582_v24, 0.0 }
0x1543   : > { %v4809_v22 = vsel %vm1237_vm2, %v8586_v52, 0.0  ;;  %v7192_v14 = vpop.eup %7191 }
0x1544   : > { %4810 = vadd.xlane.f32.xlu1 %v4809_v22  ;;  %v4803_v47 = vsel %vm1237_vm2, %v7192_v14, 0.0 }
0x1546   : > { %4801 = vadd.xlane.f32.xlu0 %v4800_v62 }
0x1555   : > { %4879 = vrot.lane.b32.xlu1 %v7929_v38, %s7472_s27 }
0x1559   : > { %4926 = vrot.lane.b32.xlu1 %v7935_v18, %s7472_s27 }
0x155c   : > { %4832 = vrot.lane.b32.xlu0 %v7917_v25, %s7472_s27 }
0x1560   : > { %5127 = vrot.lane.b32.xlu0 %v7863_v41, %s7473_s24  ;;  %v4793_v41 = vpop.xlane.xlu1 %4792 }
0x1564   : > { %5178 = vrot.lane.b32.xlu0 %v7874_v54, %s7473_s24  ;;  %v4799_v54 = vpop.xlane.xlu1 %4798 }
0x1565   : > { %7193 = vrcp.f32 %v4799_v54 }
0x1566   : > { %7195 = vrcp.f32 %v4793_v41 }
0x1568   : > { %5176 = vrot.lane.b32.xlu0 %v7872_v26, %s7473_s24  ;;  %v4790_v26 = vpop.xlane.xlu0 %4789 }
0x156c   : > { %5227 = vrot.lane.b32.xlu0 %v7887_v0, %s7473_s24  ;;  %v4796_v0 = vpop.xlane.xlu0 %4795 }
0x156d   : > { %7197 = vrcp.f32 %v4796_v0 }
0x156e   : > { %7199 = vrcp.f32 %v4790_v26 }
0x156f   : > { %v7194_v53 = vpop.eup %7193 }
0x157d   : > { %4804 = vadd.xlane.f32.xlu1 %v4803_v47 }
0x158e   : > { %4973 = vrot.lane.b32.xlu1 %v7919_v29, %s7472_s27 }
0x1592   : > { %5125 = vrot.lane.b32.xlu1 %v7861_v40, %s7473_s24  ;;  %v7196_v40 = vpop.eup %7195 }
0x1593   : > { %v7198_v9 = vpop.eup %7197 }
0x1594   : > { %v7200_v19 = vpop.eup %7199 }
0x1595   : > { %v4820_v59 = vmul.f32 %v7200_v19, %v8566_v39 }
0x1596   : > { %5229 = vrot.lane.b32.xlu1 %v7889_v1, %s7473_s24  ;;  %v4823_v1 = vmul.f32 %v7194_v53, %v7184_v4  ;;  %v6966_v4 = vld [vmem:[#allocation10 + $0x68] sm:$0xff]  }
0x159a   : > { %5280 = vrot.lane.b32.xlu1 %v7904_v13, %s7473_s24  ;;  %v4821_v13 = vmul.f32 %v7196_v40, %v8569_v15 }
0x159c   : > { %v4828_v58 = vpack.c.bf16 %v4821_v13, %v4820_v59 }
0x159e   : > { %5278 = vrot.lane.b32.xlu1 %v7902_v12, %s7473_s24  ;;  %v4822_v12 = vmul.f32 %v7198_v9, %v8573_v10 }
0x15a0   : > { %v4829_v49 = vpack.c.bf16 %v4823_v1, %v4822_v12 }
0x15cf   : > { %v4808_v8 = vpop.xlane.xlu0 %4807 }
0x15d1   : > { %v4811_v61 = vpop.xlane.xlu1 %4810 }
0x15d2   : > { %7201 = vrcp.f32 %v4811_v61 }
0x15d3   : > { %v4802_v55 = vpop.xlane.xlu0 %4801  ;;  %7203 = vrcp.f32 %v4808_v8 }
0x15d4   : > { %7205 = vrcp.f32 %v4802_v55 }
0x15d5   : > { %v4880_v7 = vpop.permute.xlu1 %4879 }
0x15d6   : > { %6621 = vmatpush3.bf16.msra.mxu1 %v4880_v7 }
0x15d7   : > { %v4833_v32 = vpop.permute.xlu0 %4832  ;;  %6632 = vmatprep.subr.bf16.mxu1 %v7469_v28 }
0x15d8   : > { %6615 = vmatpush3.bf16.msra.mxu0 %v4833_v32 }
0x15d9   : > { %6623 = vmatmul.mubr.msk.bf16.vlgmr.msra.gmra.mrb[156].mxu1 %vm1237_vm2, %v4829_v49  ;;  %6626 = vmatprep.subr.bf16.mxu0 %v7469_v28  ;;  %v4927_v17 = vpop.permute.xlu1 %4926 }
0x15da   : > { %6634 = vmatprep.mubr.msk.bf16.mxu1 %vm7470_vm0, %v7469_v28 }
0x15db   : > { %6617 = vmatmul.mubr.msk.bf16.vlgmr.msra.gmra.mrb[108].mxu0 %vm1237_vm2, %v4828_v58  ;;  %v5128_v43 = vpop.permute.xlu0 %5127 }
0x15dc   : > { %6627 = vmatpush3.bf16.msra.mxu0 %v4927_v17  ;;  %6628 = vmatprep.mubr.msk.bf16.mxu0 %vm7470_vm0, %v7469_v28  ;;  %v7202_v45 = vpop.eup %7201  ;;  %v5133_v6 = vsel %vm1048_vm1, %v5128_v43, 0 }
0x15dd   : > { %6638 = vmatprep.subr.bf16.mxu0 %v6965_v48  ;;  %v7204_v57 = vpop.eup %7203  ;;  %v4827_v30 = vmul.f32 %v7202_v45, %v8586_v52 }
0x15de   : > { %v4826_v20 = vmul.f32 %v7204_v57, %v8580_v27  ;;  %v7206_v11 = vpop.eup %7205 }
0x15df   : > { %v4824_v31 = vmul.f32 %v7206_v11, %v8582_v24  ;;  %v5179_v23 = vpop.permute.xlu0 %5178 }
0x15e0   : > { %v4831_v35 = vpack.c.bf16 %v4827_v30, %v4826_v20  ;;  %v5184_v37 = vsel %vm1048_vm1, %v5179_v23, 0 }
0x15e3   : > { %v5177_v33 = vpop.permute.xlu0 %5176 }
0x15e7   : > { %v5228_v13 = vpop.permute.xlu0 %5227 }
0x160a   : > { %v4805_v60 = vpop.xlane.xlu1 %4804 }
0x160b   : > { %7207 = vrcp.f32 %v4805_v60 }
0x160e   : > { %v4974_v56 = vpop.permute.xlu1 %4973 }
0x160f   : > { %6633 = vmatpush3.bf16.msra.mxu1 %v4974_v56 }
0x1610   : > { %6650 = vmatprep.subr.bf16.mxu1 %v7469_v28 }
0x1612   : > { %6635 = vmatmul.mubr.msk.bf16.vlgmr.msra.gmra.mrb[160].mxu1 %vm1237_vm2, %v4831_v35  ;;  %v5126_v10 = vpop.permute.xlu1 %5125 }
0x1613   : > { %6652 = vmatprep.mubr.msk.bf16.mxu1 %vm7470_vm0, %v7469_v28 }
0x1615   : > { %v7208_v39 = vpop.eup %7207 }
0x1616   : > { %v4825_v15 = vmul.f32 %v7208_v39, %v7192_v14  ;;  %v5230_v63 = vpop.permute.xlu1 %5229 }
0x1617   : > { %v5235_v62 = vsel %vm1048_vm1, %v5230_v63, 0 }
0x1618   : > { %6651 = vmatpush3.bf16.xpose.msra.mxu1 %v5133_v6  ;;  %v4830_v16 = vpack.c.bf16 %v4825_v15, %v4824_v31 }
0x1619   : > { %6656 = vmatprep.subr.bf16.mxu1 %v7469_v28 }
0x161a   : > { %6629 = vmatmul.mubr.msk.bf16.vlgmr.msra.gmra.mrb[112].mxu0 %vm1237_vm2, %v4830_v16  ;;  %v5281_v50 = vpop.permute.xlu1 %5280 }
0x161b   : > { %6639 = vmatpush3.bf16.msra.mxu0 %v6965_v48  ;;  %v5286_v46 = vsel %vm1048_vm1, %v5281_v50, 0 }
0x161c   : > { %6640 = vmatprep.subr.bf16.mxu0 %v6966_v4 }
0x161e   : > { %v5279_v21 = vpop.permute.xlu1 %5278 }
0x161f   : > { %6653 = vmatmul.mubr.msk.bf16.vlgmr.msra.gmra.mrb[164].mxu1 %vm1048_vm1, %v5126_v10  ;;  %6641 = vmatpush3.bf16.msra.mxu0 %v6966_v4 }
0x1620   : > { %6657 = vmatpush3.bf16.xpose.msra.mxu1 %v5184_v37  ;;  %6658 = vmatprep.mubr.msk.bf16.mxu1 %vm7470_vm0, %v7469_v28 }
0x1621   : > { %6668 = vmatprep.subr.bf16.mxu1 %v7469_v28  ;;  %6662 = vmatprep.subr.bf16.mxu0 %v7469_v28 }
0x1627   : > { %6659 = vmatmul.mubr.msk.bf16.vlgmr.msra.gmra.mrb[168].mxu1 %vm1048_vm1, %v5177_v33 }
0x1628   : > { %6669 = vmatpush3.bf16.xpose.msra.mxu1 %v5286_v46  ;;  %6670 = vmatprep.mubr.msk.bf16.mxu1 %vm7470_vm0, %v7469_v28 }
0x1629   : > { %6680 = vmatprep.subr.bf16.mxu1 %v7469_v28 }
0x162f   : > { %6671 = vmatmul.mubr.msk.bf16.vlgmr.msra.gmra.mrb[172].mxu1 %vm1048_vm1, %v5279_v21 }
0x1630   : > { %6682 = vmatprep.mubr.msk.bf16.mxu1 %vm7470_vm0, %v7469_v28 }
0x16ac   : > { %v4919_v44 = vpop.f32.mrb[156].mxu1 }
0x16ad   : > { %v6624_v51 = vpop.f32.mrb[157].mxu1 }
0x16ae   : > { %v4872_v5 = vpop.f32.mrb[108].mxu0  ;;  %v4922_v42 = vpop.f32.mrb[158].mxu1 }
0x16af   : > { %v5021_v3 = vpack.c.bf16 %v4922_v42, %v4919_v44  ;;  %v6618_v27 = vpop.f32.mrb[109].mxu0  ;;  %v6625_v24 = vpop.f32.mrb[159].mxu1 }
0x16b0   : > { %v4875_v36 = vpop.f32.mrb[110].mxu0 }
0x16b1   : > { %v5020_v52 = vpack.c.bf16 %v4875_v36, %v4872_v5  ;;  %v6619_v22 = vpop.f32.mrb[111].mxu0 }
0x16b3   : > { %6642 = vmatprep.mubr.msk.bf16.mxu0 %vm1048_vm1, %v5020_v52 }
0x16b4   : > { %6643 = vmatmul.mubr.msk.bf16.vlgmr.msra.gmra.mrb[52].mxu0 %vm1048_vm1, %v5021_v3 }
0x16b5   : > { %6663 = vmatpush3.bf16.xpose.msra.mxu0 %v5235_v62 }
0x16b6   : > { %6674 = vmatprep.subr.bf16.mxu0 %v7469_v28 }
0x16e5   : > { %v5013_v2 = vpop.f32.mrb[160].mxu1 }
0x16e6   : > { %v6636_v34 = vpop.f32.mrb[161].mxu1 }
0x16e7   : > { %v5016_v14 = vpop.f32.mrb[162].mxu1 }
0x16e8   : > { %v5023_v47 = vpack.c.bf16 %v5016_v14, %v5013_v2  ;;  %v6637_v41 = vpop.f32.mrb[163].mxu1 }
0x16ed   : > { %v4966_v26 = vpop.f32.mrb[112].mxu0 }
0x16ee   : > { %v6630_v54 = vpop.f32.mrb[113].mxu0 }
0x16ef   : > { %v4969_v0 = vpop.f32.mrb[114].mxu0 }
0x16f0   : > { %v5022_v8 = vpack.c.bf16 %v4969_v0, %v4966_v26  ;;  %v6631_v53 = vpop.f32.mrb[115].mxu0 }
0x16f2   : > { %6646 = vmatprep.mubr.msk.bf16.mxu0 %vm1048_vm1, %v5022_v8  ;;  %v5169_v40 = vpop.f32.mrb[164].mxu1 }
0x16f3   : > { %6647 = vmatmul.mubr.msk.bf16.gmra.mrb[56].mxu0 %vm1048_vm1, %v5023_v47  ;;  %v6654_v61 = vpop.f32.mrb[165].mxu1  ;;  %v5329_v9 = vsel %vm1237_vm2, %v5169_v40, -inf }
0x16f4   : > { %5330 = vmax.xlane.f32.xlu0 %v5329_v9  ;;  %v5172_v1 = vpop.f32.mrb[166].mxu1  ;;  %6664 = vmatprep.mubr.msk.bf16.mxu0 %vm7470_vm0, %v7469_v28 }
0x16f5   : > { %v6655_v55 = vpop.f32.mrb[167].mxu1  ;;  %v5332_v19 = vsel %vm1237_vm2, %v5172_v1, -inf }
0x16f6   : > { %5333 = vmax.xlane.f32.xlu1 %v5332_v19 }
0x16fa   : > { %v5220_v12 = vpop.f32.mrb[168].mxu1 }
0x16fb   : > { %v6660_v7 = vpop.f32.mrb[169].mxu1  ;;  %6665 = vmatmul.mubr.msk.bf16.vlgmr.msra.gmra.mrb[116].mxu0 %vm1048_vm1, %v5228_v13  ;;  %v5335_v59 = vsel %vm1237_vm2, %v5220_v12, -inf }
0x16fc   : > { %5336 = vmax.xlane.f32.xlu0 %v5335_v59  ;;  %v5223_v32 = vpop.f32.mrb[170].mxu1  ;;  %6676 = vmatprep.mubr.msk.bf16.mxu0 %vm7470_vm0, %v7469_v28 }
0x16fd   : > { %v6661_v49 = vpop.f32.mrb[171].mxu1  ;;  %v5338_v58 = vsel %vm1237_vm2, %v5223_v32, -inf }
0x1700   : > { %5339 = vmax.xlane.f32.xlu0 %v5338_v58 }
0x1702   : > { %v5322_v48 = vpop.f32.mrb[172].mxu1 }
0x1703   : > { %v6672_v17 = vpop.f32.mrb[173].mxu1  ;;  %v5347_v33 = vsel %vm1237_vm2, %v5322_v48, -inf }
0x1704   : > { %v5325_v45 = vpop.f32.mrb[174].mxu1 }
0x1705   : > { %v6673_v60 = vpop.f32.mrb[175].mxu1  ;;  %v5350_v21 = vsel %vm1237_vm2, %v5325_v45, -inf }
0x1781   : > { %v5331_v57 = vpop.xlane.xlu0 %5330 }
0x1782   : > { %v5353_v56 = vsub.f32 %v5169_v40, %v5331_v57 }
0x1783   : > { %v5334_v20 = vpop.xlane.xlu1 %5333 }
0x1784   : > { %v5354_v35 = vsub.f32 %v5172_v1, %v5334_v20  ;;  %v5361_v43 = vmul.f32 1.442695, %v5353_v56 }
0x1786   : > { %v5363_v31 = vmul.f32 1.442695, %v5354_v35  ;;  %7209 = vpow2.f32 %v5361_v43 }
0x1788   : > { %7211 = vpow2.f32 %v5363_v31 }
0x1789   : > { %v5337_v30 = vpop.xlane.xlu0 %5336 }
0x178a   : > { %v5355_v39 = vsub.f32 %v5220_v12, %v5337_v30 }
0x178c   : > { %v5365_v6 = vmul.f32 1.442695, %v5355_v39 }
0x178d   : > { %v5340_v11 = vpop.xlane.xlu0 %5339 }
0x178e   : > { %v5356_v15 = vsub.f32 %v5223_v32, %v5340_v11  ;;  %7213 = vpow2.f32 %v5365_v6 }
0x1790   : > { %v5367_v10 = vmul.f32 1.442695, %v5356_v15  ;;  %v8670_v46 = vpop.eup %7209 }
0x1791   : > { %v5377_v51 = vsel %vm1237_vm2, %v8670_v46, 0.0 }
0x1792   : > { %7215 = vpow2.f32 %v5367_v10  ;;  %v7212_v44 = vpop.eup %7211 }
0x1793   : > { %v5380_v42 = vsel %vm1237_vm2, %v7212_v44, 0.0 }
0x1798   : > { %v7214_v5 = vpop.eup %7213 }
0x1799   : > { %v5383_v27 = vsel %vm1237_vm2, %v7214_v5, 0.0 }
0x179c   : > { %v7216_v3 = vpop.eup %7215 }
0x179d   : > { %v5386_v24 = vsel %vm1237_vm2, %v7216_v3, 0.0 }
0x17ce   : > { %v5271_v16 = vpop.f32.mrb[116].mxu0 }
0x17cf   : > { %v6666_v4 = vpop.f32.mrb[117].mxu0  ;;  %v5341_v23 = vsel %vm1237_vm2, %v5271_v16, -inf }
0x17d0   : > { %5342 = vmax.xlane.f32.xlu0 %v5341_v23  ;;  %v5274_v63 = vpop.f32.mrb[118].mxu0 }
0x17d1   : > { %v6667_v37 = vpop.f32.mrb[119].mxu0  ;;  %v5344_v50 = vsel %vm1237_vm2, %v5274_v63, -inf }
0x17d2   : > { %5345 = vmax.xlane.f32.xlu1 %v5344_v50  ;;  %v6967_v37 = vld [vmem:[#allocation10 + $0x70] sm:$0xff]   ;;  %v6968_v50 = vld [vmem:[#allocation10 + $0x78] sm:$0xff]  }
0x17d4   : > { %5348 = vmax.xlane.f32.xlu0 %v5347_v33 }
0x17d6   : > { %5351 = vmax.xlane.f32.xlu1 %v5350_v21 }
0x17d8   : > { %5378 = vadd.xlane.f32.xlu0 %v5377_v51 }
0x17da   : > { %5381 = vadd.xlane.f32.xlu1 %v5380_v42 }
0x17dc   : > { %5384 = vadd.xlane.f32.xlu0 %v5383_v27 }
0x17de   : > { %5387 = vadd.xlane.f32.xlu1 %v5386_v24 }
0x185d   : > { %v5343_v36 = vpop.xlane.xlu0 %5342 }
0x185e   : > { %v5357_v52 = vsub.f32 %v5271_v16, %v5343_v36 }
0x185f   : > { %v5346_v22 = vpop.xlane.xlu1 %5345 }
0x1860   : > { %v5369_v34 = vmul.f32 1.442695, %v5357_v52  ;;  %v5358_v9 = vsub.f32 %v5274_v63, %v5346_v22 }
0x1861   : > { %v5349_v62 = vpop.xlane.xlu0 %5348 }
0x1862   : > { %v5359_v2 = vsub.f32 %v5322_v48, %v5349_v62  ;;  %v5371_v1 = vmul.f32 1.442695, %v5358_v9 }
0x1863   : > { %v5352_v14 = vpop.xlane.xlu1 %5351 }
0x1864   : > { %v5373_v47 = vmul.f32 1.442695, %v5359_v2  ;;  %v5360_v41 = vsub.f32 %v5325_v45, %v5352_v14 }
0x1865   : > { %v5379_v12 = vpop.xlane.xlu0 %5378 }
0x1866   : > { %7217 = vpow2.f32 %v5373_v47  ;;  %v5375_v26 = vmul.f32 1.442695, %v5360_v41 }
0x1867   : > { %7219 = vpow2.f32 %v5369_v34  ;;  %v5382_v13 = vpop.xlane.xlu1 %5381 }
0x1868   : > { %7221 = vpow2.f32 %v5375_v26 }
0x1869   : > { %7223 = vpow2.f32 %v5371_v1 }
0x186b   : > { %v5388_v7 = vpop.xlane.xlu1 %5387 }
0x186c   : > { %7225 = vrcp.f32 %v5388_v7 }
0x186d   : > { %7227 = vrcp.f32 %v5382_v13 }
0x1870   : > { %v7218_v54 = vpop.eup %7217 }
0x1871   : > { %v8678_v0 = vpop.eup %7219  ;;  %v5395_v8 = vsel %vm1237_vm2, %v7218_v54, 0.0 }
0x1872   : > { %v7222_v53 = vpop.eup %7221  ;;  %5396 = vadd.xlane.f32.xlu0 %v5395_v8  ;;  %v5389_v61 = vsel %vm1237_vm2, %v8678_v0, 0.0 }
0x1873   : > { %v5398_v40 = vsel %vm1237_vm2, %v7222_v53, 0.0  ;;  %v7224_v55 = vpop.eup %7223 }
0x1874   : > { %5399 = vadd.xlane.f32.xlu1 %v5398_v40  ;;  %v5392_v19 = vsel %vm1237_vm2, %v7224_v55, 0.0 }
0x1876   : > { %5390 = vadd.xlane.f32.xlu0 %v5389_v61 }
0x1885   : > { %5468 = vrot.lane.b32.xlu1 %v7929_v38, %s7473_s24  ;;  %v5385_v38 = vpop.xlane.xlu0 %5384 }
0x1886   : > { %7229 = vrcp.f32 %v5385_v38 }
0x1887   : > { %7231 = vrcp.f32 %v5379_v12 }
0x1889   : > { %5515 = vrot.lane.b32.xlu1 %v7935_v18, %s7473_s24 }
0x188c   : > { %5421 = vrot.lane.b32.xlu0 %v7917_v25, %s7473_s24  ;;  %v7226_v25 = vpop.eup %7225 }
0x188d   : > { %v7228_v59 = vpop.eup %7227  ;;  %v5412_v58 = vmul.f32 %v7226_v25, %v7216_v3 }
0x188e   : > { %v5410_v45 = vmul.f32 %v7228_v59, %v7212_v44 }
0x1890   : > { %v7230_v49 = vpop.eup %7229 }
0x1891   : > { %v7232_v17 = vpop.eup %7231  ;;  %v5411_v60 = vmul.f32 %v7230_v49, %v7214_v5 }
0x1893   : > { %v5418_v20 = vpack.c.bf16 %v5412_v58, %v5411_v60 }
0x18ad   : > { %5393 = vadd.xlane.f32.xlu1 %v5392_v19 }
0x18be   : > { %5562 = vrot.lane.b32.xlu1 %v7919_v29, %s7473_s24  ;;  %v5409_v29 = vmul.f32 %v7232_v17, %v8670_v46 }
0x18c0   : > { %v5417_v56 = vpack.c.bf16 %v5410_v45, %v5409_v29 }
0x18ff   : > { %v5397_v18 = vpop.xlane.xlu0 %5396 }
0x1901   : > { %v5400_v32 = vpop.xlane.xlu1 %5399 }
0x1902   : > { %7233 = vrcp.f32 %v5400_v32 }
0x1903   : > { %v5391_v48 = vpop.xlane.xlu0 %5390  ;;  %7235 = vrcp.f32 %v5397_v18 }
0x1904   : > { %7237 = vrcp.f32 %v5391_v48 }
0x1905   : > { %v5469_v57 = vpop.permute.xlu1 %5468 }
0x1906   : > { %6681 = vmatpush3.bf16.msra.mxu1 %v5469_v57 }
0x1907   : > { %v5422_v30 = vpop.permute.xlu0 %5421  ;;  %6692 = vmatprep.subr.bf16.mxu1 %v7469_v28 }
0x1908   : > { %6675 = vmatpush3.bf16.msra.mxu0 %v5422_v30 }
0x1909   : > { %6683 = vmatmul.mubr.msk.bf16.vlgmr.msra.gmra.mrb[176].mxu1 %vm1237_vm2, %v5418_v20  ;;  %6686 = vmatprep.subr.bf16.mxu0 %v7469_v28  ;;  %v5516_v35 = vpop.permute.xlu1 %5515 }
0x190a   : > { %6694 = vmatprep.mubr.msk.bf16.mxu1 %vm7470_vm0, %v7469_v28 }
0x190b   : > { %6677 = vmatmul.mubr.msk.bf16.vlgmr.msra.gmra.mrb[120].mxu0 %vm1237_vm2, %v5417_v56 }
0x190c   : > { %6687 = vmatpush3.bf16.msra.mxu0 %v5516_v35  ;;  %6688 = vmatprep.mubr.msk.bf16.mxu0 %vm7470_vm0, %v7469_v28  ;;  %v7234_v11 = vpop.eup %7233 }
0x190d   : > { %v7236_v39 = vpop.eup %7235  ;;  %v5416_v31 = vmul.f32 %v7234_v11, %v7222_v53  ;;  %6698 = vmatprep.subr.bf16.mxu0 %v6967_v37 }
0x190e   : > { %v5415_v15 = vmul.f32 %v7236_v39, %v7218_v54  ;;  %v7238_v16 = vpop.eup %7237  ;;  %v6043_v54 = vld [vmem:[%s8771_s7] ss:$0 sm:$0xff] }
0x190f   : > { %v5413_v23 = vmul.f32 %v7238_v16, %v8678_v0 }
0x1910   : > { %v5420_v10 = vpack.c.bf16 %v5416_v31, %v5415_v15 }
0x193a   : > { %v5394_v43 = vpop.xlane.xlu1 %5393 }
0x193b   : > { %7239 = vrcp.f32 %v5394_v43 }
0x193e   : > { %v5563_v6 = vpop.permute.xlu1 %5562 }
0x193f   : > { %6693 = vmatpush3.bf16.msra.mxu1 %v5563_v6 }
0x1942   : > { %6695 = vmatmul.mubr.msk.bf16.vlgmr.msra.gmra.mrb[180].mxu1 %vm1237_vm2, %v5420_v10 }
0x1945   : > { %v7240_v4 = vpop.eup %7239 }
0x1946   : > { %v5414_v63 = vmul.f32 %v7240_v4, %v7224_v55 }
0x1948   : > { %v5419_v28 = vpack.c.bf16 %v5414_v63, %v5413_v23 }
0x194a   : > { %6689 = vmatmul.mubr.msk.bf16.vlgmr.msra.gmra.mrb[124].mxu0 %vm1237_vm2, %v5419_v28 }
0x194b   : > { %6699 = vmatpush3.bf16.msra.mxu0 %v6967_v37 }
0x194c   : > { %6700 = vmatprep.subr.bf16.mxu0 %v6968_v50 }
0x194f   : > { %6701 = vmatpush3.bf16.msra.mxu0 %v6968_v50 }
0x19dc   : > { %v5508_v33 = vpop.f32.mrb[176].mxu1 }
0x19dd   : > { %v6684_v46 = vpop.f32.mrb[177].mxu1 }
0x19de   : > { %v5461_v21 = vpop.f32.mrb[120].mxu0  ;;  %v5511_v44 = vpop.f32.mrb[178].mxu1 }
0x19df   : > { %v5610_v51 = vpack.c.bf16 %v5511_v44, %v5508_v33  ;;  %v6678_v5 = vpop.f32.mrb[121].mxu0  ;;  %v6685_v42 = vpop.f32.mrb[179].mxu1 }
0x19e0   : > { %v5464_v3 = vpop.f32.mrb[122].mxu0 }
0x19e1   : > { %v5609_v27 = vpack.c.bf16 %v5464_v3, %v5461_v21  ;;  %v6679_v24 = vpop.f32.mrb[123].mxu0 }
0x19e3   : > { %6702 = vmatprep.mubr.msk.bf16.mxu0 %vm1048_vm1, %v5609_v27 }
0x19e4   : > { %6703 = vmatmul.mubr.msk.bf16.vlgmr.msra.gmra.mrb[52].mxu0 %vm1048_vm1, %v5610_v51 }
0x1a15   : > { %v5602_v36 = vpop.f32.mrb[180].mxu1 }
0x1a16   : > { %v6696_v52 = vpop.f32.mrb[181].mxu1 }
0x1a17   : > { %v5605_v22 = vpop.f32.mrb[182].mxu1 }
0x1a18   : > { %v5612_v62 = vpack.c.bf16 %v5605_v22, %v5602_v36  ;;  %v6697_v2 = vpop.f32.mrb[183].mxu1 }
0x1a1d   : > { %v5555_v34 = vpop.f32.mrb[124].mxu0 }
0x1a1e   : > { %v6690_v14 = vpop.f32.mrb[125].mxu0 }
0x1a1f   : > { %v5558_v47 = vpop.f32.mrb[126].mxu0 }
0x1a20   : > { %v5611_v41 = vpack.c.bf16 %v5558_v47, %v5555_v34  ;;  %v6691_v26 = vpop.f32.mrb[127].mxu0 }
0x1a22   : > { %6706 = vmatprep.mubr.msk.bf16.mxu0 %vm1048_vm1, %v5611_v41 }
0x1a23   : > { %6707 = vmatmul.mubr.msk.bf16.gmra.mrb[56].mxu0 %vm1048_vm1, %v5612_v62 }
0x1ab7   : > { %v6704_v0 = vpop.f32.mrb[52].mxu0 }
0x1ab8   : > { %v5723_v8 = vadd.f32 %v6704_v0, %v6043_v54  ;;  %v5675_v53 = vpop.f32.mrb[53].mxu0 }
0x1ab9   : > { %v5721_v40 = vadd.f32 %v6043_v54, %v5675_v53  ;;  %v6705_v61 = vpop.f32.mrb[54].mxu0 }
0x1aba   : > { %5731 = vst [vmem:[%s382_s22 + $0x10] sm:$0xff] %v5723_v8  ;;  %v5724_v9 = vadd.f32 %v6705_v61, %v6043_v54  ;;  %v5678_v1 = vpop.f32.mrb[55].mxu0 }
0x1abb   : > { %5729 = vst [vmem:[%s382_s22] sm:$0xff] %v5721_v40  ;;  %v5722_v55 = vadd.f32 %v6043_v54, %v5678_v1 }
0x1abc   : > { %5732 = vst [vmem:[%s382_s22 + $0x18] sm:$0xff] %v5724_v9 }
0x1abd   : > { %5730 = vst [vmem:[%s382_s22 + $0x8] sm:$0xff] %v5722_v55 }
0x1af6   : > { %v6708_v19 = vpop.f32.mrb[56].mxu0 }
0x1af7   : > { %v5727_v13 = vadd.f32 %v6708_v19, %v6043_v54  ;;  %v5691_v12 = vpop.f32.mrb[57].mxu0 }
0x1af8   : > { %v5725_v7 = vadd.f32 %v6043_v54, %v5691_v12  ;;  %v6709_v38 = vpop.f32.mrb[58].mxu0 }
0x1af9   : > { %5735 = vst [vmem:[%s382_s22 + $0x30] sm:$0xff] %v5727_v13  ;;  %v5728_v18 = vadd.f32 %v6709_v38, %v6043_v54  ;;  %v5694_v25 = vpop.f32.mrb[59].mxu0 }
0x1afa   : > { %5733 = vst [vmem:[%s382_s22 + $0x20] sm:$0xff] %v5725_v7  ;;  %v5726_v59 = vadd.f32 %v6043_v54, %v5694_v25 }
0x1afb   : > { %5736 = vst [vmem:[%s382_s22 + $0x38] sm:$0xff] %v5728_v18 }
0x1afc   : > { %5734 = vst [vmem:[%s382_s22 + $0x28] sm:$0xff] %v5726_v59 }
0x1afd   : > { %7396 = shalt.err (!%p7393_p13)
}
0x1afe   : > { %s7397_s27 = scalar_lea.hbm %s8720_s11, 1024  ;;  %s7401_s17 = scalar_lea.hbm %s8772_s8, 2048 }
0x1aff   : > { %p7398_p9 = scmp.ne.s32.totalorder %s8720_s11, %s7397_s27  ;;  %p7402_p4 = scmp.lt.u32.totalorder %s8720_s11, %s8772_s8 }
0x1b00   : > { %p7403_p8 = scmp.lt.u32.totalorder %s7401_s17, %s7397_s27  ;;  %p7405_p10 = scmp.lt.u32.totalorder %s7397_s27, %s8720_s11 }
0x1b01   : > { %p7399_p0 = pnand %p7398_p9, %p7693_p3 }
0x1b02   : > { %p7404_p6 = por %p7403_p8, %p7402_p4 }
0x1b03   : > { %p7400_p11 = pneg %p7399_p0 }
0x1b04   : > { %p7406_p5 = por %p7405_p10, %p7404_p6 }
0x1b06   : > { %p7407_p7 = pnand %p7406_p5, %p7400_p11 }
0x1b08   : > { %7410 = shalt.err (!%p7407_p7)
}
0x1b09   : > { %s7475_s15 = smov 128   ;;  %s7476_s12 = smov 8  }
0x1b0a   : > { %6800 = dma.vmem_to_hbm [thread:$0]  (%p7693_p3), %s8715_s20, 1024, %s8720_s11, %s5738_s9, %s7475_s15, %s7475_s15, %s7476_s12  }
0x1b0b PF: > { %s8796_s13 = sld [smem:[#allocation16_spill]]  ;;  %s8797_s19 = sld [smem:[#allocation17_spill]] }
0x1b0c   : > { %p8799_p1 = scmp.ge.s32.totalorder %s7457_s30, 2 }
0x1b11   : > { %s5767_s21 = sand.u32 1, %s8796_s13   ;;  %p8798_p12 = scmp.ne.s32.totalorder %s8797_s19, 0 }
0x1b12   : > { %s5768_s18 = scalar_lea.sflag [#allocation4], %s5767_s21 }
0x1b13   : > { %p6820_p2 = pnand %p8799_p1, %p8798_p12 }
0x1b15   : > { %7440 = dma.done.wait (!%p6820_p2), %s5768_s18, 1024  }
0x1b16   : > { %7442 = vsyncadd (!%p6820_p2), %s5768_s18, 4294966272  ;;  %p23_p13 = scmp.ge.s32.totalorder %s7680_s23, 4   ;;  %s8800_s27 = smov %s7449_s28 }
0x1b17   : > { %s8801_s28 = smov %s7453_s29  ;;  %s8802_s29 = smov %s7689_s10 }
0x1b18   : > { %s8803_s30 = smov %s7680_s23  ;;  %25 = sbr.rel (!%p23_p13) target bundleno = 7 (0x7), region = 113 }
0x1b1f   :  { %5773 = vsyncpa [#allocation3], 1 }
0x1b20   :  { %5775 = vsyncpa [#allocation3 + $0x1], 1 }
0x1b21   :  { %5776 = vsyncpa [#allocation6], 1 }
0x1b22   :  { %5777 = vsyncpa [#allocation9], 1 }
0x1b23   :  { %5778 = vsyncpa [#allocation4], 1 }
0x1b24   :  { %5780 = vsyncpa [#allocation4 + $0x1], 1 }

</bundles_post_ra>
